<compile_context>
chip_gen: v7x
topology: tpu7x:2x2x1
jax: 0.10.0
libtpu: 0.0.40
codegen_flags: <defaults>
</compile_context>

<pallas_src>
import functools

import jax
import jax.numpy as jnp
import numpy as np
from jax.experimental import pallas as pl
from jax.experimental.pallas import tpu as pltpu

KSIZES = (5, 9, 13)
PAD = 2            # (5 - 1) // 2 : per-cascade-stage spatial padding
N_STAGES = 3
ROW_HALO = 6       # input rows needed above/below an output row tile (3 stages * 2)
HB = 8             # neighbour halo block height (>= ROW_HALO, keeps row blocks aligned)

_VMEM_TILE_BUDGET = 28 * 1024 * 1024   # per-step footprint target (safe on v7x 64 MiB)
_VMEM_LIMIT_CAP = 48 * 1024 * 1024     # never ask Mosaic for all of v7x's VMEM


def _round_up(x, m):
    return ((x + m - 1) // m) * m


def _max5(a, b, c, d, e):
    # Balanced tree (dependency depth 3) instead of a linear reduce chain (4).
    return jnp.maximum(jnp.maximum(jnp.maximum(a, b), jnp.maximum(c, d)), e)


def _sppf_body(x_ref, above_ref, below_ref, o_ref, pad_ref, wtmp_ref, *, th, w, halo):
    """One (batch, channel-tile, row-tile) block of the exact SPPF cascade.

    Channels-last layout inside the kernel: C on the 128-lane axis, W on
    sublanes, H on the leading axis, so every pooling tap is a ref-offset slice.

    pad_ref : (th + 2*halo, Wp, ct) working buffer.  Columns [0, PAD) and
              [PAD+w, Wp) are a persistent -inf halo; rows hold the input tile
              plus `halo` rows of neighbour data (or -inf at image edges).
    wtmp_ref: (th + 2*halo + 2*PAD, w, ct) W-pass partial max.  When halo == 0
              its top/bottom PAD rows are a persistent -inf border so the
              H-pass taps never need out-of-tile rows.
    """
    ct = pad_ref.shape[-1]
    wp = pad_ref.shape[1]
    dt = pad_ref.dtype
    rows = th + 2 * halo

    # ---- persistent -inf column halo (left PAD cols, right cols incl. alignment) ----
    pad_ref[:, 0:PAD, :] = jnp.full((rows, PAD, ct), -jnp.inf, dt)
    pad_ref[:, PAD + w:wp, :] = jnp.full((rows, wp - PAD - w, ct), -jnp.inf, dt)

    # ---- place the input tile + row halo ----
    pad_ref[halo:halo + th, PAD:PAD + w, :] = x_ref[...]
    if halo:
        i = pl.program_id(2)
        last = pl.num_programs(2) - 1

        @pl.when(i > 0)
        def _():
            pad_ref[0:halo, PAD:PAD + w, :] = above_ref[HB - halo:HB, :, :]

        @pl.when(i == 0)
        def _():
            pad_ref[0:halo, PAD:PAD + w, :] = jnp.full((halo, w, ct), -jnp.inf, dt)

        @pl.when(i < last)
        def _():
            pad_ref[halo + th:rows, PAD:PAD + w, :] = below_ref[0:halo, :, :]

        @pl.when(i == last)
        def _():
            pad_ref[halo + th:rows, PAD:PAD + w, :] = jnp.full((halo, w, ct), -jnp.inf, dt)
    else:
        # -inf border for the H-pass taps; the W-pass never writes these rows.
        wtmp_ref[0:PAD, :, :] = jnp.full((PAD, w, ct), -jnp.inf, dt)
        wtmp_ref[PAD + th:PAD + th + PAD, :, :] = jnp.full((PAD, w, ct), -jnp.inf, dt)

    # ---- 3-stage cascade of separable 5x5 max pools (exact k = 5 / 9 / 13) ----
    for s in range(N_STAGES):
        lo = min(2 * s, halo)              # valid input rows: pad[lo : rows - lo]
        n_in = rows - 2 * lo
        olo = min(2 * (s + 1), halo)       # result rows (pad coords): [olo : rows - olo]
        n_out = rows - 2 * olo

        # 5-tap max along W (sublane axis) -- only over rows that hold real data.
        wtmp_ref[lo + PAD:lo + PAD + n_in, :, :] = _max5(
            *[pad_ref[lo:lo + n_in, d:d + w, :] for d in range(5)])

        # 5-tap max along H (leading axis).
        res = _max5(
            *[wtmp_ref[olo + PAD - 2 + d:olo + PAD - 2 + d + n_out, :, :]
              for d in range(5)])

        # Central th rows are this stage's pooled output.
        off = halo - olo
        o_ref[s] = res[off:off + th]
        # Dual-store: feed the next cascade stage directly (no o_ref re-read).
        if s < N_STAGES - 1:
            pad_ref[olo:olo + n_out, PAD:PAD + w, :] = res


def _ct_candidates(c):
    if c % 128 == 0:
        units = c // 128
        return [128 * m for m in range(units, 0, -1) if units % m == 0]
    # TODO(synk): large C that is not a multiple of 128 gets one lane-padded
    # tile; pad C upstream (or tile it) if that ever blows VMEM.
    return [c]


def _footprint_bytes(th, w, ct, halo, itemsize, tiled):
    wr = _round_up(w, 8)
    wp = _round_up(w + 2 * PAD, 8)
    rows = th + 2 * halo
    fin = 2 * th * wr * ct * itemsize                    # input block, double-buffered
    if tiled:
        fin += 2 * 2 * HB * wr * ct * itemsize           # above/below halo blocks
    fout = 2 * 3 * th * wr * ct * itemsize               # output block, double-buffered
    scratch = rows * wp * ct * itemsize + (rows + 2 * PAD) * wr * ct * itemsize
    temps = 3 * (rows + 2 * PAD) * wr * ct * itemsize    # headroom for vector temporaries
    return fin + fout + scratch + temps


def _choose_tiles(n, h, w, c, itemsize, budget):
    cts = _ct_candidates(c)
    # 1) untiled H: largest channel tile that fits the per-step VMEM budget.
    for idx, ct in enumerate(cts):
        if _footprint_bytes(h, w, ct, 0, itemsize, False) <= budget:
            # Keep >= 2 parallel grid steps so both v7x TensorCores get work.
            if n * (c // ct) == 1 and idx + 1 < len(cts):
                ct = cts[idx + 1]
            return ct, h, 0
    # 2) tile H with the smallest channel tile (needs the 6-row neighbour halo).
    ct = cts[-1]
    if h % HB == 0:
        ths = [t for t in range(h - HB, HB - 1, -HB) if h % t == 0]
        for th in ths:
            if _footprint_bytes(th, w, ct, ROW_HALO, itemsize, True) <= budget:
                return ct, th, ROW_HALO
        if ths:
            return ct, ths[-1], ROW_HALO
    # Fallback: no legal tiling; run untiled and let the VMEM limit stretch.
    return ct, h, 0


def _spp_channels_last(x, row_tile=None):
    """x: (N, H, W, C) -> (N, 3, H, W, C); axis 1 = [pool5, pool9, pool13]."""
    if not jnp.issubdtype(x.dtype, jnp.floating):
        raise TypeError("SPP kernel uses -inf padding; a floating dtype is required.")
    n, h, w, c = x.shape
    itemsize = jnp.dtype(x.dtype).itemsize

    if (row_tile is not None and row_tile < h and h % row_tile == 0
            and row_tile % HB == 0 and h % HB == 0):
        th, halo = row_tile, ROW_HALO
        cts = _ct_candidates(c)
        ct = next((t for t in cts
                   if _footprint_bytes(th, w, t, halo, itemsize, True) <= _VMEM_TILE_BUDGET),
                  cts[-1])
    else:
        ct, th, halo = _choose_tiles(n, h, w, c, itemsize, _VMEM_TILE_BUDGET)

    wp = _round_up(w + 2 * PAD, 8)
    n_ct = c // ct
    n_ht = h // th
    kernel_body = functools.partial(_sppf_body, th=th, w=w, halo=halo)

    need = _footprint_bytes(th, w, ct, halo, itemsize, halo > 0)
    vmem_limit = int(min(_VMEM_LIMIT_CAP, max(2 * need, 8 * 1024 * 1024)))

    out_shape = jax.ShapeDtypeStruct((n, 3, h, w, c), x.dtype)
    scratch = [
        pltpu.VMEM((th + 2 * halo, wp, ct), x.dtype),
        pltpu.VMEM((th + 2 * halo + 2 * PAD, w, ct), x.dtype),
    ]

    if halo == 0:
        def kernel(x_ref, o_ref, pad_ref, wtmp_ref):
            kernel_body(x_ref, None, None, o_ref, pad_ref, wtmp_ref)

        return pl.pallas_call(
            kernel,
            out_shape=out_shape,
            grid=(n, n_ct),
            in_specs=[pl.BlockSpec((pl.Squeezed(), th, w, ct),
                                   lambda b, j: (b, 0, 0, j))],
            out_specs=pl.BlockSpec((pl.Squeezed(), 3, th, w, ct),
                                   lambda b, j: (b, 0, 0, 0, j)),
            scratch_shapes=scratch,
            compiler_params=pltpu.CompilerParams(
                dimension_semantics=("parallel", "parallel"),
                vmem_limit_bytes=vmem_limit,
            ),
        )(x)

    # H-tiled path: the same array is passed three times; the extra specs carry
    # the 8-row neighbour blocks that provide the 6-row cascade halo.
    tb = th // HB
    hb_last = h // HB - 1

    def kernel(x_ref, above_ref, below_ref, o_ref, pad_ref, wtmp_ref):
        kernel_body(x_ref, above_ref, below_ref, o_ref, pad_ref, wtmp_ref)

    return pl.pallas_call(
        kernel,
        out_shape=out_shape,
        grid=(n, n_ct, n_ht),
        in_specs=[
            pl.BlockSpec((pl.Squeezed(), th, w, ct),
                         lambda b, j, i: (b, i, 0, j)),
            pl.BlockSpec((pl.Squeezed(), HB, w, ct),
                         lambda b, j, i: (b, jnp.maximum(i * tb - 1, 0), 0, j)),
            pl.BlockSpec((pl.Squeezed(), HB, w, ct),
                         lambda b, j, i: (b, jnp.minimum((i + 1) * tb, hb_last), 0, j)),
        ],
        out_specs=pl.BlockSpec((pl.Squeezed(), 3, th, w, ct),
                               lambda b, j, i: (b, 0, i, 0, j)),
        scratch_shapes=scratch,
        compiler_params=pltpu.CompilerParams(
            dimension_semantics=("parallel", "parallel", "parallel"),
            vmem_limit_bytes=vmem_limit,
        ),
    )(x, x, x)


def spp(x, row_tile=None):
    """PyTorch-layout SPP: (N, C, H, W) -> (N, 3C, H, W), channels = [p5 | p9 | p13].

    The NCHW<->NHWC transposes are standalone-test glue only; in the full
    SPPCSPC they fold into the surrounding channels-last convolutions.
    """
    n, c, h, w = x.shape
    x_nhwc = jnp.transpose(x, (0, 2, 3, 1))
    y = _spp_channels_last(x_nhwc, row_tile=row_tile)   # (N, 3, H, W, C)
    return jnp.transpose(y, (0, 1, 4, 2, 3)).reshape(n, 3 * c, h, w)


def spp_nhwc(x_nhwc, row_tile=None):
    """Fusion-friendly channels-last entry point: (N, H, W, C) -> (N, H, W, 3C)."""
    n, h, w, c = x_nhwc.shape
    y = _spp_channels_last(x_nhwc, row_tile=row_tile)   # (N, 3, H, W, C)
    return jnp.transpose(y, (0, 2, 3, 1, 4)).reshape(n, h, w, 3 * c)


def spp_ref(x):
    """Pure-JAX reference matching PyTorch SPP.forward (NCHW)."""
    outs = []
    for k in KSIZES:
        p = (k - 1) // 2
        pooled = jax.lax.reduce_window(
            x,
            -jnp.inf,
            jax.lax.max,
            window_dimensions=(1, 1, k, k),
            window_strides=(1, 1, 1, 1),
            padding=((0, 0), (0, 0), (p, p), (p, p)),
        )
        outs.append(pooled)
    return jnp.concatenate(outs, axis=1)


if __name__ == "__main__":
    key = jax.random.PRNGKey(0)

    # 1) Small sanity case (C not a multiple of 128; single untiled block).
    x1 = jax.random.normal(key, (2, 4, 16, 16), dtype=jnp.float32)
    out1 = spp(x1)
    jax.block_until_ready(out1)
    np.testing.assert_allclose(np.asarray(out1), np.asarray(spp_ref(x1)),
                               rtol=1e-6, atol=1e-6)

    # 2) YOLO-scale channels: exercises lane-dense multiple-of-128 channel tiles
    #    and the ">= 2 parallel grid steps" policy.
    x2 = jax.random.normal(jax.random.fold_in(key, 1), (1, 512, 20, 20),
                           dtype=jnp.float32)
    out2 = spp(x2)
    jax.block_until_ready(out2)
    np.testing.assert_allclose(np.asarray(out2), np.asarray(spp_ref(x2)),
                               rtol=1e-6, atol=1e-6)

    # 3) Force the H-tiled path (6-row neighbour halo): exercises top/bottom
    #    -inf edges and interior tiles with real halo on both sides.
    x3 = jax.random.normal(jax.random.fold_in(key, 2), (1, 128, 32, 32),
                           dtype=jnp.float32)
    out3 = spp(x3, row_tile=8)
    jax.block_until_ready(out3)
    np.testing.assert_allclose(np.asarray(out3), np.asarray(spp_ref(x3)),
                               rtol=1e-6, atol=1e-6)

    print("KERNEL_OK")
</pallas_src>

<mosaic_0001>
module attributes {stable_mosaic.version = 11 : i64} {
  func.func @kernel(%arg0: i32, %arg1: i32, %arg2: memref<1x16x16x4xf32, #tpu.memory_space<vmem>>, %arg3: memref<1x3x16x16x4xf32, #tpu.memory_space<vmem>>, %arg4: memref<16x24x4xf32, #tpu.memory_space<vmem>>, %arg5: memref<20x16x4xf32, #tpu.memory_space<vmem>>) attributes {dimension_semantics = [#tpu.dimension_semantics<parallel>, #tpu.dimension_semantics<parallel>], iteration_bounds = array<i64: 2, 1>, scalar_prefetch = 0 : i64, scratch_operands = 2 : i64, tpu.core_type = #tpu.core_type<tc>, window_params = [{transform_indices = @transform_0, window_bounds = array<i64: 1, 16, 16, 4>}, {transform_indices = @transform_1, window_bounds = array<i64: 1, 3, 16, 16, 4>}]} {
    %cst = arith.constant 0xFF800000 : f32
    %0 = vector.broadcast %cst : f32 to vector<16x2x4xf32>
    %c0 = arith.constant 0 : index
    %c0_0 = arith.constant 0 : index
    %c0_1 = arith.constant 0 : index
    %1 = vector.load %arg4[%c0, %c0_0, %c0_1] : memref<16x24x4xf32, #tpu.memory_space<vmem>>, vector<16x2x4xf32>
    tpu.vector_store %arg4[%c0, %c0_0, %c0_1], %0 {strides = array<i32>} : memref<16x24x4xf32, #tpu.memory_space<vmem>>, vector<16x2x4xf32>,
    %cst_2 = arith.constant 0xFF800000 : f32
    %2 = vector.broadcast %cst_2 : f32 to vector<16x6x4xf32>
    %c0_3 = arith.constant 0 : index
    %c18 = arith.constant 18 : index
    %c0_4 = arith.constant 0 : index
    %3 = vector.load %arg4[%c0_3, %c18, %c0_4] : memref<16x24x4xf32, #tpu.memory_space<vmem>>, vector<16x6x4xf32>
    tpu.vector_store %arg4[%c0_3, %c18, %c0_4], %2 {strides = array<i32>} : memref<16x24x4xf32, #tpu.memory_space<vmem>>, vector<16x6x4xf32>,
    %c0_5 = arith.constant 0 : index
    %c0_6 = arith.constant 0 : index
    %c0_7 = arith.constant 0 : index
    %c0_8 = arith.constant 0 : index
    %4 = vector.load %arg2[%c0_5, %c0_6, %c0_7, %c0_8] : memref<1x16x16x4xf32, #tpu.memory_space<vmem>>, vector<1x16x16x4xf32>
    %5 = vector.shape_cast %4 : vector<1x16x16x4xf32> to vector<16x16x4xf32>
    %c0_9 = arith.constant 0 : index
    %c2 = arith.constant 2 : index
    %c0_10 = arith.constant 0 : index
    %6 = vector.load %arg4[%c0_9, %c2, %c0_10] : memref<16x24x4xf32, #tpu.memory_space<vmem>>, vector<16x16x4xf32>
    tpu.vector_store %arg4[%c0_9, %c2, %c0_10], %5 {strides = array<i32>} : memref<16x24x4xf32, #tpu.memory_space<vmem>>, vector<16x16x4xf32>,
    %cst_11 = arith.constant 0xFF800000 : f32
    %7 = vector.broadcast %cst_11 : f32 to vector<2x16x4xf32>
    %c0_12 = arith.constant 0 : index
    %c0_13 = arith.constant 0 : index
    %c0_14 = arith.constant 0 : index
    %8 = vector.load %arg5[%c0_12, %c0_13, %c0_14] : memref<20x16x4xf32, #tpu.memory_space<vmem>>, vector<2x16x4xf32>
    tpu.vector_store %arg5[%c0_12, %c0_13, %c0_14], %7 {strides = array<i32>} : memref<20x16x4xf32, #tpu.memory_space<vmem>>, vector<2x16x4xf32>,
    %cst_15 = arith.constant 0xFF800000 : f32
    %9 = vector.broadcast %cst_15 : f32 to vector<2x16x4xf32>
    %c18_16 = arith.constant 18 : index
    %c0_17 = arith.constant 0 : index
    %c0_18 = arith.constant 0 : index
    %10 = vector.load %arg5[%c18_16, %c0_17, %c0_18] : memref<20x16x4xf32, #tpu.memory_space<vmem>>, vector<2x16x4xf32>
    tpu.vector_store %arg5[%c18_16, %c0_17, %c0_18], %9 {strides = array<i32>} : memref<20x16x4xf32, #tpu.memory_space<vmem>>, vector<2x16x4xf32>,
    %c0_19 = arith.constant 0 : index
    %c0_20 = arith.constant 0 : index
    %c0_21 = arith.constant 0 : index
    %11 = vector.load %arg4[%c0_19, %c0_20, %c0_21] : memref<16x24x4xf32, #tpu.memory_space<vmem>>, vector<16x16x4xf32>
    %c0_22 = arith.constant 0 : index
    %c1 = arith.constant 1 : index
    %c0_23 = arith.constant 0 : index
    %12 = vector.load %arg4[%c0_22, %c1, %c0_23] : memref<16x24x4xf32, #tpu.memory_space<vmem>>, vector<16x16x4xf32>
    %c0_24 = arith.constant 0 : index
    %c2_25 = arith.constant 2 : index
    %c0_26 = arith.constant 0 : index
    %13 = vector.load %arg4[%c0_24, %c2_25, %c0_26] : memref<16x24x4xf32, #tpu.memory_space<vmem>>, vector<16x16x4xf32>
    %c0_27 = arith.constant 0 : index
    %c3 = arith.constant 3 : index
    %c0_28 = arith.constant 0 : index
    %14 = vector.load %arg4[%c0_27, %c3, %c0_28] : memref<16x24x4xf32, #tpu.memory_space<vmem>>, vector<16x16x4xf32>
    %c0_29 = arith.constant 0 : index
    %c4 = arith.constant 4 : index
    %c0_30 = arith.constant 0 : index
    %15 = vector.load %arg4[%c0_29, %c4, %c0_30] : memref<16x24x4xf32, #tpu.memory_space<vmem>>, vector<16x16x4xf32>
    %16 = arith.maximumf %11, %12 : vector<16x16x4xf32>
    %17 = arith.maximumf %13, %14 : vector<16x16x4xf32>
    %18 = arith.maximumf %16, %17 : vector<16x16x4xf32>
    %19 = arith.maximumf %18, %15 : vector<16x16x4xf32>
    %c2_31 = arith.constant 2 : index
    %c0_32 = arith.constant 0 : index
    %c0_33 = arith.constant 0 : index
    %20 = vector.load %arg5[%c2_31, %c0_32, %c0_33] : memref<20x16x4xf32, #tpu.memory_space<vmem>>, vector<16x16x4xf32>
    tpu.vector_store %arg5[%c2_31, %c0_32, %c0_33], %19 {strides = array<i32>} : memref<20x16x4xf32, #tpu.memory_space<vmem>>, vector<16x16x4xf32>,
    %c0_34 = arith.constant 0 : index
    %c0_35 = arith.constant 0 : index
    %c0_36 = arith.constant 0 : index
    %21 = vector.load %arg5[%c0_34, %c0_35, %c0_36] : memref<20x16x4xf32, #tpu.memory_space<vmem>>, vector<16x16x4xf32>
    %c1_37 = arith.constant 1 : index
    %c0_38 = arith.constant 0 : index
    %c0_39 = arith.constant 0 : index
    %22 = vector.load %arg5[%c1_37, %c0_38, %c0_39] : memref<20x16x4xf32, #tpu.memory_space<vmem>>, vector<16x16x4xf32>
    %c2_40 = arith.constant 2 : index
    %c0_41 = arith.constant 0 : index
    %c0_42 = arith.constant 0 : index
    %23 = vector.load %arg5[%c2_40, %c0_41, %c0_42] : memref<20x16x4xf32, #tpu.memory_space<vmem>>, vector<16x16x4xf32>
    %c3_43 = arith.constant 3 : index
    %c0_44 = arith.constant 0 : index
    %c0_45 = arith.constant 0 : index
    %24 = vector.load %arg5[%c3_43, %c0_44, %c0_45] : memref<20x16x4xf32, #tpu.memory_space<vmem>>, vector<16x16x4xf32>
    %c4_46 = arith.constant 4 : index
    %c0_47 = arith.constant 0 : index
    %c0_48 = arith.constant 0 : index
    %25 = vector.load %arg5[%c4_46, %c0_47, %c0_48] : memref<20x16x4xf32, #tpu.memory_space<vmem>>, vector<16x16x4xf32>
    %26 = arith.maximumf %21, %22 : vector<16x16x4xf32>
    %27 = arith.maximumf %23, %24 : vector<16x16x4xf32>
    %28 = arith.maximumf %26, %27 : vector<16x16x4xf32>
    %29 = arith.maximumf %28, %25 : vector<16x16x4xf32>
    %c0_49 = arith.constant 0 : index
    %c0_50 = arith.constant 0 : index
    %c0_51 = arith.constant 0 : index
    %c0_52 = arith.constant 0 : index
    %c0_53 = arith.constant 0 : index
    %30 = vector.load %arg3[%c0_49, %c0_50, %c0_51, %c0_52, %c0_53] : memref<1x3x16x16x4xf32, #tpu.memory_space<vmem>>, vector<1x1x16x16x4xf32>
    %31 = vector.shape_cast %30 : vector<1x1x16x16x4xf32> to vector<16x16x4xf32>
    %32 = vector.shape_cast %29 : vector<16x16x4xf32> to vector<1x1x16x16x4xf32>
    tpu.vector_store %arg3[%c0_49, %c0_50, %c0_51, %c0_52, %c0_53], %32 {strides = array<i32>} : memref<1x3x16x16x4xf32, #tpu.memory_space<vmem>>, vector<1x1x16x16x4xf32>,
    %c0_54 = arith.constant 0 : index
    %c2_55 = arith.constant 2 : index
    %c0_56 = arith.constant 0 : index
    %33 = vector.load %arg4[%c0_54, %c2_55, %c0_56] : memref<16x24x4xf32, #tpu.memory_space<vmem>>, vector<16x16x4xf32>
    tpu.vector_store %arg4[%c0_54, %c2_55, %c0_56], %29 {strides = array<i32>} : memref<16x24x4xf32, #tpu.memory_space<vmem>>, vector<16x16x4xf32>,
    %c0_57 = arith.constant 0 : index
    %c0_58 = arith.constant 0 : index
    %c0_59 = arith.constant 0 : index
    %34 = vector.load %arg4[%c0_57, %c0_58, %c0_59] : memref<16x24x4xf32, #tpu.memory_space<vmem>>, vector<16x16x4xf32>
    %c0_60 = arith.constant 0 : index
    %c1_61 = arith.constant 1 : index
    %c0_62 = arith.constant 0 : index
    %35 = vector.load %arg4[%c0_60, %c1_61, %c0_62] : memref<16x24x4xf32, #tpu.memory_space<vmem>>, vector<16x16x4xf32>
    %c0_63 = arith.constant 0 : index
    %c2_64 = arith.constant 2 : index
    %c0_65 = arith.constant 0 : index
    %36 = vector.load %arg4[%c0_63, %c2_64, %c0_65] : memref<16x24x4xf32, #tpu.memory_space<vmem>>, vector<16x16x4xf32>
    %c0_66 = arith.constant 0 : index
    %c3_67 = arith.constant 3 : index
    %c0_68 = arith.constant 0 : index
    %37 = vector.load %arg4[%c0_66, %c3_67, %c0_68] : memref<16x24x4xf32, #tpu.memory_space<vmem>>, vector<16x16x4xf32>
    %c0_69 = arith.constant 0 : index
    %c4_70 = arith.constant 4 : index
    %c0_71 = arith.constant 0 : index
    %38 = vector.load %arg4[%c0_69, %c4_70, %c0_71] : memref<16x24x4xf32, #tpu.memory_space<vmem>>, vector<16x16x4xf32>
    %39 = arith.maximumf %34, %35 : vector<16x16x4xf32>
    %40 = arith.maximumf %36, %37 : vector<16x16x4xf32>
    %41 = arith.maximumf %39, %40 : vector<16x16x4xf32>
    %42 = arith.maximumf %41, %38 : vector<16x16x4xf32>
    %c2_72 = arith.constant 2 : index
    %c0_73 = arith.constant 0 : index
    %c0_74 = arith.constant 0 : index
    %43 = vector.load %arg5[%c2_72, %c0_73, %c0_74] : memref<20x16x4xf32, #tpu.memory_space<vmem>>, vector<16x16x4xf32>
    tpu.vector_store %arg5[%c2_72, %c0_73, %c0_74], %42 {strides = array<i32>} : memref<20x16x4xf32, #tpu.memory_space<vmem>>, vector<16x16x4xf32>,
    %c0_75 = arith.constant 0 : index
    %c0_76 = arith.constant 0 : index
    %c0_77 = arith.constant 0 : index
    %44 = vector.load %arg5[%c0_75, %c0_76, %c0_77] : memref<20x16x4xf32, #tpu.memory_space<vmem>>, vector<16x16x4xf32>
    %c1_78 = arith.constant 1 : index
    %c0_79 = arith.constant 0 : index
    %c0_80 = arith.constant 0 : index
    %45 = vector.load %arg5[%c1_78, %c0_79, %c0_80] : memref<20x16x4xf32, #tpu.memory_space<vmem>>, vector<16x16x4xf32>
    %c2_81 = arith.constant 2 : index
    %c0_82 = arith.constant 0 : index
    %c0_83 = arith.constant 0 : index
    %46 = vector.load %arg5[%c2_81, %c0_82, %c0_83] : memref<20x16x4xf32, #tpu.memory_space<vmem>>, vector<16x16x4xf32>
    %c3_84 = arith.constant 3 : index
    %c0_85 = arith.constant 0 : index
    %c0_86 = arith.constant 0 : index
    %47 = vector.load %arg5[%c3_84, %c0_85, %c0_86] : memref<20x16x4xf32, #tpu.memory_space<vmem>>, vector<16x16x4xf32>
    %c4_87 = arith.constant 4 : index
    %c0_88 = arith.constant 0 : index
    %c0_89 = arith.constant 0 : index
    %48 = vector.load %arg5[%c4_87, %c0_88, %c0_89] : memref<20x16x4xf32, #tpu.memory_space<vmem>>, vector<16x16x4xf32>
    %49 = arith.maximumf %44, %45 : vector<16x16x4xf32>
    %50 = arith.maximumf %46, %47 : vector<16x16x4xf32>
    %51 = arith.maximumf %49, %50 : vector<16x16x4xf32>
    %52 = arith.maximumf %51, %48 : vector<16x16x4xf32>
    %c0_90 = arith.constant 0 : index
    %c1_91 = arith.constant 1 : index
    %c0_92 = arith.constant 0 : index
    %c0_93 = arith.constant 0 : index
    %c0_94 = arith.constant 0 : index
    %53 = vector.load %arg3[%c0_90, %c1_91, %c0_92, %c0_93, %c0_94] : memref<1x3x16x16x4xf32, #tpu.memory_space<vmem>>, vector<1x1x16x16x4xf32>
    %54 = vector.shape_cast %53 : vector<1x1x16x16x4xf32> to vector<16x16x4xf32>
    %55 = vector.shape_cast %52 : vector<16x16x4xf32> to vector<1x1x16x16x4xf32>
    tpu.vector_store %arg3[%c0_90, %c1_91, %c0_92, %c0_93, %c0_94], %55 {strides = array<i32>} : memref<1x3x16x16x4xf32, #tpu.memory_space<vmem>>, vector<1x1x16x16x4xf32>,
    %c0_95 = arith.constant 0 : index
    %c2_96 = arith.constant 2 : index
    %c0_97 = arith.constant 0 : index
    %56 = vector.load %arg4[%c0_95, %c2_96, %c0_97] : memref<16x24x4xf32, #tpu.memory_space<vmem>>, vector<16x16x4xf32>
    tpu.vector_store %arg4[%c0_95, %c2_96, %c0_97], %52 {strides = array<i32>} : memref<16x24x4xf32, #tpu.memory_space<vmem>>, vector<16x16x4xf32>,
    %c0_98 = arith.constant 0 : index
    %c0_99 = arith.constant 0 : index
    %c0_100 = arith.constant 0 : index
    %57 = vector.load %arg4[%c0_98, %c0_99, %c0_100] : memref<16x24x4xf32, #tpu.memory_space<vmem>>, vector<16x16x4xf32>
    %c0_101 = arith.constant 0 : index
    %c1_102 = arith.constant 1 : index
    %c0_103 = arith.constant 0 : index
    %58 = vector.load %arg4[%c0_101, %c1_102, %c0_103] : memref<16x24x4xf32, #tpu.memory_space<vmem>>, vector<16x16x4xf32>
    %c0_104 = arith.constant 0 : index
    %c2_105 = arith.constant 2 : index
    %c0_106 = arith.constant 0 : index
    %59 = vector.load %arg4[%c0_104, %c2_105, %c0_106] : memref<16x24x4xf32, #tpu.memory_space<vmem>>, vector<16x16x4xf32>
    %c0_107 = arith.constant 0 : index
    %c3_108 = arith.constant 3 : index
    %c0_109 = arith.constant 0 : index
    %60 = vector.load %arg4[%c0_107, %c3_108, %c0_109] : memref<16x24x4xf32, #tpu.memory_space<vmem>>, vector<16x16x4xf32>
    %c0_110 = arith.constant 0 : index
    %c4_111 = arith.constant 4 : index
    %c0_112 = arith.constant 0 : index
    %61 = vector.load %arg4[%c0_110, %c4_111, %c0_112] : memref<16x24x4xf32, #tpu.memory_space<vmem>>, vector<16x16x4xf32>
    %62 = arith.maximumf %57, %58 : vector<16x16x4xf32>
    %63 = arith.maximumf %59, %60 : vector<16x16x4xf32>
    %64 = arith.maximumf %62, %63 : vector<16x16x4xf32>
    %65 = arith.maximumf %64, %61 : vector<16x16x4xf32>
    %c2_113 = arith.constant 2 : index
    %c0_114 = arith.constant 0 : index
    %c0_115 = arith.constant 0 : index
    %66 = vector.load %arg5[%c2_113, %c0_114, %c0_115] : memref<20x16x4xf32, #tpu.memory_space<vmem>>, vector<16x16x4xf32>
    tpu.vector_store %arg5[%c2_113, %c0_114, %c0_115], %65 {strides = array<i32>} : memref<20x16x4xf32, #tpu.memory_space<vmem>>, vector<16x16x4xf32>,
    %c0_116 = arith.constant 0 : index
    %c0_117 = arith.constant 0 : index
    %c0_118 = arith.constant 0 : index
    %67 = vector.load %arg5[%c0_116, %c0_117, %c0_118] : memref<20x16x4xf32, #tpu.memory_space<vmem>>, vector<16x16x4xf32>
    %c1_119 = arith.constant 1 : index
    %c0_120 = arith.constant 0 : index
    %c0_121 = arith.constant 0 : index
    %68 = vector.load %arg5[%c1_119, %c0_120, %c0_121] : memref<20x16x4xf32, #tpu.memory_space<vmem>>, vector<16x16x4xf32>
    %c2_122 = arith.constant 2 : index
    %c0_123 = arith.constant 0 : index
    %c0_124 = arith.constant 0 : index
    %69 = vector.load %arg5[%c2_122, %c0_123, %c0_124] : memref<20x16x4xf32, #tpu.memory_space<vmem>>, vector<16x16x4xf32>
    %c3_125 = arith.constant 3 : index
    %c0_126 = arith.constant 0 : index
    %c0_127 = arith.constant 0 : index
    %70 = vector.load %arg5[%c3_125, %c0_126, %c0_127] : memref<20x16x4xf32, #tpu.memory_space<vmem>>, vector<16x16x4xf32>
    %c4_128 = arith.constant 4 : index
    %c0_129 = arith.constant 0 : index
    %c0_130 = arith.constant 0 : index
    %71 = vector.load %arg5[%c4_128, %c0_129, %c0_130] : memref<20x16x4xf32, #tpu.memory_space<vmem>>, vector<16x16x4xf32>
    %72 = arith.maximumf %67, %68 : vector<16x16x4xf32>
    %73 = arith.maximumf %69, %70 : vector<16x16x4xf32>
    %74 = arith.maximumf %72, %73 : vector<16x16x4xf32>
    %75 = arith.maximumf %74, %71 : vector<16x16x4xf32>
    %c0_131 = arith.constant 0 : index
    %c2_132 = arith.constant 2 : index
    %c0_133 = arith.constant 0 : index
    %c0_134 = arith.constant 0 : index
    %c0_135 = arith.constant 0 : index
    %76 = vector.load %arg3[%c0_131, %c2_132, %c0_133, %c0_134, %c0_135] : memref<1x3x16x16x4xf32, #tpu.memory_space<vmem>>, vector<1x1x16x16x4xf32>
    %77 = vector.shape_cast %76 : vector<1x1x16x16x4xf32> to vector<16x16x4xf32>
    %78 = vector.shape_cast %75 : vector<16x16x4xf32> to vector<1x1x16x16x4xf32>
    tpu.vector_store %arg3[%c0_131, %c2_132, %c0_133, %c0_134, %c0_135], %78 {strides = array<i32>} : memref<1x3x16x16x4xf32, #tpu.memory_space<vmem>>, vector<1x1x16x16x4xf32>,
    return
  }
  func.func @transform_0(%arg0: i32, %arg1: i32) -> (i32, i32, i32, i32) {
    %c0_i32 = arith.constant 0 : i32
    %c0_i32_0 = arith.constant 0 : i32
    %c0_i32_1 = arith.constant 0 : i32
    return %arg0, %c0_i32, %c0_i32_0, %arg1 : i32, i32, i32, i32
  }
  func.func @transform_1(%arg0: i32, %arg1: i32) -> (i32, i32, i32, i32, i32) {
    %c0_i32 = arith.constant 0 : i32
    %c0_i32_0 = arith.constant 0 : i32
    %c0_i32_1 = arith.constant 0 : i32
    %c0_i32_2 = arith.constant 0 : i32
    return %arg0, %c0_i32, %c0_i32_0, %c0_i32_1, %arg1 : i32, i32, i32, i32, i32
  }
}

</mosaic_0001>

<bundles_post_ra>
// kernel: tpu_custom_call.1
= control target key start
LH: loop header
LB: loop body
LE: loop exit
PB: predicated region body
PF: predicated region fallthrough
CT: control target
= control target key end

     0   :  { %s2465_s6 = smov 0   ;;  %s2467_s7 = smov 0   ;;  %s3869_s0 = inlined_call_operand.vmem [shape: f32[2,16,16,4], index: 0, kind: input, shape index: {}]   ;;  %s3870_s1 = inlined_call_operand.vmem [shape: f32[2,3,16,16,4], index: 1, kind: output, shape index: {}]  }
   0x1   :  { %s2469_s8 = smov 0  }
   0x2 LB: > { %s23_s9 = sadd.s32 1, %s2448_s7  ;;  %p2333_p0 = scmp.ge.s32.totalorder %s2452_s8, 1  ;;  %s2452_s8 = sphi %s2469_s8, %s11_s8   ;;  %s2448_s7 = sphi %s2467_s7, %s4096_s7   ;;  %s2444_s6 = sphi %s2465_s6, %s4095_s6  }
   0x3   : > { %p25_p1 = scmp.ge.s32.totalorder %s23_s9, 2  ;;  %p106_p2 = scmp.lt.s32.totalorder %s2452_s8, 3 }
   0x5   : > { %s4098_s9 = smov (%p25_p1, %s23_s9), 0  ;;  %p107_p3 = pnand %p2333_p0, %p106_p2 }
   0x7   : > { %110 = sbr.rel (%p107_p3) target bundleno = 336 (0x150), region = 24 }
   0xe   : > { %vm148_vm0 = vcmask 25600   ;;  %vm165_vm1 = vcmask 29696   ;;  %p132_p4 = scmp.lt.s32.totalorder %s2444_s6, 1  ;;  %vm214_vm2 = vcmask 31744   ;;  %v2454_v0 = vmov -inf  }
   0xf   : > { %149 = vst.msk [vmem:[#allocation2] sm:$0x3] %vm148_vm0, %v2454_v0  ;;  %150 = vst.msk [vmem:[#allocation2 + $0x18] sm:$0x3] %vm148_vm0, %v2454_v0 }
  0x10   : > { %151 = vst.msk [vmem:[#allocation2 + $0x30] sm:$0x3] %vm148_vm0, %v2454_v0  ;;  %152 = vst.msk [vmem:[#allocation2 + $0x48] sm:$0x3] %vm148_vm0, %v2454_v0  ;;  %s4100_s6 = smov (!%p132_p4, %s2444_s6), 1 }
  0x11   : > { %153 = vst.msk [vmem:[#allocation2 + $0x60] sm:$0x3] %vm148_vm0, %v2454_v0  ;;  %154 = vst.msk [vmem:[#allocation2 + $0x78] sm:$0x3] %vm148_vm0, %v2454_v0  ;;  %s2403_s10 = sshll.u32 %s4100_s6, 8  ;;  %s2404_s14 = smul.u32 768, %s4100_s6 }
  0x12   : > { %155 = vst.msk [vmem:[#allocation2 + $0x90] sm:$0x3] %vm148_vm0, %v2454_v0  ;;  %156 = vst.msk [vmem:[#allocation2 + $0xa8] sm:$0x3] %vm148_vm0, %v2454_v0  ;;  %s2535_s13 = scalar_lea.vmem %s3869_s0, %s2403_s10 }
  0x13   : > { %157 = vst.msk [vmem:[#allocation2 + $0xc0] sm:$0x3] %vm148_vm0, %v2454_v0  ;;  %158 = vst.msk [vmem:[#allocation2 + $0xd8] sm:$0x3] %vm148_vm0, %v2454_v0  ;;  %v182_v1 = vld [vmem:[%s2535_s13] sm:$0xff]  ;;  %v183_v2 = vld [vmem:[%s2535_s13 + $0x8] sm:$0xff]  ;;  %s2638_s17 = scalar_lea.vmem %s3870_s1, %s2404_s14 }
  0x14   : > { %159 = vst.msk [vmem:[#allocation2 + $0xf0] sm:$0x3] %vm148_vm0, %v2454_v0  ;;  %160 = vst.msk [vmem:[#allocation2 + $0x108] sm:$0x3] %vm148_vm0, %v2454_v0  ;;  %v184_v3 = vld [vmem:[%s2535_s13 + $0x10] sm:$0xff]  ;;  %v185_v4 = vld [vmem:[%s2535_s13 + $0x18] sm:$0xff] }
  0x15   : > { %161 = vst.msk [vmem:[#allocation2 + $0x120] sm:$0x3] %vm148_vm0, %v2454_v0  ;;  %162 = vst.msk [vmem:[#allocation2 + $0x138] sm:$0x3] %vm148_vm0, %v2454_v0  ;;  %v186_v5 = vld [vmem:[%s2535_s13 + $0x20] sm:$0xff]  ;;  %v187_v6 = vld [vmem:[%s2535_s13 + $0x28] sm:$0xff] }
  0x16   : > { %163 = vst.msk [vmem:[#allocation2 + $0x150] sm:$0x3] %vm148_vm0, %v2454_v0  ;;  %164 = vst.msk [vmem:[#allocation2 + $0x168] sm:$0x3] %vm148_vm0, %v2454_v0  ;;  %v188_v7 = vld [vmem:[%s2535_s13 + $0x30] sm:$0xff]  ;;  %v189_v8 = vld [vmem:[%s2535_s13 + $0x38] sm:$0xff] }
  0x17   : > { %166 = vst.msk [vmem:[#allocation2 + $0x12] sm:$0x3f] %vm165_vm1, %v2454_v0  ;;  %167 = vst.msk [vmem:[#allocation2 + $0x2a] sm:$0x3f] %vm165_vm1, %v2454_v0  ;;  %v190_v9 = vld [vmem:[%s2535_s13 + $0x40] sm:$0xff]  ;;  %v191_v10 = vld [vmem:[%s2535_s13 + $0x48] sm:$0xff] }
  0x18   : > { %168 = vst.msk [vmem:[#allocation2 + $0x42] sm:$0x3f] %vm165_vm1, %v2454_v0  ;;  %169 = vst.msk [vmem:[#allocation2 + $0x5a] sm:$0x3f] %vm165_vm1, %v2454_v0  ;;  %v192_v11 = vld [vmem:[%s2535_s13 + $0x50] sm:$0xff]  ;;  %v193_v12 = vld [vmem:[%s2535_s13 + $0x58] sm:$0xff] }
  0x19   : > { %170 = vst.msk [vmem:[#allocation2 + $0x72] sm:$0x3f] %vm165_vm1, %v2454_v0  ;;  %171 = vst.msk [vmem:[#allocation2 + $0x8a] sm:$0x3f] %vm165_vm1, %v2454_v0  ;;  %v194_v13 = vld [vmem:[%s2535_s13 + $0x60] sm:$0xff]  ;;  %v195_v14 = vld [vmem:[%s2535_s13 + $0x68] sm:$0xff] }
  0x1a   : > { %172 = vst.msk [vmem:[#allocation2 + $0xa2] sm:$0x3f] %vm165_vm1, %v2454_v0  ;;  %173 = vst.msk [vmem:[#allocation2 + $0xba] sm:$0x3f] %vm165_vm1, %v2454_v0  ;;  %v196_v15 = vld [vmem:[%s2535_s13 + $0x70] sm:$0xff]  ;;  %v197_v16 = vld [vmem:[%s2535_s13 + $0x78] sm:$0xff] }
  0x1b   : > { %174 = vst.msk [vmem:[#allocation2 + $0xd2] sm:$0x3f] %vm165_vm1, %v2454_v0  ;;  %175 = vst.msk [vmem:[#allocation2 + $0xea] sm:$0x3f] %vm165_vm1, %v2454_v0  ;;  %v198_v17 = vld [vmem:[%s2535_s13 + $0x80] sm:$0xff]  ;;  %v199_v18 = vld [vmem:[%s2535_s13 + $0x88] sm:$0xff] }
  0x1c   : > { %176 = vst.msk [vmem:[#allocation2 + $0x102] sm:$0x3f] %vm165_vm1, %v2454_v0  ;;  %177 = vst.msk [vmem:[#allocation2 + $0x11a] sm:$0x3f] %vm165_vm1, %v2454_v0  ;;  %v200_v19 = vld [vmem:[%s2535_s13 + $0x90] sm:$0xff]  ;;  %v201_v20 = vld [vmem:[%s2535_s13 + $0x98] sm:$0xff] }
  0x1d   : > { %178 = vst.msk [vmem:[#allocation2 + $0x132] sm:$0x3f] %vm165_vm1, %v2454_v0  ;;  %179 = vst.msk [vmem:[#allocation2 + $0x14a] sm:$0x3f] %vm165_vm1, %v2454_v0  ;;  %v202_v21 = vld [vmem:[%s2535_s13 + $0xa0] sm:$0xff]  ;;  %v203_v22 = vld [vmem:[%s2535_s13 + $0xa8] sm:$0xff] }
  0x1e   : > { %180 = vst.msk [vmem:[#allocation2 + $0x162] sm:$0x3f] %vm165_vm1, %v2454_v0  ;;  %181 = vst.msk [vmem:[#allocation2 + $0x17a] sm:$0x3f] %vm165_vm1, %v2454_v0  ;;  %v204_v23 = vld [vmem:[%s2535_s13 + $0xb0] sm:$0xff]  ;;  %v205_v24 = vld [vmem:[%s2535_s13 + $0xb8] sm:$0xff] }
  0x1f   : > { %247 = vst.msk [vmem:[#allocation3] sm:$0xff] %vm214_vm2, %v2454_v0  ;;  %248 = vst.msk [vmem:[#allocation3 + $0x8] sm:$0xff] %vm214_vm2, %v2454_v0  ;;  %v206_v25 = vld [vmem:[%s2535_s13 + $0xc0] sm:$0xff]  ;;  %v207_v26 = vld [vmem:[%s2535_s13 + $0xc8] sm:$0xff] }
  0x20   : > { %249 = vst.msk [vmem:[#allocation3 + $0x10] sm:$0xff] %vm214_vm2, %v2454_v0  ;;  %250 = vst.msk [vmem:[#allocation3 + $0x18] sm:$0xff] %vm214_vm2, %v2454_v0  ;;  %v208_v27 = vld [vmem:[%s2535_s13 + $0xd0] sm:$0xff]  ;;  %v209_v28 = vld [vmem:[%s2535_s13 + $0xd8] sm:$0xff] }
  0x21   : > { %252 = vst.msk [vmem:[#allocation3 + $0x120] sm:$0xff] %vm214_vm2, %v2454_v0  ;;  %253 = vst.msk [vmem:[#allocation3 + $0x128] sm:$0xff] %vm214_vm2, %v2454_v0  ;;  %v210_v29 = vld [vmem:[%s2535_s13 + $0xe0] sm:$0xff]  ;;  %v211_v30 = vld [vmem:[%s2535_s13 + $0xe8] sm:$0xff] }
  0x22   : > { %254 = vst.msk [vmem:[#allocation3 + $0x130] sm:$0xff] %vm214_vm2, %v2454_v0  ;;  %255 = vst.msk [vmem:[#allocation3 + $0x138] sm:$0xff] %vm214_vm2, %v2454_v0  ;;  %v212_v31 = vld [vmem:[%s2535_s13 + $0xf0] sm:$0xff]  ;;  %v213_v32 = vld [vmem:[%s2535_s13 + $0xf8] sm:$0xff] }
  0x23   : > { %215 = vst.msk [vmem:[#allocation2 + $0x2] sm:$0xff] %vm214_vm2, %v182_v1  ;;  %216 = vst.msk [vmem:[#allocation2 + $0xa] sm:$0xff] %vm214_vm2, %v183_v2 }
  0x24   : > { %217 = vst.msk [vmem:[#allocation2 + $0x1a] sm:$0xff] %vm214_vm2, %v184_v3  ;;  %218 = vst.msk [vmem:[#allocation2 + $0x22] sm:$0xff] %vm214_vm2, %v185_v4 }
  0x25   : > { %219 = vst.msk [vmem:[#allocation2 + $0x32] sm:$0xff] %vm214_vm2, %v186_v5  ;;  %220 = vst.msk [vmem:[#allocation2 + $0x3a] sm:$0xff] %vm214_vm2, %v187_v6 }
  0x26   : > { %221 = vst.msk [vmem:[#allocation2 + $0x4a] sm:$0xff] %vm214_vm2, %v188_v7  ;;  %222 = vst.msk [vmem:[#allocation2 + $0x52] sm:$0xff] %vm214_vm2, %v189_v8 }
  0x27   : > { %223 = vst.msk [vmem:[#allocation2 + $0x62] sm:$0xff] %vm214_vm2, %v190_v9  ;;  %224 = vst.msk [vmem:[#allocation2 + $0x6a] sm:$0xff] %vm214_vm2, %v191_v10 }
  0x28   : > { %225 = vst.msk [vmem:[#allocation2 + $0x7a] sm:$0xff] %vm214_vm2, %v192_v11  ;;  %226 = vst.msk [vmem:[#allocation2 + $0x82] sm:$0xff] %vm214_vm2, %v193_v12 }
  0x29   : > { %227 = vst.msk [vmem:[#allocation2 + $0x92] sm:$0xff] %vm214_vm2, %v194_v13  ;;  %228 = vst.msk [vmem:[#allocation2 + $0x9a] sm:$0xff] %vm214_vm2, %v195_v14 }
  0x2a   : > { %229 = vst.msk [vmem:[#allocation2 + $0xaa] sm:$0xff] %vm214_vm2, %v196_v15  ;;  %230 = vst.msk [vmem:[#allocation2 + $0xb2] sm:$0xff] %vm214_vm2, %v197_v16  ;;  %v256_v33 = vld [vmem:[#allocation2] sm:$0xff]  ;;  %v257_v39 = vld [vmem:[#allocation2 + $0x8] sm:$0xff] }
  0x2b   : > { %231 = vst.msk [vmem:[#allocation2 + $0xc2] sm:$0xff] %vm214_vm2, %v198_v17  ;;  %232 = vst.msk [vmem:[#allocation2 + $0xca] sm:$0xff] %vm214_vm2, %v199_v18  ;;  %v288_v34 = vld [vmem:[#allocation2 + $0x1] sm:$0xff]  ;;  %v289_v40 = vld [vmem:[#allocation2 + $0x9] sm:$0xff] }
  0x2c   : > { %233 = vst.msk [vmem:[#allocation2 + $0xda] sm:$0xff] %vm214_vm2, %v200_v19  ;;  %234 = vst.msk [vmem:[#allocation2 + $0xe2] sm:$0xff] %vm214_vm2, %v201_v20  ;;  %v320_v35 = vld [vmem:[#allocation2 + $0x2] sm:$0xff]  ;;  %v416_v37 = vmax.f32 %v256_v33, %v288_v34  ;;  %v321_v42 = vld [vmem:[#allocation2 + $0xa] sm:$0xff]  ;;  %v417_v44 = vmax.f32 %v257_v39, %v289_v40 }
  0x2d   : > { %235 = vst.msk [vmem:[#allocation2 + $0xf2] sm:$0xff] %vm214_vm2, %v202_v21  ;;  %236 = vst.msk [vmem:[#allocation2 + $0xfa] sm:$0xff] %vm214_vm2, %v203_v22  ;;  %v352_v36 = vld [vmem:[#allocation2 + $0x3] sm:$0xff]  ;;  %v353_v43 = vld [vmem:[#allocation2 + $0xb] sm:$0xff] }
  0x2e   : > { %237 = vst.msk [vmem:[#allocation2 + $0x10a] sm:$0xff] %vm214_vm2, %v204_v23  ;;  %238 = vst.msk [vmem:[#allocation2 + $0x112] sm:$0xff] %vm214_vm2, %v205_v24  ;;  %v448_v38 = vmax.f32 %v320_v35, %v352_v36  ;;  %v384_v41 = vld [vmem:[#allocation2 + $0x4] sm:$0xff]  ;;  %v449_v46 = vmax.f32 %v321_v42, %v353_v43  ;;  %v258_v47 = vld [vmem:[#allocation2 + $0x18] sm:$0xff] }
  0x2f   : > { %239 = vst.msk [vmem:[#allocation2 + $0x122] sm:$0xff] %vm214_vm2, %v206_v25  ;;  %240 = vst.msk [vmem:[#allocation2 + $0x12a] sm:$0xff] %vm214_vm2, %v207_v26  ;;  %v290_v48 = vld [vmem:[#allocation2 + $0x19] sm:$0xff]  ;;  %v385_v50 = vld [vmem:[#allocation2 + $0xc] sm:$0xff] }
  0x30   : > { %241 = vst.msk [vmem:[#allocation2 + $0x13a] sm:$0xff] %vm214_vm2, %v208_v27  ;;  %242 = vst.msk [vmem:[#allocation2 + $0x142] sm:$0xff] %vm214_vm2, %v209_v28  ;;  %v480_v45 = vmax.f32 %v416_v37, %v448_v38  ;;  %v322_v49 = vld [vmem:[#allocation2 + $0x1a] sm:$0xff]  ;;  %v418_v52 = vmax.f32 %v258_v47, %v290_v48  ;;  %v481_v55 = vmax.f32 %v417_v44, %v449_v46  ;;  %v323_v58 = vld [vmem:[#allocation2 + $0x22] sm:$0xff] }
  0x31   : > { %243 = vst.msk [vmem:[#allocation2 + $0x152] sm:$0xff] %vm214_vm2, %v210_v29  ;;  %244 = vst.msk [vmem:[#allocation2 + $0x15a] sm:$0xff] %vm214_vm2, %v211_v30  ;;  %v354_v51 = vld [vmem:[#allocation2 + $0x1b] sm:$0xff]  ;;  %v355_v59 = vld [vmem:[#allocation2 + $0x23] sm:$0xff] }
  0x32   : > { %245 = vst.msk [vmem:[#allocation2 + $0x16a] sm:$0xff] %vm214_vm2, %v212_v31  ;;  %246 = vst.msk [vmem:[#allocation2 + $0x172] sm:$0xff] %vm214_vm2, %v213_v32  ;;  %v259_v53 = vld [vmem:[#allocation2 + $0x20] sm:$0xff]  ;;  %v512_v54 = vmax.f32 %v480_v45, %v384_v41  ;;  %v450_v56 = vmax.f32 %v322_v49, %v354_v51  ;;  %v451_v62 = vmax.f32 %v323_v58, %v355_v59  ;;  %v260_v63 = vld [vmem:[#allocation2 + $0x30] sm:$0xff] }
  0x33   : > { %v291_v57 = vld [vmem:[#allocation2 + $0x21] sm:$0xff]  ;;  %v292_v0 = vld [vmem:[#allocation2 + $0x31] sm:$0xff]  ;;  %v513_v1 = vmax.f32 %v481_v55, %v385_v50  ;;  %v293_v10 = vld [vmem:[#allocation2 + $0x39] sm:$0xff] }
  0x34   : > { %v386_v60 = vld [vmem:[#allocation2 + $0x1c] sm:$0xff]  ;;  %v419_v61 = vmax.f32 %v259_v53, %v291_v57  ;;  %545 = vst.msk [vmem:[#allocation3 + $0x20] sm:$0xff] %vm214_vm2, %v512_v54  ;;  %v482_v2 = vmax.f32 %v418_v52, %v450_v56  ;;  %v387_v3 = vld [vmem:[#allocation2 + $0x24] sm:$0xff]  ;;  %v324_v4 = vld [vmem:[#allocation2 + $0x32] sm:$0xff]  ;;  %v420_v6 = vmax.f32 %v260_v63, %v292_v0 }
  0x35   : > { %v356_v5 = vld [vmem:[#allocation2 + $0x33] sm:$0xff]  ;;  %546 = vst.msk [vmem:[#allocation3 + $0x28] sm:$0xff] %vm214_vm2, %v513_v1  ;;  %v357_v14 = vld [vmem:[#allocation2 + $0x3b] sm:$0xff]  ;;  %v262_v16 = vld [vmem:[#allocation2 + $0x48] sm:$0xff] }
  0x36   : > { %v483_v7 = vmax.f32 %v419_v61, %v451_v62  ;;  %v452_v8 = vmax.f32 %v324_v4, %v356_v5  ;;  %v261_v9 = vld [vmem:[#allocation2 + $0x38] sm:$0xff]  ;;  %v514_v12 = vmax.f32 %v482_v2, %v386_v60  ;;  %v294_v20 = vld [vmem:[#allocation2 + $0x49] sm:$0xff]  ;;  %v264_v36 = vld [vmem:[#allocation2 + $0x60] sm:$0xff] }
  0x37   : > { %v325_v11 = vld [vmem:[#allocation2 + $0x3a] sm:$0xff]  ;;  %v421_v15 = vmax.f32 %v261_v9, %v293_v10  ;;  %v326_v21 = vld [vmem:[#allocation2 + $0x4a] sm:$0xff]  ;;  %v422_v24 = vmax.f32 %v262_v16, %v294_v20  ;;  %v327_v31 = vld [vmem:[#allocation2 + $0x52] sm:$0xff] }
  0x38   : > { %v388_v13 = vld [vmem:[#allocation2 + $0x34] sm:$0xff]  ;;  %v515_v17 = vmax.f32 %v483_v7, %v387_v3  ;;  %v484_v18 = vmax.f32 %v420_v6, %v452_v8  ;;  %v453_v19 = vmax.f32 %v325_v11, %v357_v14  ;;  %v358_v22 = vld [vmem:[#allocation2 + $0x4b] sm:$0xff]  ;;  %547 = vst.msk [vmem:[#allocation3 + $0x30] sm:$0xff] %vm214_vm2, %v514_v12  ;;  %v389_v23 = vld [vmem:[#allocation2 + $0x3c] sm:$0xff] }
  0x39   : > { %v454_v25 = vmax.f32 %v326_v21, %v358_v22  ;;  %v263_v26 = vld [vmem:[#allocation2 + $0x50] sm:$0xff]  ;;  %v296_v37 = vld [vmem:[#allocation2 + $0x61] sm:$0xff]  ;;  %v266_v53 = vld [vmem:[#allocation2 + $0x78] sm:$0xff] }
  0x3a   : > { %v295_v27 = vld [vmem:[#allocation2 + $0x51] sm:$0xff]  ;;  %548 = vst.msk [vmem:[#allocation3 + $0x38] sm:$0xff] %vm214_vm2, %v515_v17  ;;  %v516_v28 = vmax.f32 %v484_v18, %v388_v13  ;;  %v485_v29 = vmax.f32 %v421_v15, %v453_v19  ;;  %v328_v38 = vld [vmem:[#allocation2 + $0x62] sm:$0xff]  ;;  %v424_v42 = vmax.f32 %v264_v36, %v296_v37  ;;  %v298_v54 = vld [vmem:[#allocation2 + $0x79] sm:$0xff] }
  0x3b   : > { %v390_v30 = vld [vmem:[#allocation2 + $0x4c] sm:$0xff]  ;;  %v423_v33 = vmax.f32 %v263_v26, %v295_v27  ;;  %v486_v34 = vmax.f32 %v422_v24, %v454_v25  ;;  %v391_v40 = vld [vmem:[#allocation2 + $0x54] sm:$0xff]  ;;  %v360_v41 = vld [vmem:[#allocation2 + $0x63] sm:$0xff]  ;;  %v426_v60 = vmax.f32 %v266_v53, %v298_v54 }
  0x3c   : > { %v359_v32 = vld [vmem:[#allocation2 + $0x53] sm:$0xff]  ;;  %549 = vst.msk [vmem:[#allocation3 + $0x40] sm:$0xff] %vm214_vm2, %v516_v28  ;;  %v517_v39 = vmax.f32 %v485_v29, %v389_v23  ;;  %v265_v43 = vld [vmem:[#allocation2 + $0x68] sm:$0xff]  ;;  %v456_v46 = vmax.f32 %v328_v38, %v360_v41  ;;  %v362_v59 = vld [vmem:[#allocation2 + $0x7b] sm:$0xff] }
  0x3d   : > { %v455_v35 = vmax.f32 %v327_v31, %v359_v32  ;;  %v518_v44 = vmax.f32 %v486_v34, %v390_v30  ;;  %v297_v47 = vld [vmem:[#allocation2 + $0x69] sm:$0xff]  ;;  %v330_v58 = vld [vmem:[#allocation2 + $0x7a] sm:$0xff]  ;;  %v300_v10 = vld [vmem:[#allocation2 + $0x91] sm:$0xff] }
  0x3e   : > { %v329_v48 = vld [vmem:[#allocation2 + $0x6a] sm:$0xff]  ;;  %550 = vst.msk [vmem:[#allocation3 + $0x48] sm:$0xff] %vm214_vm2, %v517_v39  ;;  %v425_v51 = vmax.f32 %v265_v43, %v297_v47  ;;  %v488_v56 = vmax.f32 %v424_v42, %v456_v46  ;;  %v458_v62 = vmax.f32 %v330_v58, %v362_v59  ;;  %v267_v63 = vld [vmem:[#allocation2 + $0x80] sm:$0xff]  ;;  %v332_v11 = vld [vmem:[#allocation2 + $0x92] sm:$0xff] }
  0x3f   : > { %v487_v45 = vmax.f32 %v423_v33, %v455_v35  ;;  %v361_v49 = vld [vmem:[#allocation2 + $0x6b] sm:$0xff]  ;;  %551 = vst.msk [vmem:[#allocation3 + $0x50] sm:$0xff] %vm214_vm2, %v518_v44  ;;  %v299_v0 = vld [vmem:[#allocation2 + $0x81] sm:$0xff]  ;;  %v364_v12 = vld [vmem:[#allocation2 + $0x93] sm:$0xff] }
  0x40   : > { %v392_v50 = vld [vmem:[#allocation2 + $0x64] sm:$0xff]  ;;  %v457_v52 = vmax.f32 %v329_v48, %v361_v49  ;;  %v393_v57 = vld [vmem:[#allocation2 + $0x6c] sm:$0xff]  ;;  %v394_v3 = vld [vmem:[#allocation2 + $0x7c] sm:$0xff]  ;;  %v427_v5 = vmax.f32 %v267_v63, %v299_v0  ;;  %v490_v8 = vmax.f32 %v426_v60, %v458_v62  ;;  %v460_v15 = vmax.f32 %v332_v11, %v364_v12 }
  0x41   : > { %v519_v55 = vmax.f32 %v487_v45, %v391_v40  ;;  %v331_v1 = vld [vmem:[#allocation2 + $0x82] sm:$0xff]  ;;  %v520_v2 = vmax.f32 %v488_v56, %v392_v50  ;;  %v268_v6 = vld [vmem:[#allocation2 + $0x90] sm:$0xff]  ;;  %v269_v16 = vld [vmem:[#allocation2 + $0x98] sm:$0xff] }
  0x42   : > { %v489_v61 = vmax.f32 %v425_v51, %v457_v52  ;;  %v363_v4 = vld [vmem:[#allocation2 + $0x83] sm:$0xff]  ;;  %v428_v14 = vmax.f32 %v268_v6, %v300_v10  ;;  %v301_v17 = vld [vmem:[#allocation2 + $0x99] sm:$0xff]  ;;  %v522_v18 = vmax.f32 %v490_v8, %v394_v3  ;;  %v366_v31 = vld [vmem:[#allocation2 + $0xab] sm:$0xff] }
  0x43   : > { %552 = vst.msk [vmem:[#allocation3 + $0x58] sm:$0xff] %vm214_vm2, %v519_v55  ;;  %v459_v9 = vmax.f32 %v331_v1, %v363_v4  ;;  %553 = vst.msk [vmem:[#allocation3 + $0x60] sm:$0xff] %vm214_vm2, %v520_v2  ;;  %v395_v13 = vld [vmem:[#allocation2 + $0x84] sm:$0xff]  ;;  %v396_v20 = vld [vmem:[#allocation2 + $0x94] sm:$0xff]  ;;  %v429_v23 = vmax.f32 %v269_v16, %v301_v17 }
  0x44   : > { %v521_v7 = vmax.f32 %v489_v61, %v393_v57  ;;  %v333_v21 = vld [vmem:[#allocation2 + $0x9a] sm:$0xff]  ;;  %v492_v24 = vmax.f32 %v428_v14, %v460_v15  ;;  %v270_v26 = vld [vmem:[#allocation2 + $0xa8] sm:$0xff]  ;;  %555 = vst.msk [vmem:[#allocation3 + $0x70] sm:$0xff] %vm214_vm2, %v522_v18  ;;  %v271_v33 = vld [vmem:[#allocation2 + $0xb0] sm:$0xff] }
  0x45   : > { %v491_v19 = vmax.f32 %v427_v5, %v459_v9  ;;  %v365_v22 = vld [vmem:[#allocation2 + $0x9b] sm:$0xff]  ;;  %v302_v27 = vld [vmem:[#allocation2 + $0xa9] sm:$0xff]  ;;  %v303_v37 = vld [vmem:[#allocation2 + $0xb1] sm:$0xff] }
  0x46   : > { %554 = vst.msk [vmem:[#allocation3 + $0x68] sm:$0xff] %vm214_vm2, %v521_v7  ;;  %v461_v25 = vmax.f32 %v333_v21, %v365_v22  ;;  %v334_v28 = vld [vmem:[#allocation2 + $0xaa] sm:$0xff]  ;;  %v397_v30 = vld [vmem:[#allocation2 + $0x9c] sm:$0xff]  ;;  %v430_v32 = vmax.f32 %v270_v26, %v302_v27  ;;  %v524_v34 = vmax.f32 %v492_v24, %v396_v20  ;;  %v335_v38 = vld [vmem:[#allocation2 + $0xb2] sm:$0xff]  ;;  %v431_v41 = vmax.f32 %v271_v33, %v303_v37 }
  0x47   : > { %v523_v29 = vmax.f32 %v491_v19, %v395_v13  ;;  %v462_v36 = vmax.f32 %v334_v28, %v366_v31  ;;  %v367_v39 = vld [vmem:[#allocation2 + $0xb3] sm:$0xff]  ;;  %v272_v43 = vld [vmem:[#allocation2 + $0xc0] sm:$0xff]  ;;  %v273_v53 = vld [vmem:[#allocation2 + $0xc8] sm:$0xff] }
  0x48   : > { %v493_v35 = vmax.f32 %v429_v23, %v461_v25  ;;  %v398_v40 = vld [vmem:[#allocation2 + $0xac] sm:$0xff]  ;;  %v463_v42 = vmax.f32 %v335_v38, %v367_v39  ;;  %v304_v44 = vld [vmem:[#allocation2 + $0xc1] sm:$0xff]  ;;  %557 = vst.msk [vmem:[#allocation3 + $0x80] sm:$0xff] %vm214_vm2, %v524_v34  ;;  %v399_v47 = vld [vmem:[#allocation2 + $0xb4] sm:$0xff] }
  0x49   : > { %556 = vst.msk [vmem:[#allocation3 + $0x78] sm:$0xff] %vm214_vm2, %v523_v29  ;;  %v494_v46 = vmax.f32 %v430_v32, %v462_v36  ;;  %v336_v48 = vld [vmem:[#allocation2 + $0xc2] sm:$0xff]  ;;  %v432_v50 = vmax.f32 %v272_v43, %v304_v44  ;;  %v337_v55 = vld [vmem:[#allocation2 + $0xca] sm:$0xff]  ;;  %v274_v60 = vld [vmem:[#allocation2 + $0xd8] sm:$0xff] }
  0x4a   : > { %v525_v45 = vmax.f32 %v493_v35, %v397_v30  ;;  %v368_v49 = vld [vmem:[#allocation2 + $0xc3] sm:$0xff]  ;;  %v495_v51 = vmax.f32 %v431_v41, %v463_v42  ;;  %v369_v58 = vld [vmem:[#allocation2 + $0xcb] sm:$0xff]  ;;  %v306_v0 = vld [vmem:[#allocation2 + $0xd9] sm:$0xff] }
  0x4b   : > { %v464_v52 = vmax.f32 %v336_v48, %v368_v49  ;;  %v305_v54 = vld [vmem:[#allocation2 + $0xc9] sm:$0xff]  ;;  %v526_v56 = vmax.f32 %v494_v46, %v398_v40  ;;  %v465_v63 = vmax.f32 %v337_v55, %v369_v58  ;;  %v338_v1 = vld [vmem:[#allocation2 + $0xda] sm:$0xff]  ;;  %v434_v4 = vmax.f32 %v274_v60, %v306_v0  ;;  %v308_v17 = vld [vmem:[#allocation2 + $0xf1] sm:$0xff] }
  0x4c   : > { %558 = vst.msk [vmem:[#allocation3 + $0x88] sm:$0xff] %vm214_vm2, %v525_v45  ;;  %v400_v57 = vld [vmem:[#allocation2 + $0xc4] sm:$0xff]  ;;  %v433_v59 = vmax.f32 %v273_v53, %v305_v54  ;;  %v527_v61 = vmax.f32 %v495_v51, %v399_v47  ;;  %v370_v2 = vld [vmem:[#allocation2 + $0xdb] sm:$0xff]  ;;  %v401_v3 = vld [vmem:[#allocation2 + $0xcc] sm:$0xff] }
  0x4d   : > { %v496_v62 = vmax.f32 %v432_v50, %v464_v52  ;;  %559 = vst.msk [vmem:[#allocation3 + $0x90] sm:$0xff] %vm214_vm2, %v526_v56  ;;  %v466_v5 = vmax.f32 %v338_v1, %v370_v2  ;;  %v275_v6 = vld [vmem:[#allocation2 + $0xe0] sm:$0xff]  ;;  %v276_v16 = vld [vmem:[#allocation2 + $0xf0] sm:$0xff]  ;;  %v277_v23 = vld [vmem:[#allocation2 + $0xf8] sm:$0xff] }
  0x4e   : > { %v307_v7 = vld [vmem:[#allocation2 + $0xe1] sm:$0xff]  ;;  %560 = vst.msk [vmem:[#allocation3 + $0x98] sm:$0xff] %vm214_vm2, %v527_v61  ;;  %v497_v9 = vmax.f32 %v433_v59, %v465_v63  ;;  %v340_v18 = vld [vmem:[#allocation2 + $0xf2] sm:$0xff]  ;;  %v436_v22 = vmax.f32 %v276_v16, %v308_v17  ;;  %v310_v34 = vld [vmem:[#allocation2 + $0x109] sm:$0xff] }
  0x4f   : > { %v528_v8 = vmax.f32 %v496_v62, %v400_v57  ;;  %v402_v10 = vld [vmem:[#allocation2 + $0xdc] sm:$0xff]  ;;  %v435_v13 = vmax.f32 %v275_v6, %v307_v7  ;;  %v498_v14 = vmax.f32 %v434_v4, %v466_v5  ;;  %v403_v20 = vld [vmem:[#allocation2 + $0xe4] sm:$0xff]  ;;  %v372_v21 = vld [vmem:[#allocation2 + $0xf3] sm:$0xff] }
  0x50   : > { %v339_v11 = vld [vmem:[#allocation2 + $0xe2] sm:$0xff]  ;;  %v529_v19 = vmax.f32 %v497_v9, %v401_v3  ;;  %v468_v26 = vmax.f32 %v340_v18, %v372_v21  ;;  %v309_v27 = vld [vmem:[#allocation2 + $0xf9] sm:$0xff]  ;;  %v342_v38 = vld [vmem:[#allocation2 + $0x10a] sm:$0xff] }
  0x51   : > { %v371_v12 = vld [vmem:[#allocation2 + $0xe3] sm:$0xff]  ;;  %561 = vst.msk [vmem:[#allocation3 + $0xa0] sm:$0xff] %vm214_vm2, %v528_v8  ;;  %v530_v24 = vmax.f32 %v498_v14, %v402_v10  ;;  %v341_v28 = vld [vmem:[#allocation2 + $0xfa] sm:$0xff]  ;;  %v437_v31 = vmax.f32 %v277_v23, %v309_v27  ;;  %v374_v39 = vld [vmem:[#allocation2 + $0x10b] sm:$0xff] }
  0x52   : > { %v467_v15 = vmax.f32 %v339_v11, %v371_v12  ;;  %v373_v29 = vld [vmem:[#allocation2 + $0xfb] sm:$0xff]  ;;  %562 = vst.msk [vmem:[#allocation3 + $0xa8] sm:$0xff] %vm214_vm2, %v529_v19  ;;  %v278_v33 = vld [vmem:[#allocation2 + $0x108] sm:$0xff]  ;;  %v500_v36 = vmax.f32 %v436_v22, %v468_v26  ;;  %v470_v42 = vmax.f32 %v342_v38, %v374_v39  ;;  %v279_v43 = vld [vmem:[#allocation2 + $0x110] sm:$0xff] }
  0x53   : > { %v404_v30 = vld [vmem:[#allocation2 + $0xf4] sm:$0xff]  ;;  %v469_v32 = vmax.f32 %v341_v28, %v373_v29  ;;  %563 = vst.msk [vmem:[#allocation3 + $0xb0] sm:$0xff] %vm214_vm2, %v530_v24  ;;  %v405_v37 = vld [vmem:[#allocation2 + $0xfc] sm:$0xff]  ;;  %v438_v40 = vmax.f32 %v278_v33, %v310_v34  ;;  %v406_v47 = vld [vmem:[#allocation2 + $0x10c] sm:$0xff] }
  0x54   : > { %v499_v25 = vmax.f32 %v435_v13, %v467_v15  ;;  %v311_v44 = vld [vmem:[#allocation2 + $0x111] sm:$0xff]  ;;  %v532_v46 = vmax.f32 %v500_v36, %v404_v30  ;;  %v280_v50 = vld [vmem:[#allocation2 + $0x120] sm:$0xff]  ;;  %v281_v60 = vld [vmem:[#allocation2 + $0x128] sm:$0xff] }
  0x55   : > { %v501_v41 = vmax.f32 %v437_v31, %v469_v32  ;;  %v343_v45 = vld [vmem:[#allocation2 + $0x112] sm:$0xff]  ;;  %v439_v49 = vmax.f32 %v279_v43, %v311_v44  ;;  %v502_v52 = vmax.f32 %v438_v40, %v470_v42  ;;  %v312_v54 = vld [vmem:[#allocation2 + $0x121] sm:$0xff]  ;;  %v313_v61 = vld [vmem:[#allocation2 + $0x129] sm:$0xff] }
  0x56   : > { %v531_v35 = vmax.f32 %v499_v25, %v403_v20  ;;  %v375_v48 = vld [vmem:[#allocation2 + $0x113] sm:$0xff]  ;;  %v344_v55 = vld [vmem:[#allocation2 + $0x122] sm:$0xff]  ;;  %565 = vst.msk [vmem:[#allocation3 + $0xc0] sm:$0xff] %vm214_vm2, %v532_v46  ;;  %v440_v58 = vmax.f32 %v280_v50, %v312_v54  ;;  %v345_v1 = vld [vmem:[#allocation2 + $0x12a] sm:$0xff]  ;;  %v441_v3 = vmax.f32 %v281_v60, %v313_v61 }
  0x57   : > { %v533_v51 = vmax.f32 %v501_v41, %v405_v37  ;;  %v471_v53 = vmax.f32 %v343_v45, %v375_v48  ;;  %v376_v56 = vld [vmem:[#allocation2 + $0x123] sm:$0xff]  ;;  %v407_v57 = vld [vmem:[#allocation2 + $0x114] sm:$0xff]  ;;  %v534_v62 = vmax.f32 %v502_v52, %v406_v47  ;;  %v377_v2 = vld [vmem:[#allocation2 + $0x12b] sm:$0xff] }
  0x58   : > { %564 = vst.msk [vmem:[#allocation3 + $0xb8] sm:$0xff] %vm214_vm2, %v531_v35  ;;  %v472_v59 = vmax.f32 %v344_v55, %v376_v56  ;;  %v408_v0 = vld [vmem:[#allocation2 + $0x124] sm:$0xff]  ;;  %v473_v5 = vmax.f32 %v345_v1, %v377_v2  ;;  %v282_v6 = vld [vmem:[#allocation2 + $0x138] sm:$0xff]  ;;  %v409_v10 = vld [vmem:[#allocation2 + $0x12c] sm:$0xff] }
  0x59   : > { %566 = vst.msk [vmem:[#allocation3 + $0xc8] sm:$0xff] %vm214_vm2, %v533_v51  ;;  %v503_v63 = vmax.f32 %v439_v49, %v471_v53  ;;  %v314_v7 = vld [vmem:[#allocation2 + $0x139] sm:$0xff]  ;;  %567 = vst.msk [vmem:[#allocation3 + $0xd0] sm:$0xff] %vm214_vm2, %v534_v62  ;;  %v315_v17 = vld [vmem:[#allocation2 + $0x141] sm:$0xff] }
  0x5a   : > { %v504_v4 = vmax.f32 %v440_v58, %v472_v59  ;;  %v346_v8 = vld [vmem:[#allocation2 + $0x13a] sm:$0xff]  ;;  %v442_v12 = vmax.f32 %v282_v6, %v314_v7  ;;  %v505_v15 = vmax.f32 %v441_v3, %v473_v5  ;;  %v347_v18 = vld [vmem:[#allocation2 + $0x142] sm:$0xff]  ;;  %v284_v23 = vld [vmem:[#allocation2 + $0x150] sm:$0xff] }
  0x5b   : > { %v535_v9 = vmax.f32 %v503_v63, %v407_v57  ;;  %v378_v11 = vld [vmem:[#allocation2 + $0x13b] sm:$0xff]  ;;  %v379_v19 = vld [vmem:[#allocation2 + $0x143] sm:$0xff]  ;;  %v316_v24 = vld [vmem:[#allocation2 + $0x151] sm:$0xff] }
  0x5c   : > { %v283_v13 = vld [vmem:[#allocation2 + $0x140] sm:$0xff]  ;;  %v536_v14 = vmax.f32 %v504_v4, %v408_v0  ;;  %v474_v16 = vmax.f32 %v346_v8, %v378_v11  ;;  %v475_v22 = vmax.f32 %v347_v18, %v379_v19  ;;  %v537_v25 = vmax.f32 %v505_v15, %v409_v10  ;;  %v348_v28 = vld [vmem:[#allocation2 + $0x152] sm:$0xff]  ;;  %v286_v40 = vld [vmem:[#allocation2 + $0x168] sm:$0xff] }
  0x5d   : > { %568 = vst.msk [vmem:[#allocation3 + $0xd8] sm:$0xff] %vm214_vm2, %v535_v9  ;;  %v410_v20 = vld [vmem:[#allocation2 + $0x13c] sm:$0xff]  ;;  %v443_v21 = vmax.f32 %v283_v13, %v315_v17  ;;  %v411_v27 = vld [vmem:[#allocation2 + $0x144] sm:$0xff]  ;;  %v380_v29 = vld [vmem:[#allocation2 + $0x153] sm:$0xff]  ;;  %v444_v30 = vmax.f32 %v284_v23, %v316_v24 }
  0x5e   : > { %569 = vst.msk [vmem:[#allocation3 + $0xe0] sm:$0xff] %vm214_vm2, %v536_v14  ;;  %v506_v26 = vmax.f32 %v442_v12, %v474_v16  ;;  %v476_v32 = vmax.f32 %v348_v28, %v380_v29  ;;  %v285_v33 = vld [vmem:[#allocation2 + $0x158] sm:$0xff]  ;;  %570 = vst.msk [vmem:[#allocation3 + $0xe8] sm:$0xff] %vm214_vm2, %v537_v25  ;;  %v318_v44 = vld [vmem:[#allocation2 + $0x169] sm:$0xff] }
  0x5f   : > { %v507_v31 = vmax.f32 %v443_v21, %v475_v22  ;;  %v317_v34 = vld [vmem:[#allocation2 + $0x159] sm:$0xff]  ;;  %v350_v45 = vld [vmem:[#allocation2 + $0x16a] sm:$0xff]  ;;  %v446_v48 = vmax.f32 %v286_v40, %v318_v44 }
  0x60   : > { %v349_v35 = vld [vmem:[#allocation2 + $0x15a] sm:$0xff]  ;;  %v538_v36 = vmax.f32 %v506_v26, %v410_v20  ;;  %v445_v39 = vmax.f32 %v285_v33, %v317_v34  ;;  %v508_v42 = vmax.f32 %v444_v30, %v476_v32  ;;  %v382_v46 = vld [vmem:[#allocation2 + $0x16b] sm:$0xff] }
  0x61   : > { %v412_v37 = vld [vmem:[#allocation2 + $0x154] sm:$0xff]  ;;  %v539_v41 = vmax.f32 %v507_v31, %v411_v27  ;;  %v413_v47 = vld [vmem:[#allocation2 + $0x15c] sm:$0xff]  ;;  %v478_v49 = vmax.f32 %v350_v45, %v382_v46  ;;  %v414_v54 = vld [vmem:[#allocation2 + $0x16c] sm:$0xff] }
  0x62   : > { %v381_v38 = vld [vmem:[#allocation2 + $0x15b] sm:$0xff]  ;;  %571 = vst.msk [vmem:[#allocation3 + $0xf0] sm:$0xff] %vm214_vm2, %v538_v36  ;;  %v287_v50 = vld [vmem:[#allocation2 + $0x170] sm:$0xff]  ;;  %v540_v52 = vmax.f32 %v508_v42, %v412_v37  ;;  %v578_v4 = vld [vmem:[#allocation3 + $0x8] sm:$0xff] }
  0x63   : > { %v477_v43 = vmax.f32 %v349_v35, %v381_v38  ;;  %v319_v51 = vld [vmem:[#allocation2 + $0x171] sm:$0xff]  ;;  %572 = vst.msk [vmem:[#allocation3 + $0xf8] sm:$0xff] %vm214_vm2, %v539_v41  ;;  %v510_v58 = vmax.f32 %v446_v48, %v478_v49  ;;  %v577_v60 = vld [vmem:[#allocation3] sm:$0xff]  ;;  %v643_v10 = vld [vmem:[#allocation3 + $0x28] sm:$0xff] }
  0x64   : > { %v351_v55 = vld [vmem:[#allocation2 + $0x172] sm:$0xff]  ;;  %v447_v57 = vmax.f32 %v287_v50, %v319_v51  ;;  %v642_v62 = vld [vmem:[#allocation3 + $0x20] sm:$0xff]  ;;  %573 = vst.msk [vmem:[#allocation3 + $0x100] sm:$0xff] %vm214_vm2, %v540_v52  ;;  %v709_v13 = vld [vmem:[#allocation3 + $0x48] sm:$0xff] }
  0x65   : > { %v509_v53 = vmax.f32 %v445_v39, %v477_v43  ;;  %v383_v56 = vld [vmem:[#allocation2 + $0x173] sm:$0xff]  ;;  %v708_v2 = vld [vmem:[#allocation3 + $0x40] sm:$0xff]  ;;  %v542_v6 = vmax.f32 %v510_v58, %v414_v54  ;;  %v713_v24 = vld [vmem:[#allocation3 + $0x68] sm:$0xff] }
  0x66   : > { %v479_v59 = vmax.f32 %v351_v55, %v383_v56  ;;  %v610_v61 = vld [vmem:[#allocation3 + $0x10] sm:$0xff]  ;;  %v611_v9 = vld [vmem:[#allocation3 + $0x18] sm:$0xff]  ;;  %v712_v23 = vld [vmem:[#allocation3 + $0x60] sm:$0xff] }
  0x67   : > { %v541_v63 = vmax.f32 %v509_v53, %v413_v47  ;;  %v415_v0 = vld [vmem:[#allocation2 + $0x174] sm:$0xff]  ;;  %v740_v3 = vmax.f32 %v577_v60, %v610_v61  ;;  %v742_v5 = vmax.f32 %v610_v61, %v642_v62  ;;  %v741_v14 = vmax.f32 %v578_v4, %v611_v9  ;;  %575 = vst.msk [vmem:[#allocation3 + $0x110] sm:$0xff] %vm214_vm2, %v542_v6  ;;  %v716_v35 = vld [vmem:[#allocation3 + $0x80] sm:$0xff]  ;;  %v717_v40 = vld [vmem:[#allocation3 + $0x88] sm:$0xff] }
  0x68   : > { %v675_v1 = vld [vmem:[#allocation3 + $0x30] sm:$0xff]  ;;  %v511_v7 = vmax.f32 %v447_v57, %v479_v59  ;;  %v676_v11 = vld [vmem:[#allocation3 + $0x38] sm:$0xff]  ;;  %v743_v18 = vmax.f32 %v611_v9, %v643_v10  ;;  %v720_v47 = vld [vmem:[#allocation3 + $0xa0] sm:$0xff] }
  0x69   : > { %v772_v8 = vmax.f32 %v642_v62, %v675_v1  ;;  %v774_v12 = vmax.f32 %v675_v1, %v708_v2  ;;  %574 = vst.msk [vmem:[#allocation3 + $0x108] sm:$0xff] %vm214_vm2, %v541_v63  ;;  %v773_v15 = vmax.f32 %v643_v10, %v676_v11  ;;  %v710_v16 = vld [vmem:[#allocation3 + $0x50] sm:$0xff]  ;;  %v711_v17 = vld [vmem:[#allocation3 + $0x58] sm:$0xff]  ;;  %v775_v22 = vmax.f32 %v676_v11, %v709_v13  ;;  %v721_v52 = vld [vmem:[#allocation3 + $0xa8] sm:$0xff] }
  0x6a   : > { %v543_v19 = vmax.f32 %v511_v7, %v415_v0  ;;  %v776_v26 = vmax.f32 %v708_v2, %v710_v16  ;;  %v777_v27 = vmax.f32 %v709_v13, %v711_v17  ;;  %v714_v28 = vld [vmem:[#allocation3 + $0x70] sm:$0xff]  ;;  %v778_v29 = vmax.f32 %v710_v16, %v712_v23  ;;  %v715_v30 = vld [vmem:[#allocation3 + $0x78] sm:$0xff] }
  0x6b   : > { %v804_v20 = vmax.f32 %v740_v3, %v772_v8  ;;  %v806_v21 = vmax.f32 %v742_v5, %v774_v12  ;;  %v805_v25 = vmax.f32 %v741_v14, %v773_v15  ;;  %v807_v33 = vmax.f32 %v743_v18, %v775_v22  ;;  %v718_v45 = vld [vmem:[#allocation3 + $0x90] sm:$0xff]  ;;  %v719_v46 = vld [vmem:[#allocation3 + $0x98] sm:$0xff]  ;;  %v724_v3 = vld [vmem:[#allocation3 + $0xc0] sm:$0xff] }
  0x6c   : > { %576 = vst.msk [vmem:[#allocation3 + $0x118] sm:$0xff] %vm214_vm2, %v543_v19  ;;  %v779_v34 = vmax.f32 %v711_v17, %v713_v24  ;;  %v808_v37 = vmax.f32 %v772_v8, %v776_v26  ;;  %v809_v38 = vmax.f32 %v773_v15, %v777_v27  ;;  %v810_v39 = vmax.f32 %v774_v12, %v778_v29  ;;  %v722_v60 = vld [vmem:[#allocation3 + $0xb0] sm:$0xff]  ;;  %v723_v62 = vld [vmem:[#allocation3 + $0xb8] sm:$0xff]  ;;  %v725_v8 = vld [vmem:[#allocation3 + $0xc8] sm:$0xff] }
  0x6d   : > { %v836_v31 = vmax.f32 %v804_v20, %v708_v2  ;;  %v838_v32 = vmax.f32 %v806_v21, %v710_v16  ;;  %v837_v36 = vmax.f32 %v805_v25, %v709_v13  ;;  %v839_v41 = vmax.f32 %v807_v33, %v711_v17  ;;  %v726_v13 = vld [vmem:[#allocation3 + $0xd0] sm:$0xff]  ;;  %v727_v14 = vld [vmem:[#allocation3 + $0xd8] sm:$0xff]  ;;  %v728_v15 = vld [vmem:[#allocation3 + $0xe0] sm:$0xff] }
  0x6e   : > { %v811_v42 = vmax.f32 %v775_v22, %v779_v34  ;;  %v780_v43 = vmax.f32 %v712_v23, %v714_v28  ;;  %v781_v44 = vmax.f32 %v713_v24, %v715_v30  ;;  %v840_v48 = vmax.f32 %v808_v37, %v712_v23  ;;  %v729_v20 = vld [vmem:[#allocation3 + $0xe8] sm:$0xff] }
  0x6f   : > { %868 = vst.msk [vmem:[%s2638_s17] sm:$0xff] %vm214_vm2, %v836_v31  ;;  %900 = vst.msk [vmem:[#allocation2 + $0x2] sm:$0xff] %vm214_vm2, %v836_v31  ;;  %v841_v49 = vmax.f32 %v809_v38, %v713_v24  ;;  %v842_v50 = vmax.f32 %v810_v39, %v714_v28  ;;  %v782_v51 = vmax.f32 %v714_v28, %v716_v35  ;;  %v730_v28 = vld [vmem:[#allocation3 + $0xf0] sm:$0xff] }
  0x70   : > { %870 = vst.msk [vmem:[%s2638_s17 + $0x10] sm:$0xff] %vm214_vm2, %v838_v32  ;;  %902 = vst.msk [vmem:[#allocation2 + $0x1a] sm:$0xff] %vm214_vm2, %v838_v32  ;;  %v843_v53 = vmax.f32 %v811_v42, %v715_v30  ;;  %v812_v54 = vmax.f32 %v776_v26, %v780_v43  ;;  %v813_v55 = vmax.f32 %v777_v27, %v781_v44 }
  0x71   : > { %869 = vst.msk [vmem:[%s2638_s17 + $0x8] sm:$0xff] %vm214_vm2, %v837_v36  ;;  %901 = vst.msk [vmem:[#allocation2 + $0xa] sm:$0xff] %vm214_vm2, %v837_v36  ;;  %v783_v56 = vmax.f32 %v715_v30, %v717_v40  ;;  %v814_v57 = vmax.f32 %v778_v29, %v782_v51  ;;  %v784_v58 = vmax.f32 %v716_v35, %v718_v45  ;;  %v731_v30 = vld [vmem:[#allocation3 + $0xf8] sm:$0xff] }
  0x72   : > { %871 = vst.msk [vmem:[%s2638_s17 + $0x18] sm:$0xff] %vm214_vm2, %v839_v41  ;;  %903 = vst.msk [vmem:[#allocation2 + $0x22] sm:$0xff] %vm214_vm2, %v839_v41  ;;  %v785_v59 = vmax.f32 %v717_v40, %v719_v46  ;;  %v786_v61 = vmax.f32 %v718_v45, %v720_v47  ;;  %v844_v63 = vmax.f32 %v812_v54, %v716_v35  ;;  %v732_v35 = vld [vmem:[#allocation3 + $0x100] sm:$0xff] }
  0x73   : > { %872 = vst.msk [vmem:[%s2638_s17 + $0x20] sm:$0xff] %vm214_vm2, %v840_v48  ;;  %904 = vst.msk [vmem:[#allocation2 + $0x32] sm:$0xff] %vm214_vm2, %v840_v48  ;;  %v845_v0 = vmax.f32 %v813_v55, %v717_v40  ;;  %v815_v1 = vmax.f32 %v779_v34, %v783_v56  ;;  %v787_v2 = vmax.f32 %v719_v46, %v721_v52  ;;  %v733_v40 = vld [vmem:[#allocation3 + $0x108] sm:$0xff] }
  0x74   : > { %873 = vst.msk [vmem:[%s2638_s17 + $0x28] sm:$0xff] %vm214_vm2, %v841_v49  ;;  %905 = vst.msk [vmem:[#allocation2 + $0x3a] sm:$0xff] %vm214_vm2, %v841_v49  ;;  %v846_v4 = vmax.f32 %v814_v57, %v718_v45  ;;  %v816_v5 = vmax.f32 %v780_v43, %v784_v58  ;;  %v817_v6 = vmax.f32 %v781_v44, %v785_v59  ;;  %v734_v45 = vld [vmem:[#allocation3 + $0x110] sm:$0xff] }
  0x75   : > { %874 = vst.msk [vmem:[%s2638_s17 + $0x30] sm:$0xff] %vm214_vm2, %v842_v50  ;;  %906 = vst.msk [vmem:[#allocation2 + $0x4a] sm:$0xff] %vm214_vm2, %v842_v50  ;;  %v818_v7 = vmax.f32 %v782_v51, %v786_v61  ;;  %v847_v9 = vmax.f32 %v815_v1, %v719_v46  ;;  %v819_v10 = vmax.f32 %v783_v56, %v787_v2  ;;  %v735_v46 = vld [vmem:[#allocation3 + $0x118] sm:$0xff] }
  0x76   : > { %875 = vst.msk [vmem:[%s2638_s17 + $0x38] sm:$0xff] %vm214_vm2, %v843_v53  ;;  %907 = vst.msk [vmem:[#allocation2 + $0x52] sm:$0xff] %vm214_vm2, %v843_v53  ;;  %v788_v11 = vmax.f32 %v720_v47, %v722_v60  ;;  %v789_v12 = vmax.f32 %v721_v52, %v723_v62  ;;  %v848_v16 = vmax.f32 %v816_v5, %v720_v47  ;;  %v736_v47 = vld [vmem:[#allocation3 + $0x120] sm:$0xff] }
  0x77   : > { %876 = vst.msk [vmem:[%s2638_s17 + $0x40] sm:$0xff] %vm214_vm2, %v844_v63  ;;  %908 = vst.msk [vmem:[#allocation2 + $0x62] sm:$0xff] %vm214_vm2, %v844_v63  ;;  %v849_v17 = vmax.f32 %v817_v6, %v721_v52  ;;  %v850_v18 = vmax.f32 %v818_v7, %v722_v60  ;;  %v790_v19 = vmax.f32 %v722_v60, %v724_v3  ;;  %v737_v52 = vld [vmem:[#allocation3 + $0x128] sm:$0xff]  ;;  %v739_v6 = vld [vmem:[#allocation3 + $0x138] sm:$0xff] }
  0x78   : > { %877 = vst.msk [vmem:[%s2638_s17 + $0x48] sm:$0xff] %vm214_vm2, %v845_v0  ;;  %909 = vst.msk [vmem:[#allocation2 + $0x6a] sm:$0xff] %vm214_vm2, %v845_v0  ;;  %v851_v21 = vmax.f32 %v819_v10, %v723_v62  ;;  %v820_v22 = vmax.f32 %v784_v58, %v788_v11  ;;  %v821_v23 = vmax.f32 %v785_v59, %v789_v12  ;;  %v738_v0 = vld [vmem:[#allocation3 + $0x130] sm:$0xff] }
  0x79   : > { %878 = vst.msk [vmem:[%s2638_s17 + $0x50] sm:$0xff] %vm214_vm2, %v846_v4  ;;  %910 = vst.msk [vmem:[#allocation2 + $0x7a] sm:$0xff] %vm214_vm2, %v846_v4  ;;  %v791_v24 = vmax.f32 %v723_v62, %v725_v8  ;;  %v822_v25 = vmax.f32 %v786_v61, %v790_v19  ;;  %v792_v26 = vmax.f32 %v724_v3, %v726_v13 }
  0x7a   : > { %879 = vst.msk [vmem:[%s2638_s17 + $0x58] sm:$0xff] %vm214_vm2, %v847_v9  ;;  %911 = vst.msk [vmem:[#allocation2 + $0x82] sm:$0xff] %vm214_vm2, %v847_v9  ;;  %v793_v27 = vmax.f32 %v725_v8, %v727_v14  ;;  %v794_v29 = vmax.f32 %v726_v13, %v728_v15  ;;  %v852_v31 = vmax.f32 %v820_v22, %v724_v3 }
  0x7b   : > { %880 = vst.msk [vmem:[%s2638_s17 + $0x60] sm:$0xff] %vm214_vm2, %v848_v16  ;;  %912 = vst.msk [vmem:[#allocation2 + $0x92] sm:$0xff] %vm214_vm2, %v848_v16  ;;  %v853_v32 = vmax.f32 %v821_v23, %v725_v8  ;;  %v823_v33 = vmax.f32 %v787_v2, %v791_v24  ;;  %v795_v34 = vmax.f32 %v727_v14, %v729_v20  ;;  %v1028_v16 = vld [vmem:[#allocation2 + $0x3] sm:$0xff] }
  0x7c   : > { %881 = vst.msk [vmem:[%s2638_s17 + $0x68] sm:$0xff] %vm214_vm2, %v849_v17  ;;  %913 = vst.msk [vmem:[#allocation2 + $0x9a] sm:$0xff] %vm214_vm2, %v849_v17  ;;  %v854_v36 = vmax.f32 %v822_v25, %v726_v13  ;;  %v824_v37 = vmax.f32 %v788_v11, %v792_v26  ;;  %v825_v38 = vmax.f32 %v789_v12, %v793_v27  ;;  %v932_v12 = vld [vmem:[#allocation2] sm:$0xff]  ;;  %v2737_v17 = vld [vmem:[#allocation2 + $0x30] sm:$0xff] }
  0x7d   : > { %882 = vst.msk [vmem:[%s2638_s17 + $0x70] sm:$0xff] %vm214_vm2, %v850_v18  ;;  %914 = vst.msk [vmem:[#allocation2 + $0xaa] sm:$0xff] %vm214_vm2, %v850_v18  ;;  %v826_v39 = vmax.f32 %v790_v19, %v794_v29  ;;  %v855_v41 = vmax.f32 %v823_v33, %v727_v14  ;;  %v827_v42 = vmax.f32 %v791_v24, %v795_v34  ;;  %v964_v14 = vld [vmem:[#allocation2 + $0x1] sm:$0xff]  ;;  %v2739_v18 = vld [vmem:[#allocation2 + $0x31] sm:$0xff] }
  0x7e   : > { %883 = vst.msk [vmem:[%s2638_s17 + $0x78] sm:$0xff] %vm214_vm2, %v851_v21  ;;  %915 = vst.msk [vmem:[#allocation2 + $0xb2] sm:$0xff] %vm214_vm2, %v851_v21  ;;  %v796_v43 = vmax.f32 %v728_v15, %v730_v28  ;;  %v797_v44 = vmax.f32 %v729_v20, %v731_v30  ;;  %v856_v48 = vmax.f32 %v824_v37, %v728_v15  ;;  %v996_v15 = vld [vmem:[#allocation2 + $0x2] sm:$0xff]  ;;  %v2741_v21 = vld [vmem:[#allocation2 + $0x38] sm:$0xff] }
  0x7f   : > { %884 = vst.msk [vmem:[%s2638_s17 + $0x80] sm:$0xff] %vm214_vm2, %v852_v31  ;;  %916 = vst.msk [vmem:[#allocation2 + $0xc2] sm:$0xff] %vm214_vm2, %v852_v31  ;;  %v857_v49 = vmax.f32 %v825_v38, %v729_v20  ;;  %v858_v50 = vmax.f32 %v826_v39, %v730_v28  ;;  %v798_v51 = vmax.f32 %v730_v28, %v732_v35  ;;  %v2743_v22 = vld [vmem:[#allocation2 + $0x48] sm:$0xff]  ;;  %v2745_v23 = vld [vmem:[#allocation2 + $0x50] sm:$0xff] }
  0x80   : > { %885 = vst.msk [vmem:[%s2638_s17 + $0x88] sm:$0xff] %vm214_vm2, %v853_v32  ;;  %917 = vst.msk [vmem:[#allocation2 + $0xca] sm:$0xff] %vm214_vm2, %v853_v32  ;;  %v859_v53 = vmax.f32 %v827_v42, %v731_v30  ;;  %v828_v54 = vmax.f32 %v792_v26, %v796_v43  ;;  %v829_v55 = vmax.f32 %v793_v27, %v797_v44  ;;  %v2747_v24 = vld [vmem:[#allocation2 + $0x60] sm:$0xff]  ;;  %v2751_v26 = vld [vmem:[#allocation2 + $0x49] sm:$0xff] }
  0x81   : > { %886 = vst.msk [vmem:[%s2638_s17 + $0x90] sm:$0xff] %vm214_vm2, %v854_v36  ;;  %918 = vst.msk [vmem:[#allocation2 + $0xda] sm:$0xff] %vm214_vm2, %v854_v36  ;;  %v799_v56 = vmax.f32 %v731_v30, %v733_v40  ;;  %v830_v57 = vmax.f32 %v794_v29, %v798_v51  ;;  %v800_v58 = vmax.f32 %v732_v35, %v734_v45  ;;  %v2749_v25 = vld [vmem:[#allocation2 + $0x39] sm:$0xff]  ;;  %v2753_v27 = vld [vmem:[#allocation2 + $0x51] sm:$0xff] }
  0x82   : > { %887 = vst.msk [vmem:[%s2638_s17 + $0x98] sm:$0xff] %vm214_vm2, %v855_v41  ;;  %919 = vst.msk [vmem:[#allocation2 + $0xe2] sm:$0xff] %vm214_vm2, %v855_v41  ;;  %v801_v59 = vmax.f32 %v733_v40, %v735_v46  ;;  %v802_v60 = vmax.f32 %v734_v45, %v736_v47  ;;  %v860_v61 = vmax.f32 %v828_v54, %v732_v35  ;;  %v2755_v28 = vld [vmem:[#allocation2 + $0x61] sm:$0xff]  ;;  %v2759_v31 = vld [vmem:[#allocation2 + $0x78] sm:$0xff] }
  0x83   : > { %888 = vst.msk [vmem:[%s2638_s17 + $0xa0] sm:$0xff] %vm214_vm2, %v856_v48  ;;  %920 = vst.msk [vmem:[#allocation2 + $0xf2] sm:$0xff] %vm214_vm2, %v856_v48  ;;  %v861_v62 = vmax.f32 %v829_v55, %v733_v40  ;;  %v831_v63 = vmax.f32 %v795_v34, %v799_v56  ;;  %v803_v1 = vmax.f32 %v735_v46, %v737_v52  ;;  %v1060_v29 = vld [vmem:[#allocation2 + $0x4] sm:$0xff]  ;;  %v2763_v33 = vld [vmem:[#allocation2 + $0x79] sm:$0xff] }
  0x84   : > { %889 = vst.msk [vmem:[%s2638_s17 + $0xa8] sm:$0xff] %vm214_vm2, %v857_v49  ;;  %921 = vst.msk [vmem:[#allocation2 + $0xfa] sm:$0xff] %vm214_vm2, %v857_v49  ;;  %v862_v2 = vmax.f32 %v830_v57, %v734_v45  ;;  %v832_v3 = vmax.f32 %v796_v43, %v800_v58  ;;  %v833_v4 = vmax.f32 %v797_v44, %v801_v59  ;;  %v2757_v30 = vld [vmem:[#allocation2 + $0x68] sm:$0xff]  ;;  %v2773_v39 = vld [vmem:[#allocation2 + $0x80] sm:$0xff] }
  0x85   : > { %890 = vst.msk [vmem:[%s2638_s17 + $0xb0] sm:$0xff] %vm214_vm2, %v858_v50  ;;  %922 = vst.msk [vmem:[#allocation2 + $0x10a] sm:$0xff] %vm214_vm2, %v858_v50  ;;  %v834_v5 = vmax.f32 %v798_v51, %v802_v60  ;;  %v863_v7 = vmax.f32 %v831_v63, %v735_v46  ;;  %v835_v8 = vmax.f32 %v799_v56, %v803_v1  ;;  %v2761_v32 = vld [vmem:[#allocation2 + $0x69] sm:$0xff]  ;;  %v2777_v41 = vld [vmem:[#allocation2 + $0x98] sm:$0xff] }
  0x86   : > { %891 = vst.msk [vmem:[%s2638_s17 + $0xb8] sm:$0xff] %vm214_vm2, %v859_v53  ;;  %923 = vst.msk [vmem:[#allocation2 + $0x112] sm:$0xff] %vm214_vm2, %v859_v53  ;;  %v864_v9 = vmax.f32 %v832_v3, %v736_v47  ;;  %v865_v10 = vmax.f32 %v833_v4, %v737_v52  ;;  %v1092_v19 = vmax.f32 %v932_v12, %v964_v14  ;;  %v2765_v35 = vld [vmem:[#allocation2 + $0x8] sm:$0xff]  ;;  %v2775_v40 = vld [vmem:[#allocation2 + $0x90] sm:$0xff] }
  0x87   : > { %892 = vst.msk [vmem:[%s2638_s17 + $0xc0] sm:$0xff] %vm214_vm2, %v860_v61  ;;  %924 = vst.msk [vmem:[#allocation2 + $0x122] sm:$0xff] %vm214_vm2, %v860_v61  ;;  %v866_v11 = vmax.f32 %v834_v5, %v738_v0  ;;  %v867_v13 = vmax.f32 %v835_v8, %v739_v6  ;;  %v1124_v20 = vmax.f32 %v996_v15, %v1028_v16  ;;  %v2767_v36 = vld [vmem:[#allocation2 + $0x9] sm:$0xff]  ;;  %v2781_v43 = vld [vmem:[#allocation2 + $0x81] sm:$0xff] }
  0x88   : > { %893 = vst.msk [vmem:[%s2638_s17 + $0xc8] sm:$0xff] %vm214_vm2, %v861_v62  ;;  %925 = vst.msk [vmem:[#allocation2 + $0x12a] sm:$0xff] %vm214_vm2, %v861_v62  ;;  %v2769_v37 = vld [vmem:[#allocation2 + $0xa] sm:$0xff]  ;;  %v2785_v45 = vld [vmem:[#allocation2 + $0x99] sm:$0xff] }
  0x89   : > { %894 = vst.msk [vmem:[%s2638_s17 + $0xd0] sm:$0xff] %vm214_vm2, %v862_v2  ;;  %926 = vst.msk [vmem:[#allocation2 + $0x13a] sm:$0xff] %vm214_vm2, %v862_v2  ;;  %v1156_v34 = vmax.f32 %v1092_v19, %v1124_v20  ;;  %v2771_v38 = vld [vmem:[#allocation2 + $0xb] sm:$0xff]  ;;  %v2791_v48 = vld [vmem:[#allocation2 + $0xc0] sm:$0xff]  ;;  %v1093_v20 = vmax.f32 %v2765_v35, %v2767_v36 }
  0x8a   : > { %895 = vst.msk [vmem:[%s2638_s17 + $0xd8] sm:$0xff] %vm214_vm2, %v863_v7  ;;  %927 = vst.msk [vmem:[#allocation2 + $0x142] sm:$0xff] %vm214_vm2, %v863_v7  ;;  %v2779_v42 = vld [vmem:[#allocation2 + $0xa8] sm:$0xff]  ;;  %v2783_v44 = vld [vmem:[#allocation2 + $0x91] sm:$0xff] }
  0x8b   : > { %896 = vst.msk [vmem:[%s2638_s17 + $0xe0] sm:$0xff] %vm214_vm2, %v864_v9  ;;  %928 = vst.msk [vmem:[#allocation2 + $0x152] sm:$0xff] %vm214_vm2, %v864_v9  ;;  %v2787_v46 = vld [vmem:[#allocation2 + $0xa9] sm:$0xff]  ;;  %v2795_v50 = vld [vmem:[#allocation2 + $0xd8] sm:$0xff]  ;;  %v1188_v55 = vmax.f32 %v1156_v34, %v1060_v29  ;;  %v1125_v29 = vmax.f32 %v2769_v37, %v2771_v38 }
  0x8c   : > { %897 = vst.msk [vmem:[%s2638_s17 + $0xe8] sm:$0xff] %vm214_vm2, %v865_v10  ;;  %929 = vst.msk [vmem:[#allocation2 + $0x15a] sm:$0xff] %vm214_vm2, %v865_v10  ;;  %v2789_v47 = vld [vmem:[#allocation2 + $0xb0] sm:$0xff]  ;;  %v2793_v49 = vld [vmem:[#allocation2 + $0xc8] sm:$0xff] }
  0x8d   : > { %898 = vst.msk [vmem:[%s2638_s17 + $0xf0] sm:$0xff] %vm214_vm2, %v866_v11  ;;  %930 = vst.msk [vmem:[#allocation2 + $0x16a] sm:$0xff] %vm214_vm2, %v866_v11  ;;  %v2797_v51 = vld [vmem:[#allocation2 + $0xb1] sm:$0xff]  ;;  %v2799_v52 = vld [vmem:[#allocation2 + $0xc1] sm:$0xff] }
  0x8e   : > { %899 = vst.msk [vmem:[%s2638_s17 + $0xf8] sm:$0xff] %vm214_vm2, %v867_v13  ;;  %931 = vst.msk [vmem:[#allocation2 + $0x172] sm:$0xff] %vm214_vm2, %v867_v13  ;;  %v2801_v53 = vld [vmem:[#allocation2 + $0xc9] sm:$0xff]  ;;  %v2803_v54 = vld [vmem:[#allocation2 + $0xd9] sm:$0xff] }
  0x8f   : > { %3923 = vst [vmem:[#allocation4_spill] sm:$0xff] %v2779_v42  ;;  %3924 = vst [vmem:[#allocation5_spill] sm:$0xff] %v2785_v45  ;;  %v2805_v56 = vld [vmem:[#allocation2 + $0xe0] sm:$0xff]  ;;  %v2807_v57 = vld [vmem:[#allocation2 + $0xf0] sm:$0xff] }
  0x90   : > { %3925 = vst [vmem:[#allocation6_spill] sm:$0xff] %v2787_v46  ;;  %3926 = vst [vmem:[#allocation7_spill] sm:$0xff] %v2793_v49  ;;  %v2809_v58 = vld [vmem:[#allocation2 + $0xf8] sm:$0xff]  ;;  %v2811_v59 = vld [vmem:[#allocation2 + $0x108] sm:$0xff] }
  0x91   : > { %3927 = vst [vmem:[#allocation8_spill] sm:$0xff] %v2795_v50  ;;  %3928 = vst [vmem:[#allocation9_spill] sm:$0xff] %v2799_v52  ;;  %v2813_v60 = vld [vmem:[#allocation2 + $0xe1] sm:$0xff]  ;;  %v2815_v61 = vld [vmem:[#allocation2 + $0xf1] sm:$0xff] }
  0x92   : > { %3929 = vst [vmem:[#allocation10_spill] sm:$0xff] %v2801_v53  ;;  %3930 = vst [vmem:[#allocation11_spill] sm:$0xff] %v2803_v54  ;;  %v2817_v62 = vld [vmem:[#allocation2 + $0xf9] sm:$0xff]  ;;  %v2819_v63 = vld [vmem:[#allocation2 + $0x109] sm:$0xff] }
  0x93   : > { %3931 = vst [vmem:[#allocation12_spill] sm:$0xff] %v2807_v57  ;;  %3932 = vst [vmem:[#allocation13_spill] sm:$0xff] %v2809_v58  ;;  %v2823_v1 = vld [vmem:[#allocation2 + $0x110] sm:$0xff]  ;;  %v2825_v2 = vld [vmem:[#allocation2 + $0x120] sm:$0xff] }
  0x94   : > { %3933 = vst [vmem:[#allocation14_spill] sm:$0xff] %v2811_v59  ;;  %3934 = vst [vmem:[#allocation15_spill] sm:$0xff] %v2815_v61  ;;  %v2827_v3 = vld [vmem:[#allocation2 + $0x128] sm:$0xff]  ;;  %v2829_v4 = vld [vmem:[#allocation2 + $0x111] sm:$0xff] }
  0x95   : > { %3935 = vst [vmem:[#allocation16_spill] sm:$0xff] %v2817_v62  ;;  %3936 = vst [vmem:[#allocation17_spill] sm:$0xff] %v2819_v63  ;;  %v2831_v5 = vld [vmem:[#allocation2 + $0x121] sm:$0xff]  ;;  %v2842_v10 = vld [vmem:[#allocation2 + $0x138] sm:$0xff]  ;;  %v2920_v62 = vmax.f32 %v1093_v20, %v1125_v29 }
  0x96   : > { %3937 = vst [vmem:[#allocation18_spill] sm:$0xff] %v2823_v1  ;;  %3938 = vst [vmem:[#allocation19_spill] sm:$0xff] %v2825_v2  ;;  %v2844_v11 = vld [vmem:[#allocation2 + $0x129] sm:$0xff]  ;;  %v2846_v12 = vld [vmem:[#allocation2 + $0x139] sm:$0xff] }
  0x97   : > { %3939 = vst [vmem:[#allocation20_spill] sm:$0xff] %v2827_v3  ;;  %3940 = vst [vmem:[#allocation21_spill] sm:$0xff] %v2829_v4  ;;  %v2848_v13 = vld [vmem:[#allocation2 + $0x32] sm:$0xff]  ;;  %v2850_v14 = vld [vmem:[#allocation2 + $0x3a] sm:$0xff] }
  0x98   : > { %3941 = vst [vmem:[#allocation22_spill] sm:$0xff] %v2831_v5  ;;  %1220 = vst.msk [vmem:[#allocation3 + $0x20] sm:$0xff] %vm214_vm2, %v1188_v55  ;;  %v2852_v15 = vld [vmem:[#allocation2 + $0x4a] sm:$0xff]  ;;  %v2862_v34 = vld [vmem:[#allocation2 + $0x140] sm:$0xff] }
  0x99   : > { %3942 = vst [vmem:[#allocation23_spill] sm:$0xff] %v2842_v10  ;;  %3943 = vst [vmem:[#allocation24_spill] sm:$0xff] %v2844_v11  ;;  %v2864_v55 = vld [vmem:[#allocation2 + $0x141] sm:$0xff]  ;;  %v2866_v9 = vld [vmem:[#allocation2 + $0x52] sm:$0xff] }
  0x9a   : > { %3944 = vst [vmem:[#allocation25_spill] sm:$0xff] %v2846_v12  ;;  %3945 = vst [vmem:[#allocation26_spill] sm:$0xff] %v2862_v34  ;;  %v2868_v8 = vld [vmem:[#allocation2 + $0x62] sm:$0xff]  ;;  %v2870_v7 = vld [vmem:[#allocation2 + $0x6a] sm:$0xff] }
  0x9b   : > { %3946 = vst [vmem:[#allocation27_spill] sm:$0xff] %v2864_v55  ;;  %v2880_v37 = vld [vmem:[#allocation2 + $0x7a] sm:$0xff]  ;;  %v2882_v38 = vld [vmem:[#allocation2 + $0x82] sm:$0xff]  ;;  %v2884_v6 = vld [vmem:[#allocation2 + $0x92] sm:$0xff] }
  0x9c   : > { %v2894_v45 = vld [vmem:[#allocation2 + $0x9a] sm:$0xff]  ;;  %v2896_v36 = vld [vmem:[#allocation2 + $0xaa] sm:$0xff]  ;;  %v2898_v46 = vld [vmem:[#allocation2 + $0xb2] sm:$0xff]  ;;  %3947 = vst [vmem:[#allocation28_spill] sm:$0xff] %v2920_v62 }
  0x9d   : > { %v2908_v53 = vld [vmem:[#allocation2 + $0xc2] sm:$0xff]  ;;  %v2910_v35 = vld [vmem:[#allocation2 + $0xca] sm:$0xff]  ;;  %v2912_v54 = vld [vmem:[#allocation2 + $0xda] sm:$0xff] }
  0x9e   : > { %v1032_v50 = vld [vmem:[#allocation2 + $0x33] sm:$0xff]  ;;  %v1033_v49 = vld [vmem:[#allocation2 + $0x3b] sm:$0xff]  ;;  %v1034_v52 = vld [vmem:[#allocation2 + $0x4b] sm:$0xff] }
  0x9f   : > { %v2922_v19 = vld [vmem:[#allocation2 + $0xe2] sm:$0xff]  ;;  %v2924_v63 = vld [vmem:[#allocation2 + $0xf2] sm:$0xff]  ;;  %v2926_v59 = vld [vmem:[#allocation2 + $0xfa] sm:$0xff]  ;;  %v1128_v4 = vmax.f32 %v2848_v13, %v1032_v50  ;;  %v1129_v0 = vmax.f32 %v2850_v14, %v1033_v49  ;;  %v1130_v16 = vmax.f32 %v2852_v15, %v1034_v52 }
  0xa0   : > { %v1035_v58 = vld [vmem:[#allocation2 + $0x53] sm:$0xff]  ;;  %v1036_v61 = vld [vmem:[#allocation2 + $0x63] sm:$0xff]  ;;  %v1037_v57 = vld [vmem:[#allocation2 + $0x6b] sm:$0xff] }
  0xa1   : > { %v2933_v20 = vld [vmem:[#allocation2 + $0x10a] sm:$0xff]  ;;  %v2935_v29 = vld [vmem:[#allocation2 + $0x112] sm:$0xff]  ;;  %v2937_v62 = vld [vmem:[#allocation2 + $0x122] sm:$0xff]  ;;  %v1131_v50 = vmax.f32 %v2866_v9, %v1035_v58  ;;  %v1132_v49 = vmax.f32 %v2868_v8, %v1036_v61  ;;  %v1133_v52 = vmax.f32 %v2870_v7, %v1037_v57  ;;  %v3948_v57 = vmax.f32 %v2737_v17, %v2739_v18 }
  0xa2   : > { %v1038_v11 = vld [vmem:[#allocation2 + $0x7b] sm:$0xff]  ;;  %v2939_v3 = vld [vmem:[#allocation2 + $0x83] sm:$0xff]  ;;  %v2941_v5 = vld [vmem:[#allocation2 + $0x93] sm:$0xff] }
  0xa3   : > { %v2948_v13 = vld [vmem:[#allocation2 + $0x12a] sm:$0xff]  ;;  %v2950_v14 = vld [vmem:[#allocation2 + $0x13a] sm:$0xff]  ;;  %v2952_v15 = vld [vmem:[#allocation2 + $0x142] sm:$0xff]  ;;  %v1134_v1 = vmax.f32 %v2880_v37, %v1038_v11  ;;  %v1135_v42 = vmax.f32 %v2882_v38, %v2939_v3  ;;  %v1136_v58 = vmax.f32 %v2884_v6, %v2941_v5  ;;  %v1160_v61 = vmax.f32 %v3948_v57, %v1128_v4 }
  0xa4   : > { %v1041_v12 = vld [vmem:[#allocation2 + $0x9b] sm:$0xff]  ;;  %v1042_v10 = vld [vmem:[#allocation2 + $0xab] sm:$0xff]  ;;  %v2954_v2 = vld [vmem:[#allocation2 + $0xb3] sm:$0xff]  ;;  %v3949_v5 = vmax.f32 %v2741_v21, %v2749_v25  ;;  %v3955_v57 = vmax.f32 %v2757_v30, %v2761_v32 }
  0xa5   : > { %v2964_v7 = vld [vmem:[#allocation2 + $0xc3] sm:$0xff]  ;;  %v2966_v8 = vld [vmem:[#allocation2 + $0xcb] sm:$0xff]  ;;  %v2968_v9 = vld [vmem:[#allocation2 + $0xdb] sm:$0xff]  ;;  %v1137_v55 = vmax.f32 %v2894_v45, %v1041_v12  ;;  %v1138_v11 = vmax.f32 %v2896_v36, %v1042_v10  ;;  %v1139_v3 = vmax.f32 %v2898_v46, %v2954_v2  ;;  %v3950_v46 = vmax.f32 %v2743_v22, %v2751_v26 }
  0xa6   : > { %v1161_v6 = vmax.f32 %v3949_v5, %v1129_v0  ;;  %v2977_v37 = vld [vmem:[#allocation2 + $0xe3] sm:$0xff]  ;;  %v2979_v17 = vld [vmem:[#allocation2 + $0xf3] sm:$0xff]  ;;  %v2981_v18 = vld [vmem:[#allocation2 + $0xfb] sm:$0xff]  ;;  %v1140_v4 = vmax.f32 %v2908_v53, %v2964_v7  ;;  %v1141_v45 = vmax.f32 %v2910_v35, %v2966_v8  ;;  %v1142_v10 = vmax.f32 %v2912_v54, %v2968_v9 }
  0xa7   : > { %v1162_v21 = vmax.f32 %v3950_v46, %v1130_v16  ;;  %v2992_v25 = vld [vmem:[#allocation2 + $0x10b] sm:$0xff]  ;;  %v2994_v0 = vld [vmem:[#allocation2 + $0x113] sm:$0xff]  ;;  %v2996_v2 = vld [vmem:[#allocation2 + $0x123] sm:$0xff]  ;;  %v3951_v54 = vmax.f32 %v2745_v23, %v2753_v27  ;;  %v3954_v8 = vmax.f32 %v2747_v24, %v2755_v28  ;;  %v1165_v7 = vmax.f32 %v3955_v57, %v1133_v52 }
  0xa8   : > { %v3007_v26 = vld [vmem:[#allocation2 + $0x12b] sm:$0xff]  ;;  %v3009_v16 = vld [vmem:[#allocation2 + $0x13b] sm:$0xff]  ;;  %v3011_v36 = vld [vmem:[#allocation2 + $0x143] sm:$0xff]  ;;  %v3956_v53 = vmax.f32 %v2759_v31, %v2763_v33  ;;  %v3958_v31 = vmax.f32 %v2775_v40, %v2783_v44  ;;  %v3964_v40 = vmax.f32 %v2789_v47, %v2797_v51 }
  0xa9   : > { %v1163_v22 = vmax.f32 %v3951_v54, %v1131_v50  ;;  %3952 = vst [vmem:[#allocation29_spill] sm:$0xff] %v3009_v16  ;;  %3953 = vst [vmem:[#allocation30_spill] sm:$0xff] %v3011_v36  ;;  %v1164_v23 = vmax.f32 %v3954_v8, %v1132_v49  ;;  %v1064_v27 = vld [vmem:[#allocation2 + $0x34] sm:$0xff]  ;;  %v1065_v50 = vld [vmem:[#allocation2 + $0x3c] sm:$0xff]  ;;  %v3957_v54 = vmax.f32 %v2773_v39, %v2781_v43 }
  0xaa   : > { %v1066_v9 = vld [vmem:[#allocation2 + $0x4c] sm:$0xff]  ;;  %v1067_v38 = vld [vmem:[#allocation2 + $0x54] sm:$0xff]  ;;  %v1068_v35 = vld [vmem:[#allocation2 + $0x64] sm:$0xff]  ;;  %v1192_v28 = vmax.f32 %v1160_v61, %v1064_v27  ;;  %v1193_v49 = vmax.f32 %v1161_v6, %v1065_v50  ;;  %v1166_v5 = vmax.f32 %v3956_v53, %v1134_v1  ;;  %v1168_v33 = vmax.f32 %v3958_v31, %v1136_v58 }
  0xab   : > { %v1069_v24 = vld [vmem:[#allocation2 + $0x6c] sm:$0xff]  ;;  %v1194_v8 = vmax.f32 %v1162_v21, %v1066_v9  ;;  %v1070_v12 = vld [vmem:[#allocation2 + $0x7c] sm:$0xff]  ;;  %v1195_v34 = vmax.f32 %v1163_v22, %v1067_v38  ;;  %v1196_v46 = vmax.f32 %v1164_v23, %v1068_v35  ;;  %v1167_v36 = vmax.f32 %v3957_v54, %v1135_v42  ;;  %v1071_v30 = vld [vmem:[#allocation2 + $0x84] sm:$0xff] }
  0xac   : > { %v1197_v16 = vmax.f32 %v1165_v7, %v1069_v24  ;;  %v1072_v32 = vld [vmem:[#allocation2 + $0x94] sm:$0xff]  ;;  %1224 = vst.msk [vmem:[#allocation3 + $0x40] sm:$0xff] %vm214_vm2, %v1192_v28  ;;  %1225 = vst.msk [vmem:[#allocation3 + $0x48] sm:$0xff] %vm214_vm2, %v1193_v49  ;;  %v1198_v52 = vmax.f32 %v1166_v5, %v1070_v12  ;;  %v3959_v1 = vld [vmem:[#allocation5_spill] sm:$0xff]  ;;  %v1171_v44 = vmax.f32 %v3964_v40, %v1139_v3 }
  0xad   : > { %1226 = vst.msk [vmem:[#allocation3 + $0x50] sm:$0xff] %vm214_vm2, %v1194_v8  ;;  %v3960_v61 = vmax.f32 %v2777_v41, %v3959_v1  ;;  %v3961_v21 = vld [vmem:[#allocation4_spill] sm:$0xff]  ;;  %v3962_v39 = vld [vmem:[#allocation6_spill] sm:$0xff]  ;;  %1227 = vst.msk [vmem:[#allocation3 + $0x58] sm:$0xff] %vm214_vm2, %v1195_v34  ;;  %v1199_v12 = vmax.f32 %v1167_v36, %v1071_v30  ;;  %v1200_v50 = vmax.f32 %v1168_v33, %v1072_v32 }
  0xae   : > { %v3963_v42 = vmax.f32 %v3961_v21, %v3962_v39  ;;  %v1073_v53 = vld [vmem:[#allocation2 + $0x9c] sm:$0xff]  ;;  %v1074_v35 = vld [vmem:[#allocation2 + $0xac] sm:$0xff]  ;;  %v1075_v22 = vld [vmem:[#allocation2 + $0xb4] sm:$0xff]  ;;  %1228 = vst.msk [vmem:[#allocation3 + $0x60] sm:$0xff] %vm214_vm2, %v1196_v46  ;;  %v3973_v24 = vmax.f32 %v2922_v19, %v2977_v37  ;;  %v3974_v28 = vmax.f32 %v2805_v56, %v2813_v60  ;;  %v3979_v56 = vmax.f32 %v2926_v59, %v2981_v18 }
  0xaf   : > { %v1169_v6 = vmax.f32 %v3960_v61, %v1137_v55  ;;  %1229 = vst.msk [vmem:[#allocation3 + $0x68] sm:$0xff] %vm214_vm2, %v1197_v16  ;;  %v3965_v41 = vld [vmem:[#allocation9_spill] sm:$0xff]  ;;  %v3967_v38 = vld [vmem:[#allocation7_spill] sm:$0xff]  ;;  %1230 = vst.msk [vmem:[#allocation3 + $0x70] sm:$0xff] %vm214_vm2, %v1198_v52  ;;  %v3975_v52 = vmax.f32 %v2924_v63, %v2979_v17  ;;  %v3983_v21 = vmax.f32 %v2933_v20, %v2992_v25 }
  0xb0   : > { %v1170_v43 = vmax.f32 %v3963_v42, %v1138_v11  ;;  %v3966_v55 = vmax.f32 %v2791_v48, %v3965_v41  ;;  %v3968_v11 = vld [vmem:[#allocation10_spill] sm:$0xff]  ;;  %v1076_v23 = vld [vmem:[#allocation2 + $0xc4] sm:$0xff]  ;;  %v1078_v34 = vld [vmem:[#allocation2 + $0xdc] sm:$0xff]  ;;  %1231 = vst.msk [vmem:[#allocation3 + $0x78] sm:$0xff] %vm214_vm2, %v1199_v12  ;;  %v1175_v49 = vmax.f32 %v3974_v28, %v3973_v24  ;;  %v3987_v18 = vmax.f32 %v2935_v29, %v2994_v0 }
  0xb1   : > { %v3969_v57 = vmax.f32 %v3967_v38, %v3968_v11  ;;  %v1077_v27 = vld [vmem:[#allocation2 + $0xcc] sm:$0xff]  ;;  %v1201_v16 = vmax.f32 %v1169_v6, %v1073_v53  ;;  %v3970_v9 = vld [vmem:[#allocation8_spill] sm:$0xff]  ;;  %v3971_v5 = vld [vmem:[#allocation11_spill] sm:$0xff]  ;;  %1232 = vst.msk [vmem:[#allocation3 + $0x80] sm:$0xff] %vm214_vm2, %v1200_v50  ;;  %v3991_v40 = vmax.f32 %v2937_v62, %v2996_v2  ;;  %v3995_v38 = vmax.f32 %v2948_v13, %v3007_v26 }
  0xb2   : > { %v1172_v58 = vmax.f32 %v3966_v55, %v1140_v4  ;;  %v1202_v36 = vmax.f32 %v1170_v43, %v1074_v35  ;;  %v3972_v47 = vmax.f32 %v3970_v9, %v3971_v5  ;;  %v1079_v3 = vld [vmem:[#allocation2 + $0xe4] sm:$0xff]  ;;  %v1080_v46 = vld [vmem:[#allocation2 + $0xf4] sm:$0xff]  ;;  %v1081_v48 = vld [vmem:[#allocation2 + $0xfc] sm:$0xff]  ;;  %v1203_v4 = vmax.f32 %v1171_v44, %v1075_v22 }
  0xb3   : > { %v1173_v7 = vmax.f32 %v3969_v57, %v1141_v45  ;;  %v1082_v8 = vld [vmem:[#allocation2 + $0x10c] sm:$0xff]  ;;  %v1083_v30 = vld [vmem:[#allocation2 + $0x114] sm:$0xff]  ;;  %v1084_v32 = vld [vmem:[#allocation2 + $0x124] sm:$0xff]  ;;  %1233 = vst.msk [vmem:[#allocation3 + $0x88] sm:$0xff] %vm214_vm2, %v1201_v16  ;;  %v1207_v59 = vmax.f32 %v1175_v49, %v1079_v3 }
  0xb4   : > { %v1174_v51 = vmax.f32 %v3972_v47, %v1142_v10  ;;  %v1204_v54 = vmax.f32 %v1172_v58, %v1076_v23  ;;  %1234 = vst.msk [vmem:[#allocation3 + $0x90] sm:$0xff] %vm214_vm2, %v1202_v36  ;;  %v3976_v31 = vld [vmem:[#allocation12_spill] sm:$0xff]  ;;  %v3977_v33 = vld [vmem:[#allocation15_spill] sm:$0xff]  ;;  %v3980_v60 = vld [vmem:[#allocation13_spill] sm:$0xff] }
  0xb5   : > { %v1205_v45 = vmax.f32 %v1173_v7, %v1077_v27  ;;  %v3978_v19 = vmax.f32 %v3976_v31, %v3977_v33  ;;  %v3981_v1 = vld [vmem:[#allocation16_spill] sm:$0xff]  ;;  %v3984_v39 = vld [vmem:[#allocation14_spill] sm:$0xff]  ;;  %v3985_v42 = vld [vmem:[#allocation17_spill] sm:$0xff]  ;;  %1235 = vst.msk [vmem:[#allocation3 + $0x98] sm:$0xff] %vm214_vm2, %v1203_v4 }
  0xb6   : > { %v1206_v10 = vmax.f32 %v1174_v51, %v1078_v34  ;;  %v3982_v61 = vmax.f32 %v3980_v60, %v3981_v1  ;;  %v3986_v43 = vmax.f32 %v3984_v39, %v3985_v42  ;;  %v1061_v35 = vld [vmem:[#allocation2 + $0xc] sm:$0xff]  ;;  %v934_v63 = vld [vmem:[#allocation2 + $0x18] sm:$0xff]  ;;  %1236 = vst.msk [vmem:[#allocation3 + $0xa0] sm:$0xff] %vm214_vm2, %v1204_v54  ;;  %v3996_v11 = vld [vmem:[#allocation20_spill] sm:$0xff] }
  0xb7   : > { %v1176_v37 = vmax.f32 %v3978_v19, %v3975_v52  ;;  %v966_v17 = vld [vmem:[#allocation2 + $0x19] sm:$0xff]  ;;  %1237 = vst.msk [vmem:[#allocation3 + $0xa8] sm:$0xff] %vm214_vm2, %v1205_v45  ;;  %v3988_v22 = vld [vmem:[#allocation18_spill] sm:$0xff]  ;;  %v3989_v12 = vld [vmem:[#allocation21_spill] sm:$0xff] }
  0xb8   : > { %v1177_v6 = vmax.f32 %v3982_v61, %v3979_v56  ;;  %v1178_v53 = vmax.f32 %v3986_v43, %v3983_v21  ;;  %v3990_v20 = vmax.f32 %v3988_v22, %v3989_v12  ;;  %v3992_v44 = vld [vmem:[#allocation19_spill] sm:$0xff]  ;;  %v3993_v41 = vld [vmem:[#allocation22_spill] sm:$0xff]  ;;  %v3997_v57 = vld [vmem:[#allocation24_spill] sm:$0xff]  ;;  %v1094_v16 = vmax.f32 %v934_v63, %v966_v17  ;;  %1238 = vst.msk [vmem:[#allocation3 + $0xb0] sm:$0xff] %vm214_vm2, %v1206_v10 }
  0xb9   : > { %v3994_v55 = vmax.f32 %v3992_v44, %v3993_v41  ;;  %v3998_v7 = vmax.f32 %v3996_v11, %v3997_v57  ;;  %v1085_v27 = vld [vmem:[#allocation2 + $0x12c] sm:$0xff]  ;;  %v3999_v29 = vld [vmem:[#allocation28_spill] sm:$0xff]  ;;  %v1208_v62 = vmax.f32 %v1176_v37, %v1080_v46  ;;  %1239 = vst.msk [vmem:[#allocation3 + $0xb8] sm:$0xff] %vm214_vm2, %v1207_v59  ;;  %v4002_v49 = vld [vmem:[#allocation23_spill] sm:$0xff] }
  0xba   : > { %v1179_v25 = vmax.f32 %v3990_v20, %v3987_v18  ;;  %v1189_v0 = vmax.f32 %v3999_v29, %v1061_v35  ;;  %v998_v34 = vld [vmem:[#allocation2 + $0x1a] sm:$0xff]  ;;  %v1209_v2 = vmax.f32 %v1177_v6, %v1081_v48  ;;  %v1087_v9 = vld [vmem:[#allocation2 + $0x144] sm:$0xff]  ;;  %v1210_v26 = vmax.f32 %v1178_v53, %v1082_v8  ;;  %v4005_v8 = vld [vmem:[#allocation30_spill] sm:$0xff] }
  0xbb   : > { %v1180_v58 = vmax.f32 %v3994_v55, %v3991_v40  ;;  %v1181_v23 = vmax.f32 %v3998_v7, %v3995_v38  ;;  %v1030_v50 = vld [vmem:[#allocation2 + $0x1b] sm:$0xff]  ;;  %v1031_v45 = vld [vmem:[#allocation2 + $0x23] sm:$0xff]  ;;  %1240 = vst.msk [vmem:[#allocation3 + $0xc0] sm:$0xff] %vm214_vm2, %v1208_v62  ;;  %v960_v56 = vld [vmem:[#allocation2 + $0x150] sm:$0xff] }
  0xbc   : > { %v1086_v36 = vld [vmem:[#allocation2 + $0x13c] sm:$0xff]  ;;  %v1126_v5 = vmax.f32 %v998_v34, %v1030_v50  ;;  %v1211_v3 = vmax.f32 %v1179_v25, %v1083_v30  ;;  %1221 = vst.msk [vmem:[#allocation3 + $0x28] sm:$0xff] %vm214_vm2, %v1189_v0  ;;  %1241 = vst.msk [vmem:[#allocation3 + $0xc8] sm:$0xff] %vm214_vm2, %v1209_v2  ;;  %v4000_v48 = vld [vmem:[#allocation29_spill] sm:$0xff]  ;;  %v4006_v30 = vmax.f32 %v2952_v15, %v4005_v8 }
  0xbd   : > { %v935_v47 = vld [vmem:[#allocation2 + $0x20] sm:$0xff]  ;;  %v1212_v4 = vmax.f32 %v1180_v58, %v1084_v32  ;;  %v1213_v46 = vmax.f32 %v1181_v23, %v1085_v27  ;;  %v4001_v28 = vmax.f32 %v2950_v14, %v4000_v48  ;;  %v4003_v10 = vld [vmem:[#allocation25_spill] sm:$0xff]  ;;  %v4007_v32 = vld [vmem:[#allocation26_spill] sm:$0xff]  ;;  %1242 = vst.msk [vmem:[#allocation3 + $0xd0] sm:$0xff] %vm214_vm2, %v1210_v26 }
  0xbe   : > { %v967_v51 = vld [vmem:[#allocation2 + $0x21] sm:$0xff]  ;;  %v4004_v52 = vmax.f32 %v4002_v49, %v4003_v10  ;;  %v4008_v33 = vld [vmem:[#allocation27_spill] sm:$0xff]  ;;  %v1158_v60 = vmax.f32 %v1094_v16, %v1126_v5  ;;  %1243 = vst.msk [vmem:[#allocation3 + $0xd8] sm:$0xff] %vm214_vm2, %v1211_v3  ;;  %v3138_v25 = vld [vmem:[#allocation3 + $0x10] sm:$0xff] }
  0xbf   : > { %v999_v13 = vld [vmem:[#allocation2 + $0x22] sm:$0xff]  ;;  %v1095_v24 = vmax.f32 %v935_v47, %v967_v51  ;;  %v4009_v19 = vmax.f32 %v4007_v32, %v4008_v33  ;;  %1244 = vst.msk [vmem:[#allocation3 + $0xe0] sm:$0xff] %vm214_vm2, %v1212_v4  ;;  %v992_v14 = vld [vmem:[#allocation2 + $0x151] sm:$0xff]  ;;  %1245 = vst.msk [vmem:[#allocation3 + $0xe8] sm:$0xff] %vm214_vm2, %v1213_v46 }
  0xc0   : > { %v1062_v54 = vld [vmem:[#allocation2 + $0x1c] sm:$0xff]  ;;  %v1182_v31 = vmax.f32 %v4004_v52, %v4001_v28  ;;  %v1127_v1 = vmax.f32 %v999_v13, %v1031_v45  ;;  %v1024_v61 = vld [vmem:[#allocation2 + $0x152] sm:$0xff]  ;;  %v1063_v21 = vld [vmem:[#allocation2 + $0x24] sm:$0xff]  ;;  %v1120_v42 = vmax.f32 %v960_v56, %v992_v14 }
  0xc1   : > { %v1183_v37 = vmax.f32 %v4009_v19, %v4006_v30  ;;  %v1056_v6 = vld [vmem:[#allocation2 + $0x153] sm:$0xff]  ;;  %v1190_v63 = vmax.f32 %v1158_v60, %v1062_v54  ;;  %v1057_v22 = vld [vmem:[#allocation2 + $0x15b] sm:$0xff]  ;;  %v962_v41 = vld [vmem:[#allocation2 + $0x168] sm:$0xff] }
  0xc2   : > { %v1214_v15 = vmax.f32 %v1182_v31, %v1086_v36  ;;  %v1152_v43 = vmax.f32 %v1024_v61, %v1056_v6  ;;  %v961_v53 = vld [vmem:[#allocation2 + $0x158] sm:$0xff]  ;;  %v1159_v17 = vmax.f32 %v1095_v24, %v1127_v1  ;;  %v3136_v20 = vld [vmem:[#allocation3] sm:$0xff]  ;;  %v994_v55 = vld [vmem:[#allocation2 + $0x169] sm:$0xff] }
  0xc3   : > { %v1215_v39 = vmax.f32 %v1183_v37, %v1087_v9  ;;  %v993_v35 = vld [vmem:[#allocation2 + $0x159] sm:$0xff]  ;;  %v1026_v58 = vld [vmem:[#allocation2 + $0x16a] sm:$0xff]  ;;  %1222 = vst.msk [vmem:[#allocation3 + $0x30] sm:$0xff] %vm214_vm2, %v1190_v63  ;;  %v1122_v27 = vmax.f32 %v962_v41, %v994_v55  ;;  %v1412_v4 = vmax.f32 %v3136_v20, %v3138_v25 }
  0xc4   : > { %v1088_v59 = vld [vmem:[#allocation2 + $0x154] sm:$0xff]  ;;  %v1121_v12 = vmax.f32 %v961_v53, %v993_v35  ;;  %1246 = vst.msk [vmem:[#allocation3 + $0xf0] sm:$0xff] %vm214_vm2, %v1214_v15  ;;  %v1184_v40 = vmax.f32 %v1120_v42, %v1152_v43  ;;  %v3142_v38 = vld [vmem:[#allocation3 + $0x8] sm:$0xff]  ;;  %v1191_v57 = vmax.f32 %v1159_v17, %v1063_v21  ;;  %v1089_v7 = vld [vmem:[#allocation2 + $0x15c] sm:$0xff] }
  0xc5   : > { %v1025_v18 = vld [vmem:[#allocation2 + $0x15a] sm:$0xff]  ;;  %1247 = vst.msk [vmem:[#allocation3 + $0xf8] sm:$0xff] %vm214_vm2, %v1215_v39  ;;  %v1058_v23 = vld [vmem:[#allocation2 + $0x16b] sm:$0xff] }
  0xc6   : > { %v1153_v44 = vmax.f32 %v1025_v18, %v1057_v22  ;;  %v3144_v11 = vld [vmem:[#allocation3 + $0x18] sm:$0xff]  ;;  %v963_v29 = vld [vmem:[#allocation2 + $0x170] sm:$0xff]  ;;  %v1216_v0 = vmax.f32 %v1184_v40, %v1088_v59  ;;  %v1154_v50 = vmax.f32 %v1026_v58, %v1058_v23  ;;  %1223 = vst.msk [vmem:[#allocation3 + $0x38] sm:$0xff] %vm214_vm2, %v1191_v57  ;;  %v1316_v47 = vld [vmem:[#allocation3 + $0x20] sm:$0xff] }
  0xc7   : > { %v995_v16 = vld [vmem:[#allocation2 + $0x171] sm:$0xff]  ;;  %v1380_v51 = vld [vmem:[#allocation3 + $0x40] sm:$0xff]  ;;  %v1317_v54 = vld [vmem:[#allocation3 + $0x28] sm:$0xff]  ;;  %v1413_v48 = vmax.f32 %v3142_v38, %v3144_v11  ;;  %v1414_v28 = vmax.f32 %v3138_v25, %v1316_v47 }
  0xc8   : > { %v1185_v34 = vmax.f32 %v1121_v12, %v1153_v44  ;;  %v1027_v62 = vld [vmem:[#allocation2 + $0x172] sm:$0xff]  ;;  %v1123_v9 = vmax.f32 %v963_v29, %v995_v16  ;;  %1248 = vst.msk [vmem:[#allocation3 + $0x100] sm:$0xff] %vm214_vm2, %v1216_v0  ;;  %v1186_v26 = vmax.f32 %v1122_v27, %v1154_v50  ;;  %v3151_v45 = vld [vmem:[#allocation3 + $0x48] sm:$0xff]  ;;  %v1384_v10 = vld [vmem:[#allocation3 + $0x60] sm:$0xff]  ;;  %v1415_v42 = vmax.f32 %v3144_v11, %v1317_v54 }
  0xc9   : > { %v1059_v2 = vld [vmem:[#allocation2 + $0x173] sm:$0xff]  ;;  %v3158_v31 = vld [vmem:[#allocation3 + $0x68] sm:$0xff]  ;;  %v1388_v56 = vld [vmem:[#allocation3 + $0x80] sm:$0xff] }
  0xca   : > { %v1090_v36 = vld [vmem:[#allocation2 + $0x16c] sm:$0xff]  ;;  %v1155_v5 = vmax.f32 %v1027_v62, %v1059_v2  ;;  %v1217_v13 = vmax.f32 %v1185_v34, %v1089_v7  ;;  %v1091_v3 = vld [vmem:[#allocation2 + $0x174] sm:$0xff]  ;;  %v1392_v34 = vld [vmem:[#allocation3 + $0xa0] sm:$0xff] }
  0xcb   : > { %v1382_v24 = vld [vmem:[#allocation3 + $0x50] sm:$0xff]  ;;  %v3156_v49 = vld [vmem:[#allocation3 + $0x58] sm:$0xff]  ;;  %v1218_v8 = vmax.f32 %v1186_v26, %v1090_v36  ;;  %v1389_v14 = vld [vmem:[#allocation3 + $0x88] sm:$0xff] }
  0xcc   : > { %v1187_v46 = vmax.f32 %v1123_v9, %v1155_v5  ;;  %v1448_v52 = vmax.f32 %v1380_v51, %v1382_v24  ;;  %1249 = vst.msk [vmem:[#allocation3 + $0x108] sm:$0xff] %vm214_vm2, %v1217_v13  ;;  %v3163_v30 = vmax.f32 %v3151_v45, %v3156_v49  ;;  %v1386_v32 = vld [vmem:[#allocation3 + $0x70] sm:$0xff]  ;;  %v1450_v33 = vmax.f32 %v1382_v24, %v1384_v10  ;;  %v3165_v19 = vld [vmem:[#allocation3 + $0x78] sm:$0xff]  ;;  %v1393_v50 = vld [vmem:[#allocation3 + $0xa8] sm:$0xff] }
  0xcd   : > { %v3169_v37 = vmax.f32 %v3156_v49, %v3158_v31  ;;  %v3171_v1 = vmax.f32 %v1384_v10, %v1386_v32  ;;  %v3175_v61 = vmax.f32 %v3158_v31, %v3165_v19  ;;  %v3177_v6 = vld [vmem:[#allocation3 + $0x90] sm:$0xff]  ;;  %v3179_v21 = vmax.f32 %v1386_v32, %v1388_v56  ;;  %v3181_v15 = vld [vmem:[#allocation3 + $0x98] sm:$0xff]  ;;  %1250 = vst.msk [vmem:[#allocation3 + $0x110] sm:$0xff] %vm214_vm2, %v1218_v8 }
  0xce   : > { %v1219_v60 = vmax.f32 %v1187_v46, %v1091_v3  ;;  %v1348_v39 = vld [vmem:[#allocation3 + $0x30] sm:$0xff]  ;;  %v3186_v43 = vmax.f32 %v3165_v19, %v1389_v14  ;;  %v3189_v53 = vmax.f32 %v1388_v56, %v3177_v6  ;;  %v3192_v35 = vmax.f32 %v1389_v14, %v3181_v15  ;;  %v1349_v22 = vld [vmem:[#allocation3 + $0x38] sm:$0xff] }
  0xcf   : > { %v1444_v63 = vmax.f32 %v1316_v47, %v1348_v39  ;;  %v1446_v17 = vmax.f32 %v1348_v39, %v1380_v51  ;;  %v1484_v59 = vmax.f32 %v1448_v52, %v3171_v1  ;;  %v1485_v18 = vmax.f32 %v3163_v30, %v3175_v61  ;;  %v1394_v9 = vld [vmem:[#allocation3 + $0xb0] sm:$0xff]  ;;  %v1395_v5 = vld [vmem:[#allocation3 + $0xb8] sm:$0xff]  ;;  %v1396_v47 = vld [vmem:[#allocation3 + $0xc0] sm:$0xff] }
  0xd0   : > { %1251 = vst.msk [vmem:[#allocation3 + $0x118] sm:$0xff] %vm214_vm2, %v1219_v60  ;;  %v1486_v12 = vmax.f32 %v1450_v33, %v3179_v21  ;;  %v1487_v20 = vmax.f32 %v3169_v37, %v3186_v43  ;;  %v1488_v25 = vmax.f32 %v3171_v1, %v3189_v53  ;;  %v1489_v40 = vmax.f32 %v3175_v61, %v3192_v35  ;;  %v1400_v1 = vld [vmem:[#allocation3 + $0xe0] sm:$0xff] }
  0xd1   : > { %v1476_v44 = vmax.f32 %v1412_v4, %v1444_v63  ;;  %v1445_v41 = vmax.f32 %v1317_v54, %v1349_v22  ;;  %v1478_v55 = vmax.f32 %v1414_v28, %v1446_v17  ;;  %v1447_v58 = vmax.f32 %v1349_v22, %v3151_v45  ;;  %v1397_v4 = vld [vmem:[#allocation3 + $0xc8] sm:$0xff]  ;;  %v3224_v54 = vld [vmem:[#allocation3 + $0xd0] sm:$0xff] }
  0xd2   : > { %v1480_v38 = vmax.f32 %v1444_v63, %v1448_v52  ;;  %v1482_v11 = vmax.f32 %v1446_v17, %v1450_v33  ;;  %v1516_v57 = vmax.f32 %v1484_v59, %v1388_v56  ;;  %v1517_v7 = vmax.f32 %v1485_v18, %v1389_v14  ;;  %v1401_v14 = vld [vmem:[#allocation3 + $0xe8] sm:$0xff]  ;;  %v1403_v63 = vld [vmem:[#allocation3 + $0xf8] sm:$0xff]  ;;  %v1404_v17 = vld [vmem:[#allocation3 + $0x100] sm:$0xff] }
  0xd3   : > { %v1508_v23 = vmax.f32 %v1476_v44, %v1380_v51  ;;  %v1477_v27 = vmax.f32 %v1413_v48, %v1445_v41  ;;  %v1510_v29 = vmax.f32 %v1478_v55, %v1382_v24  ;;  %v1479_v0 = vmax.f32 %v1415_v42, %v1447_v58  ;;  %v3226_v24 = vld [vmem:[#allocation3 + $0xd8] sm:$0xff]  ;;  %v1402_v42 = vld [vmem:[#allocation3 + $0xf0] sm:$0xff] }
  0xd4   : > { %v1512_v16 = vmax.f32 %v1480_v38, %v1384_v10  ;;  %v1481_v62 = vmax.f32 %v1445_v41, %v3163_v30  ;;  %v1514_v2 = vmax.f32 %v1482_v11, %v1386_v32  ;;  %v1483_v36 = vmax.f32 %v1447_v58, %v3169_v37  ;;  %2345 = vst.msk [vmem:[%s2638_s17 + $0x140] sm:$0xff] %vm214_vm2, %v1516_v57  ;;  %v3268_v22 = vld [vmem:[#allocation3 + $0x110] sm:$0xff] }
  0xd5   : > { %1581 = vst.msk [vmem:[#allocation2 + $0x62] sm:$0xff] %vm214_vm2, %v1516_v57  ;;  %2346 = vst.msk [vmem:[%s2638_s17 + $0x148] sm:$0xff] %vm214_vm2, %v1517_v7  ;;  %v1509_v51 = vmax.f32 %v1477_v27, %v3151_v45  ;;  %v1511_v13 = vmax.f32 %v1479_v0, %v3156_v49  ;;  %v1518_v26 = vmax.f32 %v1486_v12, %v3177_v6 }
  0xd6   : > { %1582 = vst.msk [vmem:[#allocation2 + $0x6a] sm:$0xff] %vm214_vm2, %v1517_v7  ;;  %2337 = vst.msk [vmem:[%s2638_s17 + $0x100] sm:$0xff] %vm214_vm2, %v1508_v23  ;;  %v1519_v3 = vmax.f32 %v1487_v20, %v3181_v15  ;;  %v1513_v45 = vmax.f32 %v1481_v62, %v3158_v31  ;;  %v1515_v46 = vmax.f32 %v1483_v36, %v3165_v19 }
  0xd7   : > { %1573 = vst.msk [vmem:[#allocation2 + $0x2] sm:$0xff] %vm214_vm2, %v1508_v23  ;;  %2339 = vst.msk [vmem:[%s2638_s17 + $0x110] sm:$0xff] %vm214_vm2, %v1510_v29  ;;  %v1520_v48 = vmax.f32 %v1488_v25, %v1392_v34  ;;  %v1521_v28 = vmax.f32 %v1489_v40, %v1393_v50  ;;  %v1458_v49 = vmax.f32 %v3177_v6, %v1392_v34 }
  0xd8   : > { %1575 = vst.msk [vmem:[#allocation2 + $0x1a] sm:$0xff] %vm214_vm2, %v1510_v29  ;;  %2341 = vst.msk [vmem:[%s2638_s17 + $0x120] sm:$0xff] %vm214_vm2, %v1512_v16  ;;  %v1459_v10 = vmax.f32 %v3181_v15, %v1393_v50  ;;  %v1460_v52 = vmax.f32 %v1392_v34, %v1394_v9  ;;  %v1461_v31 = vmax.f32 %v1393_v50, %v1395_v5 }
  0xd9   : > { %1577 = vst.msk [vmem:[#allocation2 + $0x32] sm:$0xff] %vm214_vm2, %v1512_v16  ;;  %2343 = vst.msk [vmem:[%s2638_s17 + $0x130] sm:$0xff] %vm214_vm2, %v1514_v2  ;;  %v1462_v8 = vmax.f32 %v1394_v9, %v1396_v47  ;;  %v1463_v30 = vmax.f32 %v1395_v5, %v1397_v4  ;;  %v1464_v32 = vmax.f32 %v1396_v47, %v3224_v54 }
  0xda   : > { %1579 = vst.msk [vmem:[#allocation2 + $0x4a] sm:$0xff] %vm214_vm2, %v1514_v2  ;;  %2338 = vst.msk [vmem:[%s2638_s17 + $0x108] sm:$0xff] %vm214_vm2, %v1509_v51  ;;  %v1465_v33 = vmax.f32 %v1397_v4, %v3226_v24  ;;  %v1490_v19 = vmax.f32 %v3179_v21, %v1458_v49  ;;  %v1491_v37 = vmax.f32 %v3186_v43, %v1459_v10 }
  0xdb   : > { %1574 = vst.msk [vmem:[#allocation2 + $0xa] sm:$0xff] %vm214_vm2, %v1509_v51  ;;  %2340 = vst.msk [vmem:[%s2638_s17 + $0x118] sm:$0xff] %vm214_vm2, %v1511_v13  ;;  %v1492_v56 = vmax.f32 %v3189_v53, %v1460_v52  ;;  %v1493_v60 = vmax.f32 %v3192_v35, %v1461_v31  ;;  %v1494_v61 = vmax.f32 %v1458_v49, %v1462_v8  ;;  %v1405_v53 = vld [vmem:[#allocation3 + $0x108] sm:$0xff]  ;;  %v3270_v35 = vld [vmem:[#allocation3 + $0x118] sm:$0xff] }
  0xdc   : > { %1576 = vst.msk [vmem:[#allocation2 + $0x22] sm:$0xff] %vm214_vm2, %v1511_v13  ;;  %2347 = vst.msk [vmem:[%s2638_s17 + $0x150] sm:$0xff] %vm214_vm2, %v1518_v26  ;;  %v1495_v6 = vmax.f32 %v1459_v10, %v1463_v30  ;;  %v1496_v15 = vmax.f32 %v1460_v52, %v1464_v32  ;;  %v1497_v39 = vmax.f32 %v1461_v31, %v1465_v33  ;;  %v1409_v51 = vld [vmem:[#allocation3 + $0x128] sm:$0xff] }
  0xdd   : > { %1583 = vst.msk [vmem:[#allocation2 + $0x7a] sm:$0xff] %vm214_vm2, %v1518_v26  ;;  %2348 = vst.msk [vmem:[%s2638_s17 + $0x158] sm:$0xff] %vm214_vm2, %v1519_v3  ;;  %v1522_v59 = vmax.f32 %v1490_v19, %v1394_v9  ;;  %v1523_v21 = vmax.f32 %v1491_v37, %v1395_v5  ;;  %v1524_v43 = vmax.f32 %v1492_v56, %v1396_v47  ;;  %v1408_v47 = vld [vmem:[#allocation3 + $0x120] sm:$0xff]  ;;  %v3348_v19 = vld [vmem:[#allocation2 + $0x68] sm:$0xff] }
  0xde   : > { %1584 = vst.msk [vmem:[#allocation2 + $0x82] sm:$0xff] %vm214_vm2, %v1519_v3  ;;  %2342 = vst.msk [vmem:[%s2638_s17 + $0x128] sm:$0xff] %vm214_vm2, %v1513_v45  ;;  %v1525_v18 = vmax.f32 %v1493_v60, %v1397_v4  ;;  %v1526_v12 = vmax.f32 %v1494_v61, %v3224_v54  ;;  %v1527_v20 = vmax.f32 %v1495_v6, %v3226_v24 }
  0xdf   : > { %1578 = vst.msk [vmem:[#allocation2 + $0x3a] sm:$0xff] %vm214_vm2, %v1513_v45  ;;  %2344 = vst.msk [vmem:[%s2638_s17 + $0x138] sm:$0xff] %vm214_vm2, %v1515_v46  ;;  %v1528_v25 = vmax.f32 %v1496_v15, %v1400_v1  ;;  %v1529_v40 = vmax.f32 %v1497_v39, %v1401_v14  ;;  %v1466_v44 = vmax.f32 %v3224_v54, %v1400_v1 }
  0xe0   : > { %1580 = vst.msk [vmem:[#allocation2 + $0x52] sm:$0xff] %vm214_vm2, %v1515_v46  ;;  %2349 = vst.msk [vmem:[%s2638_s17 + $0x160] sm:$0xff] %vm214_vm2, %v1520_v48  ;;  %v1467_v41 = vmax.f32 %v3226_v24, %v1401_v14  ;;  %v1468_v55 = vmax.f32 %v1400_v1, %v1402_v42  ;;  %v1469_v58 = vmax.f32 %v1401_v14, %v1403_v63  ;;  %v3336_v52 = vld [vmem:[#allocation2 + $0x30] sm:$0xff]  ;;  %v3356_v1 = vld [vmem:[#allocation2 + $0x61] sm:$0xff] }
  0xe1   : > { %1585 = vst.msk [vmem:[#allocation2 + $0x92] sm:$0xff] %vm214_vm2, %v1520_v48  ;;  %2350 = vst.msk [vmem:[%s2638_s17 + $0x168] sm:$0xff] %vm214_vm2, %v1521_v28  ;;  %v1470_v38 = vmax.f32 %v1402_v42, %v1404_v17  ;;  %v1471_v11 = vmax.f32 %v1403_v63, %v1405_v53  ;;  %v1472_v57 = vmax.f32 %v1404_v17, %v3268_v22  ;;  %v1410_v48 = vld [vmem:[#allocation3 + $0x130] sm:$0xff] }
  0xe2   : > { %1586 = vst.msk [vmem:[#allocation2 + $0x9a] sm:$0xff] %vm214_vm2, %v1521_v28  ;;  %2351 = vst.msk [vmem:[%s2638_s17 + $0x170] sm:$0xff] %vm214_vm2, %v1522_v59  ;;  %v1473_v7 = vmax.f32 %v1405_v53, %v3270_v35  ;;  %v1498_v23 = vmax.f32 %v1462_v8, %v1466_v44  ;;  %v1499_v27 = vmax.f32 %v1463_v30, %v1467_v41  ;;  %v1411_v28 = vld [vmem:[#allocation3 + $0x138] sm:$0xff]  ;;  %v3342_v30 = vld [vmem:[#allocation2 + $0x48] sm:$0xff] }
  0xe3   : > { %1587 = vst.msk [vmem:[#allocation2 + $0xaa] sm:$0xff] %vm214_vm2, %v1522_v59  ;;  %2352 = vst.msk [vmem:[%s2638_s17 + $0x178] sm:$0xff] %vm214_vm2, %v1523_v21  ;;  %v1500_v29 = vmax.f32 %v1464_v32, %v1468_v55  ;;  %v1501_v0 = vmax.f32 %v1465_v33, %v1469_v58  ;;  %v1502_v34 = vmax.f32 %v1466_v44, %v1470_v38  ;;  %v3340_v8 = vld [vmem:[#allocation2 + $0x31] sm:$0xff]  ;;  %v3346_v33 = vld [vmem:[#allocation2 + $0x60] sm:$0xff] }
  0xe4   : > { %1588 = vst.msk [vmem:[#allocation2 + $0xb2] sm:$0xff] %vm214_vm2, %v1523_v21  ;;  %2353 = vst.msk [vmem:[%s2638_s17 + $0x180] sm:$0xff] %vm214_vm2, %v1524_v43  ;;  %v1503_v50 = vmax.f32 %v1467_v41, %v1471_v11  ;;  %v1504_v16 = vmax.f32 %v1468_v55, %v1472_v57  ;;  %v1505_v62 = vmax.f32 %v1469_v58, %v1473_v7  ;;  %v3352_v56 = vld [vmem:[#allocation2 + $0x49] sm:$0xff]  ;;  %v3360_v61 = vld [vmem:[#allocation2 + $0x78] sm:$0xff] }
  0xe5   : > { %1589 = vst.msk [vmem:[#allocation2 + $0xc2] sm:$0xff] %vm214_vm2, %v1524_v43  ;;  %2354 = vst.msk [vmem:[%s2638_s17 + $0x188] sm:$0xff] %vm214_vm2, %v1525_v18  ;;  %v1530_v2 = vmax.f32 %v1498_v23, %v1402_v42  ;;  %v1531_v36 = vmax.f32 %v1499_v27, %v1403_v63  ;;  %v1532_v9 = vmax.f32 %v1500_v29, %v1404_v17  ;;  %v3358_v14 = vld [vmem:[#allocation2 + $0x69] sm:$0xff]  ;;  %v3362_v6 = vld [vmem:[#allocation2 + $0x80] sm:$0xff] }
  0xe6   : > { %1590 = vst.msk [vmem:[#allocation2 + $0xca] sm:$0xff] %vm214_vm2, %v1525_v18  ;;  %2355 = vst.msk [vmem:[%s2638_s17 + $0x190] sm:$0xff] %vm214_vm2, %v1526_v12  ;;  %v1533_v5 = vmax.f32 %v1501_v0, %v1405_v53  ;;  %v1534_v13 = vmax.f32 %v1502_v34, %v3268_v22  ;;  %v1535_v26 = vmax.f32 %v1503_v50, %v3270_v35  ;;  %v3338_v31 = vld [vmem:[#allocation2 + $0x38] sm:$0xff]  ;;  %v3370_v63 = vld [vmem:[#allocation2 + $0x81] sm:$0xff] }
  0xe7   : > { %1591 = vst.msk [vmem:[#allocation2 + $0xda] sm:$0xff] %vm214_vm2, %v1526_v12  ;;  %2356 = vst.msk [vmem:[%s2638_s17 + $0x198] sm:$0xff] %vm214_vm2, %v1527_v20  ;;  %v1536_v3 = vmax.f32 %v1504_v16, %v1408_v47  ;;  %v1537_v4 = vmax.f32 %v1505_v62, %v1409_v51  ;;  %v1474_v54 = vmax.f32 %v3268_v22, %v1408_v47  ;;  %v3344_v32 = vld [vmem:[#allocation2 + $0x50] sm:$0xff]  ;;  %v3350_v37 = vld [vmem:[#allocation2 + $0x39] sm:$0xff] }
  0xe8   : > { %1592 = vst.msk [vmem:[#allocation2 + $0xe2] sm:$0xff] %vm214_vm2, %v1527_v20  ;;  %2357 = vst.msk [vmem:[%s2638_s17 + $0x1a0] sm:$0xff] %vm214_vm2, %v1528_v25  ;;  %v1475_v24 = vmax.f32 %v3270_v35, %v1409_v51  ;;  %v3354_v60 = vld [vmem:[#allocation2 + $0x51] sm:$0xff]  ;;  %v3368_v42 = vld [vmem:[#allocation2 + $0x79] sm:$0xff] }
  0xe9   : > { %1593 = vst.msk [vmem:[#allocation2 + $0xf2] sm:$0xff] %vm214_vm2, %v1528_v25  ;;  %2358 = vst.msk [vmem:[%s2638_s17 + $0x1a8] sm:$0xff] %vm214_vm2, %v1529_v40  ;;  %v1506_v45 = vmax.f32 %v1470_v38, %v1474_v54  ;;  %v3364_v15 = vld [vmem:[#allocation2 + $0x90] sm:$0xff]  ;;  %v3366_v39 = vld [vmem:[#allocation2 + $0x98] sm:$0xff] }
  0xea   : > { %1594 = vst.msk [vmem:[#allocation2 + $0xfa] sm:$0xff] %vm214_vm2, %v1529_v40  ;;  %2359 = vst.msk [vmem:[%s2638_s17 + $0x1b0] sm:$0xff] %vm214_vm2, %v1530_v2  ;;  %v1507_v46 = vmax.f32 %v1471_v11, %v1475_v24  ;;  %v3372_v17 = vld [vmem:[#allocation2 + $0x91] sm:$0xff]  ;;  %v3374_v59 = vld [vmem:[#allocation2 + $0x99] sm:$0xff] }
  0xeb   : > { %1595 = vst.msk [vmem:[#allocation2 + $0x10a] sm:$0xff] %vm214_vm2, %v1530_v2  ;;  %2360 = vst.msk [vmem:[%s2638_s17 + $0x1b8] sm:$0xff] %vm214_vm2, %v1531_v36  ;;  %v1538_v49 = vmax.f32 %v1506_v45, %v1410_v48  ;;  %v3376_v21 = vld [vmem:[#allocation2 + $0xa8] sm:$0xff]  ;;  %v3378_v43 = vld [vmem:[#allocation2 + $0xb0] sm:$0xff] }
  0xec   : > { %1596 = vst.msk [vmem:[#allocation2 + $0x112] sm:$0xff] %vm214_vm2, %v1531_v36  ;;  %2361 = vst.msk [vmem:[%s2638_s17 + $0x1c0] sm:$0xff] %vm214_vm2, %v1532_v9  ;;  %v1539_v10 = vmax.f32 %v1507_v46, %v1411_v28  ;;  %v3380_v18 = vld [vmem:[#allocation2 + $0xc0] sm:$0xff]  ;;  %v3384_v22 = vld [vmem:[#allocation2 + $0xa9] sm:$0xff] }
  0xed   : > { %1597 = vst.msk [vmem:[#allocation2 + $0x122] sm:$0xff] %vm214_vm2, %v1532_v9  ;;  %2362 = vst.msk [vmem:[%s2638_s17 + $0x1c8] sm:$0xff] %vm214_vm2, %v1533_v5  ;;  %v3382_v53 = vld [vmem:[#allocation2 + $0xc8] sm:$0xff]  ;;  %v3386_v35 = vld [vmem:[#allocation2 + $0xb1] sm:$0xff] }
  0xee   : > { %1598 = vst.msk [vmem:[#allocation2 + $0x12a] sm:$0xff] %vm214_vm2, %v1533_v5  ;;  %2363 = vst.msk [vmem:[%s2638_s17 + $0x1d0] sm:$0xff] %vm214_vm2, %v1534_v13  ;;  %v3388_v12 = vld [vmem:[#allocation2 + $0xc1] sm:$0xff]  ;;  %v3390_v20 = vld [vmem:[#allocation2 + $0xc9] sm:$0xff] }
  0xef   : > { %1599 = vst.msk [vmem:[#allocation2 + $0x13a] sm:$0xff] %vm214_vm2, %v1534_v13  ;;  %2364 = vst.msk [vmem:[%s2638_s17 + $0x1d8] sm:$0xff] %vm214_vm2, %v1535_v26  ;;  %v3392_v25 = vld [vmem:[#allocation2 + $0xd8] sm:$0xff]  ;;  %v3394_v40 = vld [vmem:[#allocation2 + $0xe0] sm:$0xff] }
  0xf0   : > { %1600 = vst.msk [vmem:[#allocation2 + $0x142] sm:$0xff] %vm214_vm2, %v1535_v26  ;;  %2365 = vst.msk [vmem:[%s2638_s17 + $0x1e0] sm:$0xff] %vm214_vm2, %v1536_v3  ;;  %v3396_v44 = vld [vmem:[#allocation2 + $0xf0] sm:$0xff]  ;;  %v3400_v55 = vld [vmem:[#allocation2 + $0xd9] sm:$0xff] }
  0xf1   : > { %1601 = vst.msk [vmem:[#allocation2 + $0x152] sm:$0xff] %vm214_vm2, %v1536_v3  ;;  %2366 = vst.msk [vmem:[%s2638_s17 + $0x1e8] sm:$0xff] %vm214_vm2, %v1537_v4  ;;  %v3398_v41 = vld [vmem:[#allocation2 + $0xf8] sm:$0xff]  ;;  %v3402_v58 = vld [vmem:[#allocation2 + $0xe1] sm:$0xff] }
  0xf2   : > { %1602 = vst.msk [vmem:[#allocation2 + $0x15a] sm:$0xff] %vm214_vm2, %v1537_v4  ;;  %2367 = vst.msk [vmem:[%s2638_s17 + $0x1f0] sm:$0xff] %vm214_vm2, %v1538_v49  ;;  %v3404_v38 = vld [vmem:[#allocation2 + $0xf1] sm:$0xff]  ;;  %v3406_v11 = vld [vmem:[#allocation2 + $0xf9] sm:$0xff] }
  0xf3   : > { %1603 = vst.msk [vmem:[#allocation2 + $0x16a] sm:$0xff] %vm214_vm2, %v1538_v49  ;;  %2368 = vst.msk [vmem:[%s2638_s17 + $0x1f8] sm:$0xff] %vm214_vm2, %v1539_v10  ;;  %v3408_v57 = vld [vmem:[#allocation2 + $0x108] sm:$0xff]  ;;  %v3410_v7 = vld [vmem:[#allocation2 + $0x110] sm:$0xff] }
  0xf4   : > { %1604 = vst.msk [vmem:[#allocation2 + $0x172] sm:$0xff] %vm214_vm2, %v1539_v10  ;;  %4010 = vst [vmem:[#allocation5_spill] sm:$0xff] %v3374_v59  ;;  %v3412_v23 = vld [vmem:[#allocation2 + $0x120] sm:$0xff]  ;;  %v3422_v50 = vld [vmem:[#allocation2 + $0x109] sm:$0xff] }
  0xf5   : > { %4011 = vst [vmem:[#allocation4_spill] sm:$0xff] %v3380_v18  ;;  %4012 = vst [vmem:[#allocation6_spill] sm:$0xff] %v3382_v53  ;;  %v3418_v0 = vld [vmem:[#allocation2 + $0x128] sm:$0xff]  ;;  %v3424_v16 = vld [vmem:[#allocation2 + $0x32] sm:$0xff] }
  0xf6   : > { %4013 = vst [vmem:[#allocation9_spill] sm:$0xff] %v3386_v35  ;;  %4014 = vst [vmem:[#allocation7_spill] sm:$0xff] %v3388_v12  ;;  %v3420_v34 = vld [vmem:[#allocation2 + $0x138] sm:$0xff]  ;;  %v3428_v2 = vld [vmem:[#allocation2 + $0x4a] sm:$0xff] }
  0xf7   : > { %4015 = vst [vmem:[#allocation10_spill] sm:$0xff] %v3390_v20  ;;  %4016 = vst [vmem:[#allocation8_spill] sm:$0xff] %v3394_v40  ;;  %v3426_v62 = vld [vmem:[#allocation2 + $0x3a] sm:$0xff]  ;;  %v3438_v51 = vld [vmem:[#allocation2 + $0x111] sm:$0xff] }
  0xf8   : > { %4017 = vst [vmem:[#allocation11_spill] sm:$0xff] %v3396_v44  ;;  %4018 = vst [vmem:[#allocation12_spill] sm:$0xff] %v3398_v41  ;;  %v3440_v13 = vld [vmem:[#allocation2 + $0x121] sm:$0xff]  ;;  %v3442_v26 = vld [vmem:[#allocation2 + $0x129] sm:$0xff] }
  0xf9   : > { %4019 = vst [vmem:[#allocation15_spill] sm:$0xff] %v3402_v58  ;;  %4020 = vst [vmem:[#allocation13_spill] sm:$0xff] %v3404_v38  ;;  %v3444_v3 = vld [vmem:[#allocation2 + $0x52] sm:$0xff]  ;;  %v3446_v4 = vld [vmem:[#allocation2 + $0x62] sm:$0xff] }
  0xfa   : > { %4021 = vst [vmem:[#allocation16_spill] sm:$0xff] %v3406_v11  ;;  %4022 = vst [vmem:[#allocation14_spill] sm:$0xff] %v3408_v57  ;;  %v3448_v54 = vld [vmem:[#allocation2 + $0x6a] sm:$0xff]  ;;  %v3458_v28 = vld [vmem:[#allocation2 + $0x140] sm:$0xff] }
  0xfb   : > { %4023 = vst [vmem:[#allocation17_spill] sm:$0xff] %v3410_v7  ;;  %4024 = vst [vmem:[#allocation18_spill] sm:$0xff] %v3412_v23  ;;  %v3460_v49 = vld [vmem:[#allocation2 + $0x139] sm:$0xff]  ;;  %v3462_v10 = vld [vmem:[#allocation2 + $0x141] sm:$0xff] }
  0xfc   : > { %4025 = vst [vmem:[#allocation21_spill] sm:$0xff] %v3418_v0  ;;  %4026 = vst [vmem:[#allocation19_spill] sm:$0xff] %v3420_v34  ;;  %v3464_v47 = vld [vmem:[#allocation2 + $0x7a] sm:$0xff]  ;;  %v3466_v5 = vld [vmem:[#allocation2 + $0x82] sm:$0xff] }
  0xfd   : > { %4027 = vst [vmem:[#allocation22_spill] sm:$0xff] %v3422_v50  ;;  %4028 = vst [vmem:[#allocation20_spill] sm:$0xff] %v3438_v51  ;;  %v3468_v24 = vld [vmem:[#allocation2 + $0x92] sm:$0xff]  ;;  %v3478_v36 = vld [vmem:[#allocation2 + $0x9a] sm:$0xff] }
  0xfe   : > { %4029 = vst [vmem:[#allocation24_spill] sm:$0xff] %v3440_v13  ;;  %4030 = vst [vmem:[#allocation28_spill] sm:$0xff] %v3442_v26  ;;  %v3480_v29 = vld [vmem:[#allocation2 + $0xaa] sm:$0xff]  ;;  %v3482_v27 = vld [vmem:[#allocation2 + $0xb2] sm:$0xff] }
  0xff   : > { %4031 = vst [vmem:[#allocation29_spill] sm:$0xff] %v3458_v28  ;;  %4032 = vst [vmem:[#allocation23_spill] sm:$0xff] %v3460_v49  ;;  %v3492_v12 = vld [vmem:[#allocation2 + $0xc2] sm:$0xff]  ;;  %v3494_v9 = vld [vmem:[#allocation2 + $0xca] sm:$0xff] }
 0x100   : > { %4033 = vst [vmem:[#allocation25_spill] sm:$0xff] %v3462_v10  ;;  %v3496_v20 = vld [vmem:[#allocation2 + $0xda] sm:$0xff]  ;;  %v1707_v35 = vld [vmem:[#allocation2 + $0x4b] sm:$0xff]  ;;  %v3506_v11 = vld [vmem:[#allocation2 + $0xe2] sm:$0xff] }
 0x101   : > { %v1705_v53 = vld [vmem:[#allocation2 + $0x33] sm:$0xff]  ;;  %v1706_v18 = vld [vmem:[#allocation2 + $0x3b] sm:$0xff]  ;;  %v1709_v58 = vld [vmem:[#allocation2 + $0x63] sm:$0xff]  ;;  %v1803_v46 = vmax.f32 %v3428_v2, %v1707_v35 }
 0x102   : > { %v3508_v41 = vld [vmem:[#allocation2 + $0xf2] sm:$0xff]  ;;  %v3510_v38 = vld [vmem:[#allocation2 + $0xfa] sm:$0xff]  ;;  %v1801_v45 = vmax.f32 %v3424_v16, %v1705_v53  ;;  %v1802_v51 = vmax.f32 %v3426_v62, %v1706_v18  ;;  %v3517_v13 = vld [vmem:[#allocation2 + $0x10a] sm:$0xff]  ;;  %v1805_v18 = vmax.f32 %v3446_v4, %v1709_v58 }
 0x103   : > { %v1708_v44 = vld [vmem:[#allocation2 + $0x53] sm:$0xff]  ;;  %v1710_v40 = vld [vmem:[#allocation2 + $0x6b] sm:$0xff]  ;;  %v3521_v26 = vld [vmem:[#allocation2 + $0x122] sm:$0xff] }
 0x104   : > { %v3519_v48 = vld [vmem:[#allocation2 + $0x112] sm:$0xff]  ;;  %v1711_v0 = vld [vmem:[#allocation2 + $0x7b] sm:$0xff]  ;;  %v3523_v23 = vld [vmem:[#allocation2 + $0x83] sm:$0xff]  ;;  %v1804_v53 = vmax.f32 %v3444_v3, %v1708_v44  ;;  %v1806_v35 = vmax.f32 %v3448_v54, %v1710_v40  ;;  %v4034_v40 = vmax.f32 %v3336_v52, %v3340_v8 }
 0x105   : > { %v3525_v7 = vld [vmem:[#allocation2 + $0x93] sm:$0xff]  ;;  %v3532_v16 = vld [vmem:[#allocation2 + $0x12a] sm:$0xff]  ;;  %v3536_v2 = vld [vmem:[#allocation2 + $0x142] sm:$0xff]  ;;  %v1807_v57 = vmax.f32 %v3464_v47, %v1711_v0  ;;  %v1808_v59 = vmax.f32 %v3466_v5, %v3523_v23 }
 0x106   : > { %v3534_v62 = vld [vmem:[#allocation2 + $0x13a] sm:$0xff]  ;;  %v1715_v34 = vld [vmem:[#allocation2 + $0xab] sm:$0xff]  ;;  %v1809_v44 = vmax.f32 %v3468_v24, %v3525_v7  ;;  %v1833_v58 = vmax.f32 %v4034_v40, %v1801_v45  ;;  %v3548_v3 = vld [vmem:[#allocation2 + $0xc3] sm:$0xff]  ;;  %v4035_v7 = vmax.f32 %v3338_v31, %v3350_v37  ;;  %v4041_v40 = vmax.f32 %v3348_v19, %v3358_v14 }
 0x107   : > { %v1714_v49 = vld [vmem:[#allocation2 + $0x9b] sm:$0xff]  ;;  %v3538_v50 = vld [vmem:[#allocation2 + $0xb3] sm:$0xff]  ;;  %v3550_v4 = vld [vmem:[#allocation2 + $0xcb] sm:$0xff]  ;;  %v1811_v0 = vmax.f32 %v3480_v29, %v1715_v34  ;;  %v1813_v24 = vmax.f32 %v3492_v12, %v3548_v3  ;;  %v4042_v12 = vmax.f32 %v3360_v61, %v3368_v42  ;;  %v4044_v61 = vmax.f32 %v3364_v15, %v3372_v17 }
 0x108   : > { %v3552_v54 = vld [vmem:[#allocation2 + $0xdb] sm:$0xff]  ;;  %v1810_v10 = vmax.f32 %v3478_v36, %v1714_v49  ;;  %v1812_v23 = vmax.f32 %v3482_v27, %v3538_v50  ;;  %v1834_v5 = vmax.f32 %v4035_v7, %v1802_v51  ;;  %v3561_v47 = vld [vmem:[#allocation2 + $0xe3] sm:$0xff]  ;;  %v3563_v52 = vld [vmem:[#allocation2 + $0xf3] sm:$0xff]  ;;  %v1814_v36 = vmax.f32 %v3494_v9, %v3550_v4 }
 0x109   : > { %v3565_v8 = vld [vmem:[#allocation2 + $0xfb] sm:$0xff]  ;;  %v1815_v29 = vmax.f32 %v3496_v20, %v3552_v54  ;;  %v4036_v27 = vmax.f32 %v3342_v30, %v3352_v56  ;;  %v3576_v37 = vld [vmem:[#allocation2 + $0x10b] sm:$0xff]  ;;  %v3578_v34 = vld [vmem:[#allocation2 + $0x113] sm:$0xff]  ;;  %v4037_v20 = vmax.f32 %v3344_v32, %v3354_v60  ;;  %v4040_v4 = vmax.f32 %v3346_v33, %v3356_v1 }
 0x10a   : > { %v3580_v50 = vld [vmem:[#allocation2 + $0x123] sm:$0xff]  ;;  %v3591_v56 = vld [vmem:[#allocation2 + $0x12b] sm:$0xff]  ;;  %v3593_v45 = vld [vmem:[#allocation2 + $0x13b] sm:$0xff]  ;;  %v1838_v3 = vmax.f32 %v4041_v40, %v1806_v35  ;;  %v1839_v7 = vmax.f32 %v4042_v12, %v1807_v57  ;;  %v1841_v42 = vmax.f32 %v4044_v61, %v1809_v44  ;;  %v4065_v61 = vmax.f32 %v3510_v38, %v3565_v8 }
 0x10b   : > { %v1835_v31 = vmax.f32 %v4036_v27, %v1803_v46  ;;  %v1836_v30 = vmax.f32 %v4037_v20, %v1804_v53  ;;  %4038 = vst [vmem:[#allocation30_spill] sm:$0xff] %v3593_v45  ;;  %v3595_v46 = vld [vmem:[#allocation2 + $0x143] sm:$0xff]  ;;  %v1837_v32 = vmax.f32 %v4040_v4, %v1805_v18  ;;  %v1737_v60 = vld [vmem:[#allocation2 + $0x34] sm:$0xff]  ;;  %v1739_v54 = vld [vmem:[#allocation2 + $0x4c] sm:$0xff]  ;;  %v4043_v20 = vmax.f32 %v3362_v6, %v3370_v63 }
 0x10c   : > { %4039 = vst [vmem:[#allocation26_spill] sm:$0xff] %v3595_v46  ;;  %v1738_v53 = vld [vmem:[#allocation2 + $0x3c] sm:$0xff]  ;;  %v1740_v49 = vld [vmem:[#allocation2 + $0x54] sm:$0xff]  ;;  %v1741_v9 = vld [vmem:[#allocation2 + $0x64] sm:$0xff]  ;;  %v1865_v1 = vmax.f32 %v1833_v58, %v1737_v60  ;;  %v4047_v6 = vmax.f32 %v3376_v21, %v3384_v22  ;;  %v4073_v8 = vmax.f32 %v3519_v48, %v3578_v34 }
 0x10d   : > { %v1742_v33 = vld [vmem:[#allocation2 + $0x6c] sm:$0xff]  ;;  %v1866_v18 = vmax.f32 %v1834_v5, %v1738_v53  ;;  %v1867_v4 = vmax.f32 %v1835_v31, %v1739_v54  ;;  %v1743_v51 = vld [vmem:[#allocation2 + $0x7c] sm:$0xff]  ;;  %v1868_v28 = vmax.f32 %v1836_v30, %v1740_v49  ;;  %v1869_v27 = vmax.f32 %v1837_v32, %v1741_v9  ;;  %v1744_v19 = vld [vmem:[#allocation2 + $0x84] sm:$0xff] }
 0x10e   : > { %v1870_v45 = vmax.f32 %v1838_v3, %v1742_v33  ;;  %v1840_v46 = vmax.f32 %v4043_v20, %v1808_v59  ;;  %v1745_v14 = vld [vmem:[#allocation2 + $0x94] sm:$0xff]  ;;  %1897 = vst.msk [vmem:[#allocation3 + $0x40] sm:$0xff] %vm214_vm2, %v1865_v1  ;;  %v1871_v35 = vmax.f32 %v1839_v7, %v1743_v51  ;;  %v4045_v57 = vld [vmem:[#allocation5_spill] sm:$0xff]  ;;  %v1843_v63 = vmax.f32 %v4047_v6, %v1811_v0  ;;  %v1746_v59 = vld [vmem:[#allocation2 + $0x9c] sm:$0xff] }
 0x10f   : > { %1898 = vst.msk [vmem:[#allocation3 + $0x48] sm:$0xff] %vm214_vm2, %v1866_v18  ;;  %1899 = vst.msk [vmem:[#allocation3 + $0x50] sm:$0xff] %vm214_vm2, %v1867_v4  ;;  %v4046_v58 = vmax.f32 %v3366_v39, %v4045_v57  ;;  %v1747_v31 = vld [vmem:[#allocation2 + $0xac] sm:$0xff]  ;;  %v1748_v12 = vld [vmem:[#allocation2 + $0xb4] sm:$0xff]  ;;  %v1873_v32 = vmax.f32 %v1841_v42, %v1745_v14  ;;  %v4069_v6 = vmax.f32 %v3517_v13, %v3576_v37 }
 0x110   : > { %1900 = vst.msk [vmem:[#allocation3 + $0x58] sm:$0xff] %vm214_vm2, %v1868_v28  ;;  %1901 = vst.msk [vmem:[#allocation3 + $0x60] sm:$0xff] %vm214_vm2, %v1869_v27  ;;  %v1872_v51 = vmax.f32 %v1840_v46, %v1744_v19  ;;  %v4048_v15 = vld [vmem:[#allocation9_spill] sm:$0xff]  ;;  %v4050_v39 = vld [vmem:[#allocation4_spill] sm:$0xff]  ;;  %v1875_v46 = vmax.f32 %v1843_v63, %v1747_v31  ;;  %v4057_v27 = vmax.f32 %v3506_v11, %v3561_v47 }
 0x111   : > { %v1842_v5 = vmax.f32 %v4046_v58, %v1810_v10  ;;  %1902 = vst.msk [vmem:[#allocation3 + $0x68] sm:$0xff] %vm214_vm2, %v1870_v45  ;;  %v4049_v17 = vmax.f32 %v3378_v43, %v4048_v15  ;;  %v4051_v10 = vld [vmem:[#allocation7_spill] sm:$0xff]  ;;  %v4053_v21 = vld [vmem:[#allocation6_spill] sm:$0xff]  ;;  %v1749_v40 = vld [vmem:[#allocation2 + $0xc4] sm:$0xff]  ;;  %v4056_v43 = vmax.f32 %v3392_v25, %v3400_v55  ;;  %v4061_v55 = vmax.f32 %v3508_v41, %v3563_v52 }
 0x112   : > { %v4052_v9 = vmax.f32 %v4050_v39, %v4051_v10  ;;  %v4054_v22 = vld [vmem:[#allocation10_spill] sm:$0xff]  ;;  %v1751_v28 = vld [vmem:[#allocation2 + $0xdc] sm:$0xff]  ;;  %1903 = vst.msk [vmem:[#allocation3 + $0x70] sm:$0xff] %vm214_vm2, %v1871_v35  ;;  %v1752_v60 = vld [vmem:[#allocation2 + $0xe4] sm:$0xff] }
 0x113   : > { %v1844_v44 = vmax.f32 %v4049_v17, %v1812_v23  ;;  %v4055_v0 = vmax.f32 %v4053_v21, %v4054_v22  ;;  %v1750_v3 = vld [vmem:[#allocation2 + $0xcc] sm:$0xff]  ;;  %v1874_v45 = vmax.f32 %v1842_v5, %v1746_v59  ;;  %v1847_v23 = vmax.f32 %v4056_v43, %v1815_v29  ;;  %v1753_v53 = vld [vmem:[#allocation2 + $0xf4] sm:$0xff]  ;;  %v1754_v54 = vld [vmem:[#allocation2 + $0xfc] sm:$0xff]  ;;  %1904 = vst.msk [vmem:[#allocation3 + $0x78] sm:$0xff] %vm214_vm2, %v1872_v51 }
 0x114   : > { %v1845_v30 = vmax.f32 %v4052_v9, %v1813_v24  ;;  %v4058_v20 = vld [vmem:[#allocation8_spill] sm:$0xff]  ;;  %v4059_v33 = vld [vmem:[#allocation15_spill] sm:$0xff]  ;;  %v1755_v4 = vld [vmem:[#allocation2 + $0x10c] sm:$0xff]  ;;  %1905 = vst.msk [vmem:[#allocation3 + $0x80] sm:$0xff] %vm214_vm2, %v1873_v32  ;;  %v4081_v21 = vmax.f32 %v3532_v16, %v3591_v56 }
 0x115   : > { %v1846_v49 = vmax.f32 %v4055_v0, %v1814_v36  ;;  %v1876_v24 = vmax.f32 %v1844_v44, %v1748_v12  ;;  %v4060_v1 = vmax.f32 %v4058_v20, %v4059_v33  ;;  %v1756_v19 = vld [vmem:[#allocation2 + $0x114] sm:$0xff]  ;;  %v1757_v14 = vld [vmem:[#allocation2 + $0x124] sm:$0xff]  ;;  %1906 = vst.msk [vmem:[#allocation3 + $0x88] sm:$0xff] %vm214_vm2, %v1874_v45  ;;  %1907 = vst.msk [vmem:[#allocation3 + $0x90] sm:$0xff] %vm214_vm2, %v1875_v46 }
 0x116   : > { %v1877_v7 = vmax.f32 %v1845_v30, %v1749_v40  ;;  %v1879_v25 = vmax.f32 %v1847_v23, %v1751_v28  ;;  %v4062_v29 = vld [vmem:[#allocation11_spill] sm:$0xff]  ;;  %v4063_v35 = vld [vmem:[#allocation13_spill] sm:$0xff]  ;;  %v4066_v42 = vld [vmem:[#allocation12_spill] sm:$0xff]  ;;  %v4077_v44 = vmax.f32 %v3521_v26, %v3580_v50 }
 0x117   : > { %v1878_v36 = vmax.f32 %v1846_v49, %v1750_v3  ;;  %v1848_v18 = vmax.f32 %v4060_v1, %v4057_v27  ;;  %v4064_v11 = vmax.f32 %v4062_v29, %v4063_v35  ;;  %v4067_v57 = vld [vmem:[#allocation16_spill] sm:$0xff]  ;;  %v4070_v63 = vld [vmem:[#allocation14_spill] sm:$0xff]  ;;  %1908 = vst.msk [vmem:[#allocation3 + $0x98] sm:$0xff] %vm214_vm2, %v1876_v24  ;;  %v4074_v15 = vld [vmem:[#allocation17_spill] sm:$0xff] }
 0x118   : > { %v4068_v58 = vmax.f32 %v4066_v42, %v4067_v57  ;;  %v4071_v59 = vld [vmem:[#allocation22_spill] sm:$0xff]  ;;  %v1605_v51 = vld [vmem:[#allocation2] sm:$0xff]  ;;  %1909 = vst.msk [vmem:[#allocation3 + $0xa0] sm:$0xff] %vm214_vm2, %v1877_v7  ;;  %v4082_v22 = vld [vmem:[#allocation21_spill] sm:$0xff] }
 0x119   : > { %v1849_v47 = vmax.f32 %v4064_v11, %v4061_v55  ;;  %v4072_v31 = vmax.f32 %v4070_v63, %v4071_v59  ;;  %v1637_v41 = vld [vmem:[#allocation2 + $0x1] sm:$0xff]  ;;  %1910 = vst.msk [vmem:[#allocation3 + $0xa8] sm:$0xff] %vm214_vm2, %v1878_v36  ;;  %v1880_v38 = vmax.f32 %v1848_v18, %v1752_v60  ;;  %v4078_v39 = vld [vmem:[#allocation18_spill] sm:$0xff]  ;;  %1911 = vst.msk [vmem:[#allocation3 + $0xb0] sm:$0xff] %vm214_vm2, %v1879_v25 }
 0x11a   : > { %v1850_v5 = vmax.f32 %v4068_v58, %v4065_v61  ;;  %v1669_v52 = vld [vmem:[#allocation2 + $0x2] sm:$0xff]  ;;  %v1758_v3 = vld [vmem:[#allocation2 + $0x12c] sm:$0xff]  ;;  %v1765_v34 = vmax.f32 %v1605_v51, %v1637_v41  ;;  %v1607_v33 = vld [vmem:[#allocation2 + $0x18] sm:$0xff] }
 0x11b   : > { %v1851_v12 = vmax.f32 %v4072_v31, %v4069_v6  ;;  %v4075_v17 = vld [vmem:[#allocation20_spill] sm:$0xff]  ;;  %v1606_v28 = vld [vmem:[#allocation2 + $0x8] sm:$0xff]  ;;  %v1881_v32 = vmax.f32 %v1849_v47, %v1753_v53  ;;  %1912 = vst.msk [vmem:[#allocation3 + $0xb8] sm:$0xff] %vm214_vm2, %v1880_v38  ;;  %v4085_v53 = vld [vmem:[#allocation30_spill] sm:$0xff] }
 0x11c   : > { %v4076_v13 = vmax.f32 %v4074_v15, %v4075_v17  ;;  %v4079_v10 = vld [vmem:[#allocation24_spill] sm:$0xff]  ;;  %v1882_v45 = vmax.f32 %v1850_v5, %v1754_v54  ;;  %v1638_v23 = vld [vmem:[#allocation2 + $0x9] sm:$0xff]  ;;  %v4086_v54 = vmax.f32 %v3534_v62, %v4085_v53  ;;  %v4087_v18 = vld [vmem:[#allocation19_spill] sm:$0xff] }
 0x11d   : > { %v4080_v9 = vmax.f32 %v4078_v39, %v4079_v10  ;;  %v4083_v0 = vld [vmem:[#allocation28_spill] sm:$0xff]  ;;  %v1883_v26 = vmax.f32 %v1851_v12, %v1755_v4  ;;  %v1670_v60 = vld [vmem:[#allocation2 + $0xa] sm:$0xff]  ;;  %v1766_v27 = vmax.f32 %v1606_v28, %v1638_v23  ;;  %1913 = vst.msk [vmem:[#allocation3 + $0xc0] sm:$0xff] %vm214_vm2, %v1881_v32  ;;  %v4088_v4 = vld [vmem:[#allocation23_spill] sm:$0xff] }
 0x11e   : > { %v1852_v37 = vmax.f32 %v4076_v13, %v4073_v8  ;;  %v4084_v49 = vmax.f32 %v4082_v22, %v4083_v0  ;;  %v1701_v48 = vld [vmem:[#allocation2 + $0x3] sm:$0xff]  ;;  %v1702_v24 = vld [vmem:[#allocation2 + $0xb] sm:$0xff]  ;;  %v1639_v1 = vld [vmem:[#allocation2 + $0x19] sm:$0xff]  ;;  %1914 = vst.msk [vmem:[#allocation3 + $0xc8] sm:$0xff] %vm214_vm2, %v1882_v45  ;;  %v4089_v25 = vmax.f32 %v4087_v18, %v4088_v4 }
 0x11f   : > { %v1853_v30 = vmax.f32 %v4080_v9, %v4077_v44  ;;  %v1759_v50 = vld [vmem:[#allocation2 + $0x13c] sm:$0xff]  ;;  %v1760_v46 = vld [vmem:[#allocation2 + $0x144] sm:$0xff]  ;;  %v1797_v43 = vmax.f32 %v1669_v52, %v1701_v48  ;;  %v1798_v20 = vmax.f32 %v1670_v60, %v1702_v24  ;;  %1915 = vst.msk [vmem:[#allocation3 + $0xd0] sm:$0xff] %vm214_vm2, %v1883_v26  ;;  %v1734_v42 = vld [vmem:[#allocation2 + $0xc] sm:$0xff]  ;;  %v1767_v5 = vmax.f32 %v1607_v33, %v1639_v1 }
 0x120   : > { %v1854_v40 = vmax.f32 %v4084_v49, %v4081_v21  ;;  %v1884_v16 = vmax.f32 %v1852_v37, %v1756_v19  ;;  %v1733_v36 = vld [vmem:[#allocation2 + $0x4] sm:$0xff]  ;;  %v1855_v19 = vmax.f32 %v4089_v25, %v4086_v54  ;;  %v1671_v57 = vld [vmem:[#allocation2 + $0x1a] sm:$0xff]  ;;  %v1633_v8 = vld [vmem:[#allocation2 + $0x150] sm:$0xff] }
 0x121   : > { %v1885_v56 = vmax.f32 %v1853_v30, %v1757_v14  ;;  %v4090_v14 = vld [vmem:[#allocation26_spill] sm:$0xff]  ;;  %v4092_v29 = vld [vmem:[#allocation29_spill] sm:$0xff]  ;;  %v1829_v61 = vmax.f32 %v1765_v34, %v1797_v43  ;;  %v1703_v58 = vld [vmem:[#allocation2 + $0x1b] sm:$0xff]  ;;  %v1830_v62 = vmax.f32 %v1766_v27, %v1798_v20 }
 0x122   : > { %v1886_v7 = vmax.f32 %v1854_v40, %v1758_v3  ;;  %v4091_v55 = vmax.f32 %v3536_v2, %v4090_v14  ;;  %v4093_v35 = vld [vmem:[#allocation25_spill] sm:$0xff]  ;;  %1916 = vst.msk [vmem:[#allocation3 + $0xd8] sm:$0xff] %vm214_vm2, %v1884_v16  ;;  %v1799_v6 = vmax.f32 %v1671_v57, %v1703_v58  ;;  %v1608_v63 = vld [vmem:[#allocation2 + $0x20] sm:$0xff]  ;;  %v1887_v31 = vmax.f32 %v1855_v19, %v1759_v50  ;;  %v1665_v37 = vld [vmem:[#allocation2 + $0x151] sm:$0xff] }
 0x123   : > { %v4094_v11 = vmax.f32 %v4092_v29, %v4093_v35  ;;  %1917 = vst.msk [vmem:[#allocation3 + $0xe0] sm:$0xff] %vm214_vm2, %v1885_v56  ;;  %v1640_v59 = vld [vmem:[#allocation2 + $0x21] sm:$0xff]  ;;  %v1861_v51 = vmax.f32 %v1829_v61, %v1733_v36  ;;  %v1862_v15 = vmax.f32 %v1830_v62, %v1734_v42  ;;  %v1697_v44 = vld [vmem:[#allocation2 + $0x152] sm:$0xff]  ;;  %v1793_v9 = vmax.f32 %v1633_v8, %v1665_v37  ;;  %v1667_v23 = vld [vmem:[#allocation2 + $0x169] sm:$0xff] }
 0x124   : > { %1918 = vst.msk [vmem:[#allocation3 + $0xe8] sm:$0xff] %vm214_vm2, %v1886_v7  ;;  %v1672_v2 = vld [vmem:[#allocation2 + $0x22] sm:$0xff]  ;;  %v1768_v38 = vmax.f32 %v1608_v63, %v1640_v59  ;;  %v1831_v17 = vmax.f32 %v1767_v5, %v1799_v6  ;;  %1919 = vst.msk [vmem:[#allocation3 + $0xf0] sm:$0xff] %vm214_vm2, %v1887_v31  ;;  %v1729_v39 = vld [vmem:[#allocation2 + $0x153] sm:$0xff] }
 0x125   : > { %v1856_v47 = vmax.f32 %v4094_v11, %v4091_v55  ;;  %v1735_v41 = vld [vmem:[#allocation2 + $0x1c] sm:$0xff]  ;;  %1893 = vst.msk [vmem:[#allocation3 + $0x20] sm:$0xff] %vm214_vm2, %v1861_v51  ;;  %v1736_v10 = vld [vmem:[#allocation2 + $0x24] sm:$0xff]  ;;  %v1825_v30 = vmax.f32 %v1697_v44, %v1729_v39  ;;  %1894 = vst.msk [vmem:[#allocation3 + $0x28] sm:$0xff] %vm214_vm2, %v1862_v15 }
 0x126   : > { %v1704_v52 = vld [vmem:[#allocation2 + $0x23] sm:$0xff]  ;;  %v1634_v21 = vld [vmem:[#allocation2 + $0x158] sm:$0xff]  ;;  %v1863_v0 = vmax.f32 %v1831_v17, %v1735_v41  ;;  %v3724_v32 = vld [vmem:[#allocation3 + $0x10] sm:$0xff] }
 0x127   : > { %v1888_v12 = vmax.f32 %v1856_v47, %v1760_v46  ;;  %v1800_v13 = vmax.f32 %v1672_v2, %v1704_v52  ;;  %v1666_v22 = vld [vmem:[#allocation2 + $0x159] sm:$0xff]  ;;  %v3726_v45 = vld [vmem:[#allocation3 + $0x8] sm:$0xff]  ;;  %v1857_v50 = vmax.f32 %v1793_v9, %v1825_v30  ;;  %v1636_v36 = vld [vmem:[#allocation2 + $0x170] sm:$0xff] }
 0x128   : > { %v1761_v40 = vld [vmem:[#allocation2 + $0x154] sm:$0xff]  ;;  %v1794_v34 = vmax.f32 %v1634_v21, %v1666_v22  ;;  %v3722_v28 = vld [vmem:[#allocation3] sm:$0xff]  ;;  %v1635_v43 = vld [vmem:[#allocation2 + $0x168] sm:$0xff]  ;;  %1895 = vst.msk [vmem:[#allocation3 + $0x30] sm:$0xff] %vm214_vm2, %v1863_v0 }
 0x129   : > { %1920 = vst.msk [vmem:[#allocation3 + $0xf8] sm:$0xff] %vm214_vm2, %v1888_v12  ;;  %v1832_v49 = vmax.f32 %v1768_v38, %v1800_v13  ;;  %v1698_v3 = vld [vmem:[#allocation2 + $0x15a] sm:$0xff]  ;;  %v1699_v60 = vld [vmem:[#allocation2 + $0x16a] sm:$0xff]  ;;  %v1795_v7 = vmax.f32 %v1635_v43, %v1667_v23  ;;  %v1889_v27 = vmax.f32 %v1857_v50, %v1761_v40  ;;  %v1700_v53 = vld [vmem:[#allocation2 + $0x172] sm:$0xff]  ;;  %v2085_v11 = vmax.f32 %v3722_v28, %v3724_v32 }
 0x12a   : > { %v1730_v48 = vld [vmem:[#allocation2 + $0x15b] sm:$0xff]  ;;  %v1731_v56 = vld [vmem:[#allocation2 + $0x16b] sm:$0xff]  ;;  %v1732_v54 = vld [vmem:[#allocation2 + $0x173] sm:$0xff] }
 0x12b   : > { %v3728_v26 = vld [vmem:[#allocation3 + $0x18] sm:$0xff]  ;;  %v1826_v46 = vmax.f32 %v1698_v3, %v1730_v48  ;;  %v1864_v24 = vmax.f32 %v1832_v49, %v1736_v10  ;;  %v1827_v33 = vmax.f32 %v1699_v60, %v1731_v56  ;;  %v1763_v18 = vld [vmem:[#allocation2 + $0x16c] sm:$0xff]  ;;  %v1828_v25 = vmax.f32 %v1700_v53, %v1732_v54  ;;  %v3732_v19 = vld [vmem:[#allocation3 + $0x40] sm:$0xff]  ;;  %1921 = vst.msk [vmem:[#allocation3 + $0x100] sm:$0xff] %vm214_vm2, %v1889_v27 }
 0x12c   : > { %v1762_v16 = vld [vmem:[#allocation2 + $0x15c] sm:$0xff]  ;;  %v1668_v1 = vld [vmem:[#allocation2 + $0x171] sm:$0xff]  ;;  %v3734_v14 = vld [vmem:[#allocation3 + $0x48] sm:$0xff]  ;;  %v2086_v47 = vmax.f32 %v3726_v45, %v3728_v26 }
 0x12d   : > { %v1858_v20 = vmax.f32 %v1794_v34, %v1826_v46  ;;  %1896 = vst.msk [vmem:[#allocation3 + $0x38] sm:$0xff] %vm214_vm2, %v1864_v24  ;;  %v1796_v4 = vmax.f32 %v1636_v36, %v1668_v1  ;;  %v1859_v29 = vmax.f32 %v1795_v7, %v1827_v33  ;;  %v1764_v35 = vld [vmem:[#allocation2 + $0x174] sm:$0xff]  ;;  %v2057_v57 = vld [vmem:[#allocation3 + $0x60] sm:$0xff]  ;;  %v3747_v6 = vld [vmem:[#allocation3 + $0x68] sm:$0xff] }
 0x12e   : > { %v3741_v61 = vld [vmem:[#allocation3 + $0x50] sm:$0xff]  ;;  %v3743_v42 = vld [vmem:[#allocation3 + $0x58] sm:$0xff]  ;;  %v1989_v5 = vld [vmem:[#allocation3 + $0x20] sm:$0xff] }
 0x12f   : > { %v1890_v55 = vmax.f32 %v1858_v20, %v1762_v16  ;;  %v1860_v58 = vmax.f32 %v1796_v4, %v1828_v25  ;;  %v2121_v62 = vmax.f32 %v3732_v19, %v3741_v61  ;;  %v3751_v63 = vmax.f32 %v3734_v14, %v3743_v42  ;;  %v2059_v59 = vld [vmem:[#allocation3 + $0x70] sm:$0xff]  ;;  %v1990_v12 = vld [vmem:[#allocation3 + $0x28] sm:$0xff]  ;;  %v3756_v41 = vld [vmem:[#allocation3 + $0x78] sm:$0xff] }
 0x130   : > { %v2123_v2 = vmax.f32 %v3741_v61, %v2057_v57  ;;  %v1891_v31 = vmax.f32 %v1859_v29, %v1763_v18  ;;  %v2087_v51 = vmax.f32 %v3724_v32, %v1989_v5  ;;  %v3760_v52 = vmax.f32 %v3743_v42, %v3747_v6  ;;  %v2061_v38 = vld [vmem:[#allocation3 + $0x80] sm:$0xff]  ;;  %v2062_v13 = vld [vmem:[#allocation3 + $0x88] sm:$0xff]  ;;  %v2063_v44 = vld [vmem:[#allocation3 + $0x90] sm:$0xff] }
 0x131   : > { %1922 = vst.msk [vmem:[#allocation3 + $0x108] sm:$0xff] %vm214_vm2, %v1890_v55  ;;  %v2125_v8 = vmax.f32 %v2057_v57, %v2059_v59  ;;  %v1892_v15 = vmax.f32 %v1860_v58, %v1764_v35  ;;  %v2088_v17 = vmax.f32 %v3728_v26, %v1990_v12  ;;  %v2126_v37 = vmax.f32 %v3747_v6, %v3756_v41  ;;  %v2064_v10 = vld [vmem:[#allocation3 + $0x98] sm:$0xff]  ;;  %v2021_v9 = vld [vmem:[#allocation3 + $0x30] sm:$0xff]  ;;  %v2065_v33 = vld [vmem:[#allocation3 + $0xa0] sm:$0xff] }
 0x132   : > { %v3765_v39 = vmax.f32 %v2059_v59, %v2061_v38  ;;  %1923 = vst.msk [vmem:[#allocation3 + $0x110] sm:$0xff] %vm214_vm2, %v1891_v31  ;;  %v3769_v21 = vmax.f32 %v3756_v41, %v2062_v13  ;;  %v3771_v22 = vmax.f32 %v2061_v38, %v2063_v44  ;;  %v3773_v0 = vmax.f32 %v2062_v13, %v2064_v10  ;;  %v2066_v1 = vld [vmem:[#allocation3 + $0xa8] sm:$0xff]  ;;  %v2067_v25 = vld [vmem:[#allocation3 + $0xb0] sm:$0xff]  ;;  %v2069_v55 = vld [vmem:[#allocation3 + $0xc0] sm:$0xff] }
 0x133   : > { %v2157_v30 = vmax.f32 %v2121_v62, %v2125_v8  ;;  %1924 = vst.msk [vmem:[#allocation3 + $0x118] sm:$0xff] %vm214_vm2, %v1892_v15  ;;  %v2117_v49 = vmax.f32 %v1989_v5, %v2021_v9  ;;  %v2119_v40 = vmax.f32 %v2021_v9, %v3732_v19  ;;  %v2158_v3 = vmax.f32 %v3751_v63, %v2126_v37  ;;  %v2072_v58 = vld [vmem:[#allocation3 + $0xd8] sm:$0xff] }
 0x134   : > { %v2159_v48 = vmax.f32 %v2123_v2, %v3765_v39  ;;  %v2022_v34 = vld [vmem:[#allocation3 + $0x38] sm:$0xff]  ;;  %v2160_v32 = vmax.f32 %v3760_v52, %v3769_v21  ;;  %v2161_v45 = vmax.f32 %v2125_v8, %v3771_v22  ;;  %v2162_v26 = vmax.f32 %v2126_v37, %v3773_v0 }
 0x135   : > { %v2189_v28 = vmax.f32 %v2157_v30, %v2061_v38  ;;  %v2149_v50 = vmax.f32 %v2085_v11, %v2117_v49  ;;  %v2118_v46 = vmax.f32 %v1990_v12, %v2022_v34  ;;  %v2151_v43 = vmax.f32 %v2087_v51, %v2119_v40  ;;  %v2075_v30 = vld [vmem:[#allocation3 + $0xf0] sm:$0xff] }
 0x136   : > { %v2120_v23 = vmax.f32 %v2022_v34, %v3734_v14  ;;  %v2153_v60 = vmax.f32 %v2117_v49, %v2121_v62  ;;  %v2155_v24 = vmax.f32 %v2119_v40, %v2123_v2  ;;  %v2190_v16 = vmax.f32 %v2158_v3, %v2062_v13  ;;  %v2074_v13 = vld [vmem:[#allocation3 + $0xe8] sm:$0xff]  ;;  %v2077_v49 = vld [vmem:[#allocation3 + $0x100] sm:$0xff] }
 0x137   : > { %2377 = vst.msk [vmem:[%s2638_s17 + $0x240] sm:$0xff] %vm214_vm2, %v2189_v28  ;;  %v2191_v56 = vmax.f32 %v2159_v48, %v2063_v44  ;;  %v2181_v7 = vmax.f32 %v2149_v50, %v3732_v19  ;;  %v2150_v36 = vmax.f32 %v2086_v47, %v2118_v46  ;;  %v2183_v27 = vmax.f32 %v2151_v43, %v3741_v61  ;;  %v2068_v19 = vld [vmem:[#allocation3 + $0xb8] sm:$0xff]  ;;  %v2070_v61 = vld [vmem:[#allocation3 + $0xc8] sm:$0xff] }
 0x138   : > { %v2152_v20 = vmax.f32 %v2088_v17, %v2120_v23  ;;  %v2185_v53 = vmax.f32 %v2153_v60, %v2057_v57  ;;  %v2154_v54 = vmax.f32 %v2118_v46, %v3751_v63  ;;  %v2187_v18 = vmax.f32 %v2155_v24, %v2059_v59  ;;  %2378 = vst.msk [vmem:[%s2638_s17 + $0x248] sm:$0xff] %vm214_vm2, %v2190_v16  ;;  %v2071_v57 = vld [vmem:[#allocation3 + $0xd0] sm:$0xff]  ;;  %v2073_v17 = vld [vmem:[#allocation3 + $0xe0] sm:$0xff] }
 0x139   : > { %v2156_v4 = vmax.f32 %v2120_v23, %v3760_v52  ;;  %2379 = vst.msk [vmem:[%s2638_s17 + $0x250] sm:$0xff] %vm214_vm2, %v2191_v56  ;;  %2369 = vst.msk [vmem:[%s2638_s17 + $0x200] sm:$0xff] %vm214_vm2, %v2181_v7  ;;  %v2182_v29 = vmax.f32 %v2150_v36, %v3734_v14  ;;  %v2192_v11 = vmax.f32 %v2160_v32, %v2064_v10  ;;  %v2079_v48 = vld [vmem:[#allocation3 + $0x110] sm:$0xff] }
 0x13a   : > { %2371 = vst.msk [vmem:[%s2638_s17 + $0x210] sm:$0xff] %vm214_vm2, %v2183_v27  ;;  %v2184_v35 = vmax.f32 %v2152_v20, %v3743_v42  ;;  %v2193_v47 = vmax.f32 %v2161_v45, %v2065_v33  ;;  %2373 = vst.msk [vmem:[%s2638_s17 + $0x220] sm:$0xff] %vm214_vm2, %v2185_v53  ;;  %v2186_v5 = vmax.f32 %v2154_v54, %v3747_v6  ;;  %v2080_v34 = vld [vmem:[#allocation3 + $0x118] sm:$0xff] }
 0x13b   : > { %2375 = vst.msk [vmem:[%s2638_s17 + $0x230] sm:$0xff] %vm214_vm2, %v2187_v18  ;;  %v2188_v14 = vmax.f32 %v2156_v4, %v3756_v41  ;;  %v2194_v62 = vmax.f32 %v2162_v26, %v2066_v1  ;;  %v2131_v63 = vmax.f32 %v2063_v44, %v2065_v33  ;;  %2370 = vst.msk [vmem:[%s2638_s17 + $0x208] sm:$0xff] %vm214_vm2, %v2182_v29  ;;  %v2082_v29 = vld [vmem:[#allocation3 + $0x128] sm:$0xff] }
 0x13c   : > { %2372 = vst.msk [vmem:[%s2638_s17 + $0x218] sm:$0xff] %vm214_vm2, %v2184_v35  ;;  %2380 = vst.msk [vmem:[%s2638_s17 + $0x258] sm:$0xff] %vm214_vm2, %v2192_v11  ;;  %v2132_v42 = vmax.f32 %v2064_v10, %v2066_v1  ;;  %v2133_v59 = vmax.f32 %v2065_v33, %v2067_v25  ;;  %v2134_v2 = vmax.f32 %v2066_v1, %v2068_v19 }
 0x13d   : > { %2381 = vst.msk [vmem:[%s2638_s17 + $0x260] sm:$0xff] %vm214_vm2, %v2193_v47  ;;  %v2135_v31 = vmax.f32 %v2067_v25, %v2069_v55  ;;  %2374 = vst.msk [vmem:[%s2638_s17 + $0x228] sm:$0xff] %vm214_vm2, %v2186_v5  ;;  %v2163_v6 = vmax.f32 %v3765_v39, %v2131_v63  ;;  %v2136_v12 = vmax.f32 %v2068_v19, %v2070_v61  ;;  %v2076_v39 = vld [vmem:[#allocation3 + $0xf8] sm:$0xff]  ;;  %v2083_v5 = vld [vmem:[#allocation3 + $0x130] sm:$0xff] }
 0x13e   : > { %2376 = vst.msk [vmem:[%s2638_s17 + $0x238] sm:$0xff] %vm214_vm2, %v2188_v14  ;;  %2382 = vst.msk [vmem:[%s2638_s17 + $0x268] sm:$0xff] %vm214_vm2, %v2194_v62  ;;  %v2137_v51 = vmax.f32 %v2069_v55, %v2071_v57  ;;  %v2138_v41 = vmax.f32 %v2070_v61, %v2072_v58  ;;  %v2164_v52 = vmax.f32 %v3769_v21, %v2132_v42 }
 0x13f   : > { %v2165_v38 = vmax.f32 %v3771_v22, %v2133_v59  ;;  %v2166_v8 = vmax.f32 %v3773_v0, %v2134_v2  ;;  %v2167_v15 = vmax.f32 %v2131_v63, %v2135_v31  ;;  %v2195_v37 = vmax.f32 %v2163_v6, %v2067_v25  ;;  %v2078_v0 = vld [vmem:[#allocation3 + $0x108] sm:$0xff]  ;;  %v2084_v63 = vld [vmem:[#allocation3 + $0x138] sm:$0xff] }
 0x140   : > { %v2168_v44 = vmax.f32 %v2132_v42, %v2136_v12  ;;  %v2169_v10 = vmax.f32 %v2133_v59, %v2137_v51  ;;  %v2170_v9 = vmax.f32 %v2134_v2, %v2138_v41  ;;  %v2196_v21 = vmax.f32 %v2164_v52, %v2068_v19 }
 0x141   : > { %v2197_v40 = vmax.f32 %v2165_v38, %v2069_v55  ;;  %v2198_v22 = vmax.f32 %v2166_v8, %v2070_v61  ;;  %v2199_v3 = vmax.f32 %v2167_v15, %v2071_v57  ;;  %2383 = vst.msk [vmem:[%s2638_s17 + $0x270] sm:$0xff] %vm214_vm2, %v2195_v37  ;;  %v2139_v26 = vmax.f32 %v2071_v57, %v2073_v17  ;;  %v2081_v55 = vld [vmem:[#allocation3 + $0x120] sm:$0xff] }
 0x142   : > { %v2200_v28 = vmax.f32 %v2168_v44, %v2072_v58  ;;  %v2201_v32 = vmax.f32 %v2169_v10, %v2073_v17  ;;  %v2202_v45 = vmax.f32 %v2170_v9, %v2074_v13  ;;  %2384 = vst.msk [vmem:[%s2638_s17 + $0x278] sm:$0xff] %vm214_vm2, %v2196_v21  ;;  %v2140_v50 = vmax.f32 %v2072_v58, %v2074_v13 }
 0x143   : > { %2385 = vst.msk [vmem:[%s2638_s17 + $0x280] sm:$0xff] %vm214_vm2, %v2197_v40  ;;  %2386 = vst.msk [vmem:[%s2638_s17 + $0x288] sm:$0xff] %vm214_vm2, %v2198_v22  ;;  %v2141_v46 = vmax.f32 %v2073_v17, %v2075_v30  ;;  %v2142_v43 = vmax.f32 %v2074_v13, %v2076_v39  ;;  %v2143_v23 = vmax.f32 %v2075_v30, %v2077_v49 }
 0x144   : > { %2387 = vst.msk [vmem:[%s2638_s17 + $0x290] sm:$0xff] %vm214_vm2, %v2199_v3  ;;  %2388 = vst.msk [vmem:[%s2638_s17 + $0x298] sm:$0xff] %vm214_vm2, %v2200_v28  ;;  %v2171_v60 = vmax.f32 %v2135_v31, %v2139_v26  ;;  %v2144_v24 = vmax.f32 %v2076_v39, %v2078_v0  ;;  %v2145_v16 = vmax.f32 %v2077_v49, %v2079_v48 }
 0x145   : > { %2389 = vst.msk [vmem:[%s2638_s17 + $0x2a0] sm:$0xff] %vm214_vm2, %v2201_v32  ;;  %2390 = vst.msk [vmem:[%s2638_s17 + $0x2a8] sm:$0xff] %vm214_vm2, %v2202_v45  ;;  %v2146_v56 = vmax.f32 %v2078_v0, %v2080_v34  ;;  %v2172_v7 = vmax.f32 %v2136_v12, %v2140_v50  ;;  %v2173_v36 = vmax.f32 %v2137_v51, %v2141_v46 }
 0x146   : > { %v2174_v27 = vmax.f32 %v2138_v41, %v2142_v43  ;;  %v2175_v20 = vmax.f32 %v2139_v26, %v2143_v23  ;;  %v2203_v33 = vmax.f32 %v2171_v60, %v2075_v30  ;;  %v2176_v1 = vmax.f32 %v2140_v50, %v2144_v24 }
 0x147   : > { %v2177_v53 = vmax.f32 %v2141_v46, %v2145_v16  ;;  %v2178_v54 = vmax.f32 %v2142_v43, %v2146_v56  ;;  %v2204_v18 = vmax.f32 %v2172_v7, %v2076_v39  ;;  %v2205_v4 = vmax.f32 %v2173_v36, %v2077_v49 }
 0x148   : > { %v2206_v25 = vmax.f32 %v2174_v27, %v2078_v0  ;;  %v2207_v19 = vmax.f32 %v2175_v20, %v2079_v48  ;;  %2391 = vst.msk [vmem:[%s2638_s17 + $0x2b0] sm:$0xff] %vm214_vm2, %v2203_v33  ;;  %v2208_v35 = vmax.f32 %v2176_v1, %v2080_v34  ;;  %v2147_v61 = vmax.f32 %v2079_v48, %v2081_v55 }
 0x149   : > { %v2209_v11 = vmax.f32 %v2177_v53, %v2081_v55  ;;  %v2210_v47 = vmax.f32 %v2178_v54, %v2082_v29  ;;  %2392 = vst.msk [vmem:[%s2638_s17 + $0x2b8] sm:$0xff] %vm214_vm2, %v2204_v18  ;;  %2393 = vst.msk [vmem:[%s2638_s17 + $0x2c0] sm:$0xff] %vm214_vm2, %v2205_v4  ;;  %v2148_v57 = vmax.f32 %v2080_v34, %v2082_v29 }
 0x14a   : > { %2394 = vst.msk [vmem:[%s2638_s17 + $0x2c8] sm:$0xff] %vm214_vm2, %v2206_v25  ;;  %2395 = vst.msk [vmem:[%s2638_s17 + $0x2d0] sm:$0xff] %vm214_vm2, %v2207_v19  ;;  %v2179_v58 = vmax.f32 %v2143_v23, %v2147_v61 }
 0x14b   : > { %2396 = vst.msk [vmem:[%s2638_s17 + $0x2d8] sm:$0xff] %vm214_vm2, %v2208_v35  ;;  %2397 = vst.msk [vmem:[%s2638_s17 + $0x2e0] sm:$0xff] %vm214_vm2, %v2209_v11  ;;  %v2180_v14 = vmax.f32 %v2144_v24, %v2148_v57 }
 0x14c   : > { %2398 = vst.msk [vmem:[%s2638_s17 + $0x2e8] sm:$0xff] %vm214_vm2, %v2210_v47  ;;  %v2211_v62 = vmax.f32 %v2179_v58, %v2083_v5 }
 0x14d   : > { %v2212_v42 = vmax.f32 %v2180_v14, %v2084_v63 }
 0x14e   : > { %2399 = vst.msk [vmem:[%s2638_s17 + $0x2f0] sm:$0xff] %vm214_vm2, %v2211_v62 }
 0x14f   : > { %2400 = vst.msk [vmem:[%s2638_s17 + $0x2f8] sm:$0xff] %vm214_vm2, %v2212_v42 }
 0x150 PF: > { %s11_s8 = sadd.s32 1, %s2452_s8   ;;  %s4095_s6 = smov %s2448_s7 }
 0x151   : > { %p8_p5 = scmp.ge.s32.totalorder %s11_s8, 4   ;;  %s4096_s7 = smov %s4098_s9 }
 0x153   :  { %10 = sbr.rel (!%p8_p5) target bundleno = 2 (0x2), region = 61 }

</bundles_post_ra>
